<compile_context>
chip_gen: v7x
topology: tpu7x:2x2x1
jax: 0.10.0
libtpu: 0.0.40
codegen_flags: <defaults>
</compile_context>

<pallas_src>
import jax
import jax.numpy as jnp
from jax import lax
from jax.experimental import pallas as pl
from jax.experimental.pallas import tpu as pltpu


def _round_up(x, m):
    return ((x + m - 1) // m) * m


def down_kernel(x_ref, w1_ref, b1_ref, w2_ref, b2_ref, o_ref,
                pad1_ref, pad2_ref, acc_ref):
    # x_ref   : (1, Ho, 2, Wo, 2*Cin)     input with the 2x2 pool window split out
    # w*_ref  : (9, C, Cout) bf16         conv taps with BN scale folded in
    # b*_ref  : (1, Cout)    f32          folded BN bias
    # o_ref   : (1, Ho*Wo, Cout) bf16     lane-dense output (Cout padded to lanes)
    # pad*_ref: (Ho+2, Wo+2, C)  bf16     zero-border padded activations
    # acc_ref : (CH*Wo, max(Cmid, Cout)) f32   per-chunk matmul accumulator
    Ho = pad1_ref.shape[0] - 2
    Wo = pad1_ref.shape[1] - 2
    Cin = pad1_ref.shape[2]
    Cmid = pad2_ref.shape[2]
    Cout = o_ref.shape[2]
    CH = acc_ref.shape[0] // Wo          # pooled rows per matmul chunk

    def zero_border(pad_ref):
        # Only the 1-px border needs zeroing; the interior is fully overwritten
        # every step.  (Not guarded by program_id: under megacore each core has
        # its own scratch, so a "first step only" guard would be unsafe.)
        h2, w2, c = pad_ref.shape
        z_row = jnp.zeros((1, w2, c), pad_ref.dtype)
        z_col = jnp.zeros((h2, 1, c), pad_ref.dtype)
        pad_ref[0:1, :, :] = z_row
        pad_ref[h2 - 1:h2, :, :] = z_row
        pad_ref[:, 0:1, :] = z_col
        pad_ref[:, w2 - 1:w2, :] = z_col

    def conv3x3_bn_relu(pad_ref, w_ref, b_ref, c_in, c_out, emit):
        # 9 accumulating per-tap (M, C) x (C, Cout) MXU matmuls per row chunk,
        # f32 accumulation in a VMEM scratch, then fused bias + ReLU + bf16
        # cast + store.  Chunking bounds the live f32 intermediate.
        for r0 in range(0, Ho, CH):
            rows = min(CH, Ho - r0)
            m = rows * Wo
            for k in range(9):
                dh, dw = k // 3, k % 3
                win = pad_ref[r0 + dh:r0 + dh + rows, dw:dw + Wo, :]
                win = win.reshape(m, c_in)
                part = jnp.dot(win, w_ref[k],
                               preferred_element_type=jnp.float32)
                if k == 0:
                    acc_ref[:m, :c_out] = part
                else:
                    acc_ref[:m, :c_out] += part
            y = jnp.maximum(acc_ref[:m, :c_out] + b_ref[...], 0.0)
            emit(r0, rows, y.astype(jnp.bfloat16))

    # ---- 2x2 max pool, stride 2, on the VMEM block ----
    top = x_ref[0, :, 0, :, :]                     # even H rows: (Ho, Wo, 2*Cin)
    bot = x_ref[0, :, 1, :, :]                     # odd  H rows: (Ho, Wo, 2*Cin)
    m01 = jnp.maximum(top, bot)                    # max over the H pair
    pooled = jnp.maximum(m01[:, :, :Cin], m01[:, :, Cin:])   # max over the W pair

    zero_border(pad1_ref)
    pad1_ref[1:Ho + 1, 1:Wo + 1, :] = pooled.astype(pad1_ref.dtype)
    zero_border(pad2_ref)

    # ---- conv1 + BN + ReLU -> pad2 interior (bf16) ----
    def emit_h1(r0, rows, y):
        pad2_ref[1 + r0:1 + r0 + rows, 1:Wo + 1, :] = y.reshape(rows, Wo, Cmid)
    conv3x3_bn_relu(pad1_ref, w1_ref, b1_ref, Cin, Cmid, emit_h1)

    # ---- conv2 + BN + ReLU -> output (bf16, lane-dense) ----
    def emit_out(r0, rows, y):
        o_ref[0, r0 * Wo:(r0 + rows) * Wo, :] = y
    conv3x3_bn_relu(pad2_ref, w2_ref, b2_ref, Cmid, Cout, emit_out)


def fold_bn(gamma, beta, mean, var, eps=1e-5):
    scale = gamma / jnp.sqrt(var + eps)
    return scale, beta - mean * scale


def down_pallas(x_nhwc, w1, scale1, bias1, w2, scale2, bias2, *,
                lane_multiple=128):
    """Fused MaxPool2d(2) + ConvBlock (inference BN folded), channels-last.

    x_nhwc : (N, H, W, Cin) f32/bf16, H and W even (odd inputs are rejected).
    w1     : (3, 3, Cin, Cmid) HWIO weight, w2: (3, 3, Cmid, Cout).
    Returns (N, H//2, W//2, Cout) bf16.  Keep activations NHWC between blocks
    to avoid HBM transposes.  Pass lane_multiple=256 on v6e/v7x so Cout=64
    stages run the 256-wide MXU at full width.
    """
    N, H, W, Cin = x_nhwc.shape
    assert H % 2 == 0 and W % 2 == 0, "Down expects even H and W"
    Ho, Wo = H // 2, W // 2
    Cmid = w1.shape[-1]
    Cout = w2.shape[-1]
    Cmid_p = _round_up(Cmid, lane_multiple)
    Cout_p = _round_up(Cout, lane_multiple)
    Cmax = max(Cmid_p, Cout_p)

    # Fold BN scale into the conv weights (exact for inference BN), zero-pad
    # Cmid/Cout to lane multiples (exact: padded channels have zero weight and
    # bias), cast the matmul weights to bf16, keep biases f32, and lay the 9
    # taps out on a leading dim so the kernel indexes w_ref[k] (no sublane
    # slicing of the weights).
    w1f = w1 * scale1.reshape(1, 1, 1, Cmid)
    w1f = jnp.pad(w1f, ((0, 0), (0, 0), (0, 0), (0, Cmid_p - Cmid)))
    w1f = w1f.reshape(9, Cin, Cmid_p).astype(jnp.bfloat16)
    w2f = w2 * scale2.reshape(1, 1, 1, Cout)
    w2f = jnp.pad(w2f, ((0, 0), (0, 0), (0, Cmid_p - Cmid), (0, Cout_p - Cout)))
    w2f = w2f.reshape(9, Cmid_p, Cout_p).astype(jnp.bfloat16)
    b1 = jnp.pad(bias1, (0, Cmid_p - Cmid)).reshape(1, Cmid_p).astype(jnp.float32)
    b2 = jnp.pad(bias2, (0, Cout_p - Cout)).reshape(1, Cout_p).astype(jnp.float32)

    # Metadata-only reshape exposing the 2x2 pool window; no transpose.
    x = x_nhwc.reshape(N, Ho, 2, Wo, 2 * Cin)

    # Row-chunk size: bound the live f32 accumulator to ~2 MiB per chunk.
    ch = max(1, min(Ho, (2 * 1024 * 1024) // (Wo * Cmax * 4)))

    # Per-step VMEM footprint -> per-call vmem limit (in/out double-buffered).
    blk_in = Ho * 2 * Wo * 2 * Cin * x.dtype.itemsize
    blk_w = (9 * Cin * Cmid_p + 9 * Cmid_p * Cout_p) * 2 + (Cmid_p + Cout_p) * 4
    blk_out = Ho * Wo * Cout_p * 2
    scratch = ((Ho + 2) * (Wo + 2) * (Cin + Cmid_p)) * 2 + ch * Wo * Cmax * 4
    vmem_limit = int(min(max(2 * (2 * (blk_in + blk_w + blk_out) + scratch),
                             32 * 1024 * 1024), 100 * 1024 * 1024))

    out = pl.pallas_call(
        down_kernel,
        out_shape=jax.ShapeDtypeStruct((N, Ho * Wo, Cout_p), jnp.bfloat16),
        grid_spec=pltpu.PrefetchScalarGridSpec(
            num_scalar_prefetch=0,
            grid=(N,),
            in_specs=[
                pl.BlockSpec((1, Ho, 2, Wo, 2 * Cin), lambda n: (n, 0, 0, 0, 0)),
                pl.BlockSpec((9, Cin, Cmid_p), lambda n: (0, 0, 0)),
                pl.BlockSpec((1, Cmid_p), lambda n: (0, 0)),
                pl.BlockSpec((9, Cmid_p, Cout_p), lambda n: (0, 0, 0)),
                pl.BlockSpec((1, Cout_p), lambda n: (0, 0)),
            ],
            out_specs=pl.BlockSpec((1, Ho * Wo, Cout_p), lambda n: (n, 0, 0)),
            scratch_shapes=[
                pltpu.VMEM((Ho + 2, Wo + 2, Cin), jnp.bfloat16),    # padded pool
                pltpu.VMEM((Ho + 2, Wo + 2, Cmid_p), jnp.bfloat16),  # padded h1
                pltpu.VMEM((ch * Wo, Cmax), jnp.float32),            # f32 acc
            ],
        ),
        compiler_params=pltpu.CompilerParams(
            dimension_semantics=("parallel",),
            vmem_limit_bytes=vmem_limit,
        ),
    )(x, w1f, b1, w2f, b2)

    out = out.reshape(N, Ho, Wo, Cout_p)
    if Cout_p != Cout:
        out = out[..., :Cout]   # callers chaining blocks may keep the padding
    return out


def down_reference(x_nhwc, w1, scale1, bias1, w2, scale2, bias2):
    """Pure-JAX channels-last reference (same semantics) for a sanity check."""
    N, H, W, C = x_nhwc.shape
    xp = x_nhwc.reshape(N, H // 2, 2, W // 2, 2, C).max(axis=(2, 4))

    def conv_bn_relu(y, w, s, b):
        z = lax.conv_general_dilated(
            y, w, window_strides=(1, 1), padding="SAME",
            dimension_numbers=("NHWC", "HWIO", "NHWC"))
        return jnp.maximum(z * s + b, 0.0)

    y = conv_bn_relu(xp, w1, scale1, bias1)
    return conv_bn_relu(y, w2, scale2, bias2)


if __name__ == "__main__":
    # Down(channel_in=4, channel_out=8): mid_channels defaults to channel_out.
    N, H, W, Cin = 2, 16, 16, 4
    Cmid, Cout = 8, 8
    eps = 1e-5

    key = jax.random.PRNGKey(0)
    kx, kw1, kw2, kg1, kb1, kg2, kb2 = jax.random.split(key, 7)

    x = jax.random.normal(kx, (N, H, W, Cin), jnp.float32)   # channels-last

    # Conv weights in HWIO layout (equivalent to torch OIHW after transpose).
    w1 = 0.1 * jax.random.normal(kw1, (3, 3, Cin, Cmid), jnp.float32)
    w2 = 0.1 * jax.random.normal(kw2, (3, 3, Cmid, Cout), jnp.float32)

    # Inference-mode BatchNorm folded to per-channel scale/bias.
    gamma1 = 1.0 + 0.1 * jax.random.normal(kg1, (Cmid,), jnp.float32)
    beta1 = 0.1 * jax.random.normal(kb1, (Cmid,), jnp.float32)
    gamma2 = 1.0 + 0.1 * jax.random.normal(kg2, (Cout,), jnp.float32)
    beta2 = 0.1 * jax.random.normal(kb2, (Cout,), jnp.float32)
    scale1, bias1 = fold_bn(gamma1, beta1, jnp.zeros((Cmid,), jnp.float32),
                            jnp.ones((Cmid,), jnp.float32), eps)
    scale2, bias2 = fold_bn(gamma2, beta2, jnp.zeros((Cout,), jnp.float32),
                            jnp.ones((Cout,), jnp.float32), eps)

    out = down_pallas(x, w1, scale1, bias1, w2, scale2, bias2)
    out = jax.block_until_ready(out)

    ref = down_reference(x, w1, scale1, bias1, w2, scale2, bias2)
    assert out.shape == (N, H // 2, W // 2, Cout), out.shape
    # bf16 matmul operands, bf16 inter-conv activation and bf16 output
    # (f32 accumulation) -> expect ~1e-2-level deviation vs the f32 reference.
    assert jnp.allclose(out.astype(jnp.float32), ref, atol=6e-2, rtol=6e-2), (
        "mismatch vs reference")

    print("KERNEL_OK")
</pallas_src>

<mosaic_0001>
module attributes {stable_mosaic.version = 11 : i64} {
  func.func @down_kernel(%arg0: i32, %arg1: memref<1x8x2x8x8xf32, #tpu.memory_space<vmem>>, %arg2: memref<9x4x128xbf16, #tpu.memory_space<vmem>>, %arg3: memref<1x128xf32, #tpu.memory_space<vmem>>, %arg4: memref<9x128x128xbf16, #tpu.memory_space<vmem>>, %arg5: memref<1x128xf32, #tpu.memory_space<vmem>>, %arg6: memref<1x64x128xbf16, #tpu.memory_space<vmem>>, %arg7: memref<10x10x4xbf16, #tpu.memory_space<vmem>>, %arg8: memref<10x10x128xbf16, #tpu.memory_space<vmem>>, %arg9: memref<64x128xf32, #tpu.memory_space<vmem>>) attributes {dimension_semantics = [#tpu.dimension_semantics<parallel>], iteration_bounds = array<i64: 2>, scalar_prefetch = 0 : i64, scratch_operands = 3 : i64, tpu.core_type = #tpu.core_type<tc>, window_params = [{transform_indices = @transform_0, window_bounds = array<i64: 1, 8, 2, 8, 8>}, {pipeline_mode = #tpu.pipeline_mode<synchronous>, transform_indices = @transform_1, window_bounds = array<i64: 9, 4, 128>}, {pipeline_mode = #tpu.pipeline_mode<synchronous>, transform_indices = @transform_2, window_bounds = array<i64: 1, 128>}, {pipeline_mode = #tpu.pipeline_mode<synchronous>, transform_indices = @transform_3, window_bounds = array<i64: 9, 128, 128>}, {pipeline_mode = #tpu.pipeline_mode<synchronous>, transform_indices = @transform_4, window_bounds = array<i64: 1, 128>}, {transform_indices = @transform_5, window_bounds = array<i64: 1, 64, 128>}]} {
    %c0 = arith.constant 0 : index
    %c0_0 = arith.constant 0 : index
    %c0_1 = arith.constant 0 : index
    %c0_2 = arith.constant 0 : index
    %c0_3 = arith.constant 0 : index
    %0 = vector.load %arg1[%c0, %c0_0, %c0_1, %c0_2, %c0_3] : memref<1x8x2x8x8xf32, #tpu.memory_space<vmem>>, vector<1x8x1x8x8xf32>
    %1 = vector.shape_cast %0 : vector<1x8x1x8x8xf32> to vector<8x8x8xf32>
    %c0_4 = arith.constant 0 : index
    %c0_5 = arith.constant 0 : index
    %c1 = arith.constant 1 : index
    %c0_6 = arith.constant 0 : index
    %c0_7 = arith.constant 0 : index
    %2 = vector.load %arg1[%c0_4, %c0_5, %c1, %c0_6, %c0_7] : memref<1x8x2x8x8xf32, #tpu.memory_space<vmem>>, vector<1x8x1x8x8xf32>
    %3 = vector.shape_cast %2 : vector<1x8x1x8x8xf32> to vector<8x8x8xf32>
    %4 = arith.maximumf %1, %3 : vector<8x8x8xf32>
    %5 = vector.extract_strided_slice %4 {offsets = [0, 0, 0], sizes = [8, 8, 4], strides = [1, 1, 1]} : vector<8x8x8xf32> to vector<8x8x4xf32>
    %6 = vector.extract_strided_slice %4 {offsets = [0, 0, 4], sizes = [8, 8, 4], strides = [1, 1, 1]} : vector<8x8x8xf32> to vector<8x8x4xf32>
    %7 = arith.maximumf %5, %6 : vector<8x8x4xf32>
    %cst = arith.constant 0.000000e+00 : bf16
    %8 = vector.broadcast %cst : bf16 to vector<1x10x4xbf16>
    %cst_8 = arith.constant 0.000000e+00 : bf16
    %9 = vector.broadcast %cst_8 : bf16 to vector<10x1x4xbf16>
    %c0_9 = arith.constant 0 : index
    %c0_10 = arith.constant 0 : index
    %c0_11 = arith.constant 0 : index
    %10 = vector.load %arg7[%c0_9, %c0_10, %c0_11] : memref<10x10x4xbf16, #tpu.memory_space<vmem>>, vector<1x10x4xbf16>
    tpu.vector_store %arg7[%c0_9, %c0_10, %c0_11], %8 {strides = array<i32>} : memref<10x10x4xbf16, #tpu.memory_space<vmem>>, vector<1x10x4xbf16>,
    %c9 = arith.constant 9 : index
    %c0_12 = arith.constant 0 : index
    %c0_13 = arith.constant 0 : index
    %11 = vector.load %arg7[%c9, %c0_12, %c0_13] : memref<10x10x4xbf16, #tpu.memory_space<vmem>>, vector<1x10x4xbf16>
    tpu.vector_store %arg7[%c9, %c0_12, %c0_13], %8 {strides = array<i32>} : memref<10x10x4xbf16, #tpu.memory_space<vmem>>, vector<1x10x4xbf16>,
    %c0_14 = arith.constant 0 : index
    %c0_15 = arith.constant 0 : index
    %c0_16 = arith.constant 0 : index
    %12 = vector.load %arg7[%c0_14, %c0_15, %c0_16] : memref<10x10x4xbf16, #tpu.memory_space<vmem>>, vector<10x1x4xbf16>
    tpu.vector_store %arg7[%c0_14, %c0_15, %c0_16], %9 {strides = array<i32>} : memref<10x10x4xbf16, #tpu.memory_space<vmem>>, vector<10x1x4xbf16>,
    %c0_17 = arith.constant 0 : index
    %c9_18 = arith.constant 9 : index
    %c0_19 = arith.constant 0 : index
    %13 = vector.load %arg7[%c0_17, %c9_18, %c0_19] : memref<10x10x4xbf16, #tpu.memory_space<vmem>>, vector<10x1x4xbf16>
    tpu.vector_store %arg7[%c0_17, %c9_18, %c0_19], %9 {strides = array<i32>} : memref<10x10x4xbf16, #tpu.memory_space<vmem>>, vector<10x1x4xbf16>,
    %14 = arith.truncf %7 : vector<8x8x4xf32> to vector<8x8x4xbf16>
    %c1_20 = arith.constant 1 : index
    %c1_21 = arith.constant 1 : index
    %c0_22 = arith.constant 0 : index
    %15 = vector.load %arg7[%c1_20, %c1_21, %c0_22] : memref<10x10x4xbf16, #tpu.memory_space<vmem>>, vector<8x8x4xbf16>
    tpu.vector_store %arg7[%c1_20, %c1_21, %c0_22], %14 {strides = array<i32>} : memref<10x10x4xbf16, #tpu.memory_space<vmem>>, vector<8x8x4xbf16>,
    %cst_23 = arith.constant 0.000000e+00 : bf16
    %16 = vector.broadcast %cst_23 : bf16 to vector<1x10x128xbf16>
    %cst_24 = arith.constant 0.000000e+00 : bf16
    %17 = vector.broadcast %cst_24 : bf16 to vector<10x1x128xbf16>
    %c0_25 = arith.constant 0 : index
    %c0_26 = arith.constant 0 : index
    %c0_27 = arith.constant 0 : index
    %18 = vector.load %arg8[%c0_25, %c0_26, %c0_27] : memref<10x10x128xbf16, #tpu.memory_space<vmem>>, vector<1x10x128xbf16>
    tpu.vector_store %arg8[%c0_25, %c0_26, %c0_27], %16 {strides = array<i32>} : memref<10x10x128xbf16, #tpu.memory_space<vmem>>, vector<1x10x128xbf16>,
    %c9_28 = arith.constant 9 : index
    %c0_29 = arith.constant 0 : index
    %c0_30 = arith.constant 0 : index
    %19 = vector.load %arg8[%c9_28, %c0_29, %c0_30] : memref<10x10x128xbf16, #tpu.memory_space<vmem>>, vector<1x10x128xbf16>
    tpu.vector_store %arg8[%c9_28, %c0_29, %c0_30], %16 {strides = array<i32>} : memref<10x10x128xbf16, #tpu.memory_space<vmem>>, vector<1x10x128xbf16>,
    %c0_31 = arith.constant 0 : index
    %c0_32 = arith.constant 0 : index
    %c0_33 = arith.constant 0 : index
    %20 = vector.load %arg8[%c0_31, %c0_32, %c0_33] : memref<10x10x128xbf16, #tpu.memory_space<vmem>>, vector<10x1x128xbf16>
    tpu.vector_store %arg8[%c0_31, %c0_32, %c0_33], %17 {strides = array<i32>} : memref<10x10x128xbf16, #tpu.memory_space<vmem>>, vector<10x1x128xbf16>,
    %c0_34 = arith.constant 0 : index
    %c9_35 = arith.constant 9 : index
    %c0_36 = arith.constant 0 : index
    %21 = vector.load %arg8[%c0_34, %c9_35, %c0_36] : memref<10x10x128xbf16, #tpu.memory_space<vmem>>, vector<10x1x128xbf16>
    tpu.vector_store %arg8[%c0_34, %c9_35, %c0_36], %17 {strides = array<i32>} : memref<10x10x128xbf16, #tpu.memory_space<vmem>>, vector<10x1x128xbf16>,
    %c0_37 = arith.constant 0 : index
    %c0_38 = arith.constant 0 : index
    %c0_39 = arith.constant 0 : index
    %22 = vector.load %arg7[%c0_37, %c0_38, %c0_39] : memref<10x10x4xbf16, #tpu.memory_space<vmem>>, vector<8x8x4xbf16>
    %23 = vector.shape_cast %22 : vector<8x8x4xbf16> to vector<64x4xbf16>
    %c0_40 = arith.constant 0 : index
    %c0_41 = arith.constant 0 : index
    %c0_42 = arith.constant 0 : index
    %24 = vector.load %arg2[%c0_40, %c0_41, %c0_42] : memref<9x4x128xbf16, #tpu.memory_space<vmem>>, vector<1x4x128xbf16>
    %25 = vector.shape_cast %24 : vector<1x4x128xbf16> to vector<4x128xbf16>
    %cst_43 = arith.constant dense<0.000000e+00> : vector<64x128xf32>
    %26 = tpu.matmul %23, %25, %cst_43 {dimension_numbers = #tpu.dot_dimension_numbers<[1], [0], [0], [1], [0, 0, 1, 1], [], []>} : vector<64x4xbf16>, vector<4x128xbf16>, vector<64x128xf32> -> vector<64x128xf32>
    %c0_44 = arith.constant 0 : index
    %c0_45 = arith.constant 0 : index
    %27 = vector.load %arg9[%c0_44, %c0_45] : memref<64x128xf32, #tpu.memory_space<vmem>>, vector<64x128xf32>
    tpu.vector_store %arg9[%c0_44, %c0_45], %26 {strides = array<i32>} : memref<64x128xf32, #tpu.memory_space<vmem>>, vector<64x128xf32>,
    %c0_46 = arith.constant 0 : index
    %c1_47 = arith.constant 1 : index
    %c0_48 = arith.constant 0 : index
    %28 = vector.load %arg7[%c0_46, %c1_47, %c0_48] : memref<10x10x4xbf16, #tpu.memory_space<vmem>>, vector<8x8x4xbf16>
    %29 = vector.shape_cast %28 : vector<8x8x4xbf16> to vector<64x4xbf16>
    %c1_49 = arith.constant 1 : index
    %c0_50 = arith.constant 0 : index
    %c0_51 = arith.constant 0 : index
    %30 = vector.load %arg2[%c1_49, %c0_50, %c0_51] : memref<9x4x128xbf16, #tpu.memory_space<vmem>>, vector<1x4x128xbf16>
    %31 = vector.shape_cast %30 : vector<1x4x128xbf16> to vector<4x128xbf16>
    %cst_52 = arith.constant dense<0.000000e+00> : vector<64x128xf32>
    %32 = tpu.matmul %29, %31, %cst_52 {dimension_numbers = #tpu.dot_dimension_numbers<[1], [0], [0], [1], [0, 0, 1, 1], [], []>} : vector<64x4xbf16>, vector<4x128xbf16>, vector<64x128xf32> -> vector<64x128xf32>
    %c0_53 = arith.constant 0 : index
    %c0_54 = arith.constant 0 : index
    %33 = vector.load %arg9[%c0_53, %c0_54] : memref<64x128xf32, #tpu.memory_space<vmem>>, vector<64x128xf32>
    %34 = arith.addf %33, %32 : vector<64x128xf32>
    %c0_55 = arith.constant 0 : index
    %c0_56 = arith.constant 0 : index
    %35 = vector.load %arg9[%c0_55, %c0_56] : memref<64x128xf32, #tpu.memory_space<vmem>>, vector<64x128xf32>
    tpu.vector_store %arg9[%c0_55, %c0_56], %34 {strides = array<i32>} : memref<64x128xf32, #tpu.memory_space<vmem>>, vector<64x128xf32>,
    %c0_57 = arith.constant 0 : index
    %c2 = arith.constant 2 : index
    %c0_58 = arith.constant 0 : index
    %36 = vector.load %arg7[%c0_57, %c2, %c0_58] : memref<10x10x4xbf16, #tpu.memory_space<vmem>>, vector<8x8x4xbf16>
    %37 = vector.shape_cast %36 : vector<8x8x4xbf16> to vector<64x4xbf16>
    %c2_59 = arith.constant 2 : index
    %c0_60 = arith.constant 0 : index
    %c0_61 = arith.constant 0 : index
    %38 = vector.load %arg2[%c2_59, %c0_60, %c0_61] : memref<9x4x128xbf16, #tpu.memory_space<vmem>>, vector<1x4x128xbf16>
    %39 = vector.shape_cast %38 : vector<1x4x128xbf16> to vector<4x128xbf16>
    %cst_62 = arith.constant dense<0.000000e+00> : vector<64x128xf32>
    %40 = tpu.matmul %37, %39, %cst_62 {dimension_numbers = #tpu.dot_dimension_numbers<[1], [0], [0], [1], [0, 0, 1, 1], [], []>} : vector<64x4xbf16>, vector<4x128xbf16>, vector<64x128xf32> -> vector<64x128xf32>
    %c0_63 = arith.constant 0 : index
    %c0_64 = arith.constant 0 : index
    %41 = vector.load %arg9[%c0_63, %c0_64] : memref<64x128xf32, #tpu.memory_space<vmem>>, vector<64x128xf32>
    %42 = arith.addf %41, %40 : vector<64x128xf32>
    %c0_65 = arith.constant 0 : index
    %c0_66 = arith.constant 0 : index
    %43 = vector.load %arg9[%c0_65, %c0_66] : memref<64x128xf32, #tpu.memory_space<vmem>>, vector<64x128xf32>
    tpu.vector_store %arg9[%c0_65, %c0_66], %42 {strides = array<i32>} : memref<64x128xf32, #tpu.memory_space<vmem>>, vector<64x128xf32>,
    %c1_67 = arith.constant 1 : index
    %c0_68 = arith.constant 0 : index
    %c0_69 = arith.constant 0 : index
    %44 = vector.load %arg7[%c1_67, %c0_68, %c0_69] : memref<10x10x4xbf16, #tpu.memory_space<vmem>>, vector<8x8x4xbf16>
    %45 = vector.shape_cast %44 : vector<8x8x4xbf16> to vector<64x4xbf16>
    %c3 = arith.constant 3 : index
    %c0_70 = arith.constant 0 : index
    %c0_71 = arith.constant 0 : index
    %46 = vector.load %arg2[%c3, %c0_70, %c0_71] : memref<9x4x128xbf16, #tpu.memory_space<vmem>>, vector<1x4x128xbf16>
    %47 = vector.shape_cast %46 : vector<1x4x128xbf16> to vector<4x128xbf16>
    %cst_72 = arith.constant dense<0.000000e+00> : vector<64x128xf32>
    %48 = tpu.matmul %45, %47, %cst_72 {dimension_numbers = #tpu.dot_dimension_numbers<[1], [0], [0], [1], [0, 0, 1, 1], [], []>} : vector<64x4xbf16>, vector<4x128xbf16>, vector<64x128xf32> -> vector<64x128xf32>
    %c0_73 = arith.constant 0 : index
    %c0_74 = arith.constant 0 : index
    %49 = vector.load %arg9[%c0_73, %c0_74] : memref<64x128xf32, #tpu.memory_space<vmem>>, vector<64x128xf32>
    %50 = arith.addf %49, %48 : vector<64x128xf32>
    %c0_75 = arith.constant 0 : index
    %c0_76 = arith.constant 0 : index
    %51 = vector.load %arg9[%c0_75, %c0_76] : memref<64x128xf32, #tpu.memory_space<vmem>>, vector<64x128xf32>
    tpu.vector_store %arg9[%c0_75, %c0_76], %50 {strides = array<i32>} : memref<64x128xf32, #tpu.memory_space<vmem>>, vector<64x128xf32>,
    %c1_77 = arith.constant 1 : index
    %c1_78 = arith.constant 1 : index
    %c0_79 = arith.constant 0 : index
    %52 = vector.load %arg7[%c1_77, %c1_78, %c0_79] : memref<10x10x4xbf16, #tpu.memory_space<vmem>>, vector<8x8x4xbf16>
    %53 = vector.shape_cast %52 : vector<8x8x4xbf16> to vector<64x4xbf16>
    %c4 = arith.constant 4 : index
    %c0_80 = arith.constant 0 : index
    %c0_81 = arith.constant 0 : index
    %54 = vector.load %arg2[%c4, %c0_80, %c0_81] : memref<9x4x128xbf16, #tpu.memory_space<vmem>>, vector<1x4x128xbf16>
    %55 = vector.shape_cast %54 : vector<1x4x128xbf16> to vector<4x128xbf16>
    %cst_82 = arith.constant dense<0.000000e+00> : vector<64x128xf32>
    %56 = tpu.matmul %53, %55, %cst_82 {dimension_numbers = #tpu.dot_dimension_numbers<[1], [0], [0], [1], [0, 0, 1, 1], [], []>} : vector<64x4xbf16>, vector<4x128xbf16>, vector<64x128xf32> -> vector<64x128xf32>
    %c0_83 = arith.constant 0 : index
    %c0_84 = arith.constant 0 : index
    %57 = vector.load %arg9[%c0_83, %c0_84] : memref<64x128xf32, #tpu.memory_space<vmem>>, vector<64x128xf32>
    %58 = arith.addf %57, %56 : vector<64x128xf32>
    %c0_85 = arith.constant 0 : index
    %c0_86 = arith.constant 0 : index
    %59 = vector.load %arg9[%c0_85, %c0_86] : memref<64x128xf32, #tpu.memory_space<vmem>>, vector<64x128xf32>
    tpu.vector_store %arg9[%c0_85, %c0_86], %58 {strides = array<i32>} : memref<64x128xf32, #tpu.memory_space<vmem>>, vector<64x128xf32>,
    %c1_87 = arith.constant 1 : index
    %c2_88 = arith.constant 2 : index
    %c0_89 = arith.constant 0 : index
    %60 = vector.load %arg7[%c1_87, %c2_88, %c0_89] : memref<10x10x4xbf16, #tpu.memory_space<vmem>>, vector<8x8x4xbf16>
    %61 = vector.shape_cast %60 : vector<8x8x4xbf16> to vector<64x4xbf16>
    %c5 = arith.constant 5 : index
    %c0_90 = arith.constant 0 : index
    %c0_91 = arith.constant 0 : index
    %62 = vector.load %arg2[%c5, %c0_90, %c0_91] : memref<9x4x128xbf16, #tpu.memory_space<vmem>>, vector<1x4x128xbf16>
    %63 = vector.shape_cast %62 : vector<1x4x128xbf16> to vector<4x128xbf16>
    %cst_92 = arith.constant dense<0.000000e+00> : vector<64x128xf32>
    %64 = tpu.matmul %61, %63, %cst_92 {dimension_numbers = #tpu.dot_dimension_numbers<[1], [0], [0], [1], [0, 0, 1, 1], [], []>} : vector<64x4xbf16>, vector<4x128xbf16>, vector<64x128xf32> -> vector<64x128xf32>
    %c0_93 = arith.constant 0 : index
    %c0_94 = arith.constant 0 : index
    %65 = vector.load %arg9[%c0_93, %c0_94] : memref<64x128xf32, #tpu.memory_space<vmem>>, vector<64x128xf32>
    %66 = arith.addf %65, %64 : vector<64x128xf32>
    %c0_95 = arith.constant 0 : index
    %c0_96 = arith.constant 0 : index
    %67 = vector.load %arg9[%c0_95, %c0_96] : memref<64x128xf32, #tpu.memory_space<vmem>>, vector<64x128xf32>
    tpu.vector_store %arg9[%c0_95, %c0_96], %66 {strides = array<i32>} : memref<64x128xf32, #tpu.memory_space<vmem>>, vector<64x128xf32>,
    %c2_97 = arith.constant 2 : index
    %c0_98 = arith.constant 0 : index
    %c0_99 = arith.constant 0 : index
    %68 = vector.load %arg7[%c2_97, %c0_98, %c0_99] : memref<10x10x4xbf16, #tpu.memory_space<vmem>>, vector<8x8x4xbf16>
    %69 = vector.shape_cast %68 : vector<8x8x4xbf16> to vector<64x4xbf16>
    %c6 = arith.constant 6 : index
    %c0_100 = arith.constant 0 : index
    %c0_101 = arith.constant 0 : index
    %70 = vector.load %arg2[%c6, %c0_100, %c0_101] : memref<9x4x128xbf16, #tpu.memory_space<vmem>>, vector<1x4x128xbf16>
    %71 = vector.shape_cast %70 : vector<1x4x128xbf16> to vector<4x128xbf16>
    %cst_102 = arith.constant dense<0.000000e+00> : vector<64x128xf32>
    %72 = tpu.matmul %69, %71, %cst_102 {dimension_numbers = #tpu.dot_dimension_numbers<[1], [0], [0], [1], [0, 0, 1, 1], [], []>} : vector<64x4xbf16>, vector<4x128xbf16>, vector<64x128xf32> -> vector<64x128xf32>
    %c0_103 = arith.constant 0 : index
    %c0_104 = arith.constant 0 : index
    %73 = vector.load %arg9[%c0_103, %c0_104] : memref<64x128xf32, #tpu.memory_space<vmem>>, vector<64x128xf32>
    %74 = arith.addf %73, %72 : vector<64x128xf32>
    %c0_105 = arith.constant 0 : index
    %c0_106 = arith.constant 0 : index
    %75 = vector.load %arg9[%c0_105, %c0_106] : memref<64x128xf32, #tpu.memory_space<vmem>>, vector<64x128xf32>
    tpu.vector_store %arg9[%c0_105, %c0_106], %74 {strides = array<i32>} : memref<64x128xf32, #tpu.memory_space<vmem>>, vector<64x128xf32>,
    %c2_107 = arith.constant 2 : index
    %c1_108 = arith.constant 1 : index
    %c0_109 = arith.constant 0 : index
    %76 = vector.load %arg7[%c2_107, %c1_108, %c0_109] : memref<10x10x4xbf16, #tpu.memory_space<vmem>>, vector<8x8x4xbf16>
    %77 = vector.shape_cast %76 : vector<8x8x4xbf16> to vector<64x4xbf16>
    %c7 = arith.constant 7 : index
    %c0_110 = arith.constant 0 : index
    %c0_111 = arith.constant 0 : index
    %78 = vector.load %arg2[%c7, %c0_110, %c0_111] : memref<9x4x128xbf16, #tpu.memory_space<vmem>>, vector<1x4x128xbf16>
    %79 = vector.shape_cast %78 : vector<1x4x128xbf16> to vector<4x128xbf16>
    %cst_112 = arith.constant dense<0.000000e+00> : vector<64x128xf32>
    %80 = tpu.matmul %77, %79, %cst_112 {dimension_numbers = #tpu.dot_dimension_numbers<[1], [0], [0], [1], [0, 0, 1, 1], [], []>} : vector<64x4xbf16>, vector<4x128xbf16>, vector<64x128xf32> -> vector<64x128xf32>
    %c0_113 = arith.constant 0 : index
    %c0_114 = arith.constant 0 : index
    %81 = vector.load %arg9[%c0_113, %c0_114] : memref<64x128xf32, #tpu.memory_space<vmem>>, vector<64x128xf32>
    %82 = arith.addf %81, %80 : vector<64x128xf32>
    %c0_115 = arith.constant 0 : index
    %c0_116 = arith.constant 0 : index
    %83 = vector.load %arg9[%c0_115, %c0_116] : memref<64x128xf32, #tpu.memory_space<vmem>>, vector<64x128xf32>
    tpu.vector_store %arg9[%c0_115, %c0_116], %82 {strides = array<i32>} : memref<64x128xf32, #tpu.memory_space<vmem>>, vector<64x128xf32>,
    %c2_117 = arith.constant 2 : index
    %c2_118 = arith.constant 2 : index
    %c0_119 = arith.constant 0 : index
    %84 = vector.load %arg7[%c2_117, %c2_118, %c0_119] : memref<10x10x4xbf16, #tpu.memory_space<vmem>>, vector<8x8x4xbf16>
    %85 = vector.shape_cast %84 : vector<8x8x4xbf16> to vector<64x4xbf16>
    %c8 = arith.constant 8 : index
    %c0_120 = arith.constant 0 : index
    %c0_121 = arith.constant 0 : index
    %86 = vector.load %arg2[%c8, %c0_120, %c0_121] : memref<9x4x128xbf16, #tpu.memory_space<vmem>>, vector<1x4x128xbf16>
    %87 = vector.shape_cast %86 : vector<1x4x128xbf16> to vector<4x128xbf16>
    %cst_122 = arith.constant dense<0.000000e+00> : vector<64x128xf32>
    %88 = tpu.matmul %85, %87, %cst_122 {dimension_numbers = #tpu.dot_dimension_numbers<[1], [0], [0], [1], [0, 0, 1, 1], [], []>} : vector<64x4xbf16>, vector<4x128xbf16>, vector<64x128xf32> -> vector<64x128xf32>
    %c0_123 = arith.constant 0 : index
    %c0_124 = arith.constant 0 : index
    %89 = vector.load %arg9[%c0_123, %c0_124] : memref<64x128xf32, #tpu.memory_space<vmem>>, vector<64x128xf32>
    %90 = arith.addf %89, %88 : vector<64x128xf32>
    %c0_125 = arith.constant 0 : index
    %c0_126 = arith.constant 0 : index
    %91 = vector.load %arg9[%c0_125, %c0_126] : memref<64x128xf32, #tpu.memory_space<vmem>>, vector<64x128xf32>
    tpu.vector_store %arg9[%c0_125, %c0_126], %90 {strides = array<i32>} : memref<64x128xf32, #tpu.memory_space<vmem>>, vector<64x128xf32>,
    %c0_127 = arith.constant 0 : index
    %c0_128 = arith.constant 0 : index
    %92 = vector.load %arg9[%c0_127, %c0_128] : memref<64x128xf32, #tpu.memory_space<vmem>>, vector<64x128xf32>
    %c0_129 = arith.constant 0 : index
    %c0_130 = arith.constant 0 : index
    %93 = vector.load %arg3[%c0_129, %c0_130] : memref<1x128xf32, #tpu.memory_space<vmem>>, vector<1x128xf32>
    %94 = vector.broadcast %93 : vector<1x128xf32> to vector<64x128xf32>
    %95 = arith.addf %92, %94 : vector<64x128xf32>
    %cst_131 = arith.constant 0.000000e+00 : f32
    %96 = vector.broadcast %cst_131 : f32 to vector<64x128xf32>
    %97 = arith.maximumf %95, %96 : vector<64x128xf32>
    %98 = arith.truncf %97 : vector<64x128xf32> to vector<64x128xbf16>
    %99 = vector.shape_cast %98 : vector<64x128xbf16> to vector<8x8x128xbf16>
    %c1_132 = arith.constant 1 : index
    %c1_133 = arith.constant 1 : index
    %c0_134 = arith.constant 0 : index
    %100 = vector.load %arg8[%c1_132, %c1_133, %c0_134] : memref<10x10x128xbf16, #tpu.memory_space<vmem>>, vector<8x8x128xbf16>
    tpu.vector_store %arg8[%c1_132, %c1_133, %c0_134], %99 {strides = array<i32>} : memref<10x10x128xbf16, #tpu.memory_space<vmem>>, vector<8x8x128xbf16>,
    %c0_135 = arith.constant 0 : index
    %c0_136 = arith.constant 0 : index
    %c0_137 = arith.constant 0 : index
    %101 = vector.load %arg8[%c0_135, %c0_136, %c0_137] : memref<10x10x128xbf16, #tpu.memory_space<vmem>>, vector<8x8x128xbf16>
    %102 = vector.shape_cast %101 : vector<8x8x128xbf16> to vector<64x128xbf16>
    %c0_138 = arith.constant 0 : index
    %c0_139 = arith.constant 0 : index
    %c0_140 = arith.constant 0 : index
    %103 = vector.load %arg4[%c0_138, %c0_139, %c0_140] : memref<9x128x128xbf16, #tpu.memory_space<vmem>>, vector<1x128x128xbf16>
    %104 = vector.shape_cast %103 : vector<1x128x128xbf16> to vector<128x128xbf16>
    %cst_141 = arith.constant dense<0.000000e+00> : vector<64x128xf32>
    %105 = tpu.matmul %102, %104, %cst_141 {dimension_numbers = #tpu.dot_dimension_numbers<[1], [0], [0], [1], [0, 0, 1, 1], [], []>} : vector<64x128xbf16>, vector<128x128xbf16>, vector<64x128xf32> -> vector<64x128xf32>
    %c0_142 = arith.constant 0 : index
    %c0_143 = arith.constant 0 : index
    %106 = vector.load %arg9[%c0_142, %c0_143] : memref<64x128xf32, #tpu.memory_space<vmem>>, vector<64x128xf32>
    tpu.vector_store %arg9[%c0_142, %c0_143], %105 {strides = array<i32>} : memref<64x128xf32, #tpu.memory_space<vmem>>, vector<64x128xf32>,
    %c0_144 = arith.constant 0 : index
    %c1_145 = arith.constant 1 : index
    %c0_146 = arith.constant 0 : index
    %107 = vector.load %arg8[%c0_144, %c1_145, %c0_146] : memref<10x10x128xbf16, #tpu.memory_space<vmem>>, vector<8x8x128xbf16>
    %108 = vector.shape_cast %107 : vector<8x8x128xbf16> to vector<64x128xbf16>
    %c1_147 = arith.constant 1 : index
    %c0_148 = arith.constant 0 : index
    %c0_149 = arith.constant 0 : index
    %109 = vector.load %arg4[%c1_147, %c0_148, %c0_149] : memref<9x128x128xbf16, #tpu.memory_space<vmem>>, vector<1x128x128xbf16>
    %110 = vector.shape_cast %109 : vector<1x128x128xbf16> to vector<128x128xbf16>
    %cst_150 = arith.constant dense<0.000000e+00> : vector<64x128xf32>
    %111 = tpu.matmul %108, %110, %cst_150 {dimension_numbers = #tpu.dot_dimension_numbers<[1], [0], [0], [1], [0, 0, 1, 1], [], []>} : vector<64x128xbf16>, vector<128x128xbf16>, vector<64x128xf32> -> vector<64x128xf32>
    %c0_151 = arith.constant 0 : index
    %c0_152 = arith.constant 0 : index
    %112 = vector.load %arg9[%c0_151, %c0_152] : memref<64x128xf32, #tpu.memory_space<vmem>>, vector<64x128xf32>
    %113 = arith.addf %112, %111 : vector<64x128xf32>
    %c0_153 = arith.constant 0 : index
    %c0_154 = arith.constant 0 : index
    %114 = vector.load %arg9[%c0_153, %c0_154] : memref<64x128xf32, #tpu.memory_space<vmem>>, vector<64x128xf32>
    tpu.vector_store %arg9[%c0_153, %c0_154], %113 {strides = array<i32>} : memref<64x128xf32, #tpu.memory_space<vmem>>, vector<64x128xf32>,
    %c0_155 = arith.constant 0 : index
    %c2_156 = arith.constant 2 : index
    %c0_157 = arith.constant 0 : index
    %115 = vector.load %arg8[%c0_155, %c2_156, %c0_157] : memref<10x10x128xbf16, #tpu.memory_space<vmem>>, vector<8x8x128xbf16>
    %116 = vector.shape_cast %115 : vector<8x8x128xbf16> to vector<64x128xbf16>
    %c2_158 = arith.constant 2 : index
    %c0_159 = arith.constant 0 : index
    %c0_160 = arith.constant 0 : index
    %117 = vector.load %arg4[%c2_158, %c0_159, %c0_160] : memref<9x128x128xbf16, #tpu.memory_space<vmem>>, vector<1x128x128xbf16>
    %118 = vector.shape_cast %117 : vector<1x128x128xbf16> to vector<128x128xbf16>
    %cst_161 = arith.constant dense<0.000000e+00> : vector<64x128xf32>
    %119 = tpu.matmul %116, %118, %cst_161 {dimension_numbers = #tpu.dot_dimension_numbers<[1], [0], [0], [1], [0, 0, 1, 1], [], []>} : vector<64x128xbf16>, vector<128x128xbf16>, vector<64x128xf32> -> vector<64x128xf32>
    %c0_162 = arith.constant 0 : index
    %c0_163 = arith.constant 0 : index
    %120 = vector.load %arg9[%c0_162, %c0_163] : memref<64x128xf32, #tpu.memory_space<vmem>>, vector<64x128xf32>
    %121 = arith.addf %120, %119 : vector<64x128xf32>
    %c0_164 = arith.constant 0 : index
    %c0_165 = arith.constant 0 : index
    %122 = vector.load %arg9[%c0_164, %c0_165] : memref<64x128xf32, #tpu.memory_space<vmem>>, vector<64x128xf32>
    tpu.vector_store %arg9[%c0_164, %c0_165], %121 {strides = array<i32>} : memref<64x128xf32, #tpu.memory_space<vmem>>, vector<64x128xf32>,
    %c1_166 = arith.constant 1 : index
    %c0_167 = arith.constant 0 : index
    %c0_168 = arith.constant 0 : index
    %123 = vector.load %arg8[%c1_166, %c0_167, %c0_168] : memref<10x10x128xbf16, #tpu.memory_space<vmem>>, vector<8x8x128xbf16>
    %124 = vector.shape_cast %123 : vector<8x8x128xbf16> to vector<64x128xbf16>
    %c3_169 = arith.constant 3 : index
    %c0_170 = arith.constant 0 : index
    %c0_171 = arith.constant 0 : index
    %125 = vector.load %arg4[%c3_169, %c0_170, %c0_171] : memref<9x128x128xbf16, #tpu.memory_space<vmem>>, vector<1x128x128xbf16>
    %126 = vector.shape_cast %125 : vector<1x128x128xbf16> to vector<128x128xbf16>
    %cst_172 = arith.constant dense<0.000000e+00> : vector<64x128xf32>
    %127 = tpu.matmul %124, %126, %cst_172 {dimension_numbers = #tpu.dot_dimension_numbers<[1], [0], [0], [1], [0, 0, 1, 1], [], []>} : vector<64x128xbf16>, vector<128x128xbf16>, vector<64x128xf32> -> vector<64x128xf32>
    %c0_173 = arith.constant 0 : index
    %c0_174 = arith.constant 0 : index
    %128 = vector.load %arg9[%c0_173, %c0_174] : memref<64x128xf32, #tpu.memory_space<vmem>>, vector<64x128xf32>
    %129 = arith.addf %128, %127 : vector<64x128xf32>
    %c0_175 = arith.constant 0 : index
    %c0_176 = arith.constant 0 : index
    %130 = vector.load %arg9[%c0_175, %c0_176] : memref<64x128xf32, #tpu.memory_space<vmem>>, vector<64x128xf32>
    tpu.vector_store %arg9[%c0_175, %c0_176], %129 {strides = array<i32>} : memref<64x128xf32, #tpu.memory_space<vmem>>, vector<64x128xf32>,
    %c1_177 = arith.constant 1 : index
    %c1_178 = arith.constant 1 : index
    %c0_179 = arith.constant 0 : index
    %131 = vector.load %arg8[%c1_177, %c1_178, %c0_179] : memref<10x10x128xbf16, #tpu.memory_space<vmem>>, vector<8x8x128xbf16>
    %132 = vector.shape_cast %131 : vector<8x8x128xbf16> to vector<64x128xbf16>
    %c4_180 = arith.constant 4 : index
    %c0_181 = arith.constant 0 : index
    %c0_182 = arith.constant 0 : index
    %133 = vector.load %arg4[%c4_180, %c0_181, %c0_182] : memref<9x128x128xbf16, #tpu.memory_space<vmem>>, vector<1x128x128xbf16>
    %134 = vector.shape_cast %133 : vector<1x128x128xbf16> to vector<128x128xbf16>
    %cst_183 = arith.constant dense<0.000000e+00> : vector<64x128xf32>
    %135 = tpu.matmul %132, %134, %cst_183 {dimension_numbers = #tpu.dot_dimension_numbers<[1], [0], [0], [1], [0, 0, 1, 1], [], []>} : vector<64x128xbf16>, vector<128x128xbf16>, vector<64x128xf32> -> vector<64x128xf32>
    %c0_184 = arith.constant 0 : index
    %c0_185 = arith.constant 0 : index
    %136 = vector.load %arg9[%c0_184, %c0_185] : memref<64x128xf32, #tpu.memory_space<vmem>>, vector<64x128xf32>
    %137 = arith.addf %136, %135 : vector<64x128xf32>
    %c0_186 = arith.constant 0 : index
    %c0_187 = arith.constant 0 : index
    %138 = vector.load %arg9[%c0_186, %c0_187] : memref<64x128xf32, #tpu.memory_space<vmem>>, vector<64x128xf32>
    tpu.vector_store %arg9[%c0_186, %c0_187], %137 {strides = array<i32>} : memref<64x128xf32, #tpu.memory_space<vmem>>, vector<64x128xf32>,
    %c1_188 = arith.constant 1 : index
    %c2_189 = arith.constant 2 : index
    %c0_190 = arith.constant 0 : index
    %139 = vector.load %arg8[%c1_188, %c2_189, %c0_190] : memref<10x10x128xbf16, #tpu.memory_space<vmem>>, vector<8x8x128xbf16>
    %140 = vector.shape_cast %139 : vector<8x8x128xbf16> to vector<64x128xbf16>
    %c5_191 = arith.constant 5 : index
    %c0_192 = arith.constant 0 : index
    %c0_193 = arith.constant 0 : index
    %141 = vector.load %arg4[%c5_191, %c0_192, %c0_193] : memref<9x128x128xbf16, #tpu.memory_space<vmem>>, vector<1x128x128xbf16>
    %142 = vector.shape_cast %141 : vector<1x128x128xbf16> to vector<128x128xbf16>
    %cst_194 = arith.constant dense<0.000000e+00> : vector<64x128xf32>
    %143 = tpu.matmul %140, %142, %cst_194 {dimension_numbers = #tpu.dot_dimension_numbers<[1], [0], [0], [1], [0, 0, 1, 1], [], []>} : vector<64x128xbf16>, vector<128x128xbf16>, vector<64x128xf32> -> vector<64x128xf32>
    %c0_195 = arith.constant 0 : index
    %c0_196 = arith.constant 0 : index
    %144 = vector.load %arg9[%c0_195, %c0_196] : memref<64x128xf32, #tpu.memory_space<vmem>>, vector<64x128xf32>
    %145 = arith.addf %144, %143 : vector<64x128xf32>
    %c0_197 = arith.constant 0 : index
    %c0_198 = arith.constant 0 : index
    %146 = vector.load %arg9[%c0_197, %c0_198] : memref<64x128xf32, #tpu.memory_space<vmem>>, vector<64x128xf32>
    tpu.vector_store %arg9[%c0_197, %c0_198], %145 {strides = array<i32>} : memref<64x128xf32, #tpu.memory_space<vmem>>, vector<64x128xf32>,
    %c2_199 = arith.constant 2 : index
    %c0_200 = arith.constant 0 : index
    %c0_201 = arith.constant 0 : index
    %147 = vector.load %arg8[%c2_199, %c0_200, %c0_201] : memref<10x10x128xbf16, #tpu.memory_space<vmem>>, vector<8x8x128xbf16>
    %148 = vector.shape_cast %147 : vector<8x8x128xbf16> to vector<64x128xbf16>
    %c6_202 = arith.constant 6 : index
    %c0_203 = arith.constant 0 : index
    %c0_204 = arith.constant 0 : index
    %149 = vector.load %arg4[%c6_202, %c0_203, %c0_204] : memref<9x128x128xbf16, #tpu.memory_space<vmem>>, vector<1x128x128xbf16>
    %150 = vector.shape_cast %149 : vector<1x128x128xbf16> to vector<128x128xbf16>
    %cst_205 = arith.constant dense<0.000000e+00> : vector<64x128xf32>
    %151 = tpu.matmul %148, %150, %cst_205 {dimension_numbers = #tpu.dot_dimension_numbers<[1], [0], [0], [1], [0, 0, 1, 1], [], []>} : vector<64x128xbf16>, vector<128x128xbf16>, vector<64x128xf32> -> vector<64x128xf32>
    %c0_206 = arith.constant 0 : index
    %c0_207 = arith.constant 0 : index
    %152 = vector.load %arg9[%c0_206, %c0_207] : memref<64x128xf32, #tpu.memory_space<vmem>>, vector<64x128xf32>
    %153 = arith.addf %152, %151 : vector<64x128xf32>
    %c0_208 = arith.constant 0 : index
    %c0_209 = arith.constant 0 : index
    %154 = vector.load %arg9[%c0_208, %c0_209] : memref<64x128xf32, #tpu.memory_space<vmem>>, vector<64x128xf32>
    tpu.vector_store %arg9[%c0_208, %c0_209], %153 {strides = array<i32>} : memref<64x128xf32, #tpu.memory_space<vmem>>, vector<64x128xf32>,
    %c2_210 = arith.constant 2 : index
    %c1_211 = arith.constant 1 : index
    %c0_212 = arith.constant 0 : index
    %155 = vector.load %arg8[%c2_210, %c1_211, %c0_212] : memref<10x10x128xbf16, #tpu.memory_space<vmem>>, vector<8x8x128xbf16>
    %156 = vector.shape_cast %155 : vector<8x8x128xbf16> to vector<64x128xbf16>
    %c7_213 = arith.constant 7 : index
    %c0_214 = arith.constant 0 : index
    %c0_215 = arith.constant 0 : index
    %157 = vector.load %arg4[%c7_213, %c0_214, %c0_215] : memref<9x128x128xbf16, #tpu.memory_space<vmem>>, vector<1x128x128xbf16>
    %158 = vector.shape_cast %157 : vector<1x128x128xbf16> to vector<128x128xbf16>
    %cst_216 = arith.constant dense<0.000000e+00> : vector<64x128xf32>
    %159 = tpu.matmul %156, %158, %cst_216 {dimension_numbers = #tpu.dot_dimension_numbers<[1], [0], [0], [1], [0, 0, 1, 1], [], []>} : vector<64x128xbf16>, vector<128x128xbf16>, vector<64x128xf32> -> vector<64x128xf32>
    %c0_217 = arith.constant 0 : index
    %c0_218 = arith.constant 0 : index
    %160 = vector.load %arg9[%c0_217, %c0_218] : memref<64x128xf32, #tpu.memory_space<vmem>>, vector<64x128xf32>
    %161 = arith.addf %160, %159 : vector<64x128xf32>
    %c0_219 = arith.constant 0 : index
    %c0_220 = arith.constant 0 : index
    %162 = vector.load %arg9[%c0_219, %c0_220] : memref<64x128xf32, #tpu.memory_space<vmem>>, vector<64x128xf32>
    tpu.vector_store %arg9[%c0_219, %c0_220], %161 {strides = array<i32>} : memref<64x128xf32, #tpu.memory_space<vmem>>, vector<64x128xf32>,
    %c2_221 = arith.constant 2 : index
    %c2_222 = arith.constant 2 : index
    %c0_223 = arith.constant 0 : index
    %163 = vector.load %arg8[%c2_221, %c2_222, %c0_223] : memref<10x10x128xbf16, #tpu.memory_space<vmem>>, vector<8x8x128xbf16>
    %164 = vector.shape_cast %163 : vector<8x8x128xbf16> to vector<64x128xbf16>
    %c8_224 = arith.constant 8 : index
    %c0_225 = arith.constant 0 : index
    %c0_226 = arith.constant 0 : index
    %165 = vector.load %arg4[%c8_224, %c0_225, %c0_226] : memref<9x128x128xbf16, #tpu.memory_space<vmem>>, vector<1x128x128xbf16>
    %166 = vector.shape_cast %165 : vector<1x128x128xbf16> to vector<128x128xbf16>
    %cst_227 = arith.constant dense<0.000000e+00> : vector<64x128xf32>
    %167 = tpu.matmul %164, %166, %cst_227 {dimension_numbers = #tpu.dot_dimension_numbers<[1], [0], [0], [1], [0, 0, 1, 1], [], []>} : vector<64x128xbf16>, vector<128x128xbf16>, vector<64x128xf32> -> vector<64x128xf32>
    %c0_228 = arith.constant 0 : index
    %c0_229 = arith.constant 0 : index
    %168 = vector.load %arg9[%c0_228, %c0_229] : memref<64x128xf32, #tpu.memory_space<vmem>>, vector<64x128xf32>
    %169 = arith.addf %168, %167 : vector<64x128xf32>
    %c0_230 = arith.constant 0 : index
    %c0_231 = arith.constant 0 : index
    %170 = vector.load %arg9[%c0_230, %c0_231] : memref<64x128xf32, #tpu.memory_space<vmem>>, vector<64x128xf32>
    tpu.vector_store %arg9[%c0_230, %c0_231], %169 {strides = array<i32>} : memref<64x128xf32, #tpu.memory_space<vmem>>, vector<64x128xf32>,
    %c0_232 = arith.constant 0 : index
    %c0_233 = arith.constant 0 : index
    %171 = vector.load %arg9[%c0_232, %c0_233] : memref<64x128xf32, #tpu.memory_space<vmem>>, vector<64x128xf32>
    %c0_234 = arith.constant 0 : index
    %c0_235 = arith.constant 0 : index
    %172 = vector.load %arg5[%c0_234, %c0_235] : memref<1x128xf32, #tpu.memory_space<vmem>>, vector<1x128xf32>
    %173 = vector.broadcast %172 : vector<1x128xf32> to vector<64x128xf32>
    %174 = arith.addf %171, %173 : vector<64x128xf32>
    %cst_236 = arith.constant 0.000000e+00 : f32
    %175 = vector.broadcast %cst_236 : f32 to vector<64x128xf32>
    %176 = arith.maximumf %174, %175 : vector<64x128xf32>
    %177 = arith.truncf %176 : vector<64x128xf32> to vector<64x128xbf16>
    %c0_237 = arith.constant 0 : index
    %c0_238 = arith.constant 0 : index
    %c0_239 = arith.constant 0 : index
    %178 = vector.load %arg6[%c0_237, %c0_238, %c0_239] : memref<1x64x128xbf16, #tpu.memory_space<vmem>>, vector<1x64x128xbf16>
    %179 = vector.shape_cast %178 : vector<1x64x128xbf16> to vector<64x128xbf16>
    %180 = vector.shape_cast %177 : vector<64x128xbf16> to vector<1x64x128xbf16>
    tpu.vector_store %arg6[%c0_237, %c0_238, %c0_239], %180 {strides = array<i32>} : memref<1x64x128xbf16, #tpu.memory_space<vmem>>, vector<1x64x128xbf16>,
    return
  }
  func.func @transform_0(%arg0: i32) -> (i32, i32, i32, i32, i32) {
    %c0_i32 = arith.constant 0 : i32
    %c0_i32_0 = arith.constant 0 : i32
    %c0_i32_1 = arith.constant 0 : i32
    %c0_i32_2 = arith.constant 0 : i32
    %c0_i32_3 = arith.constant 0 : i32
    return %arg0, %c0_i32, %c0_i32_0, %c0_i32_1, %c0_i32_2 : i32, i32, i32, i32, i32
  }
  func.func @transform_1(%arg0: i32) -> (i32, i32, i32) {
    %c0_i32 = arith.constant 0 : i32
    %c0_i32_0 = arith.constant 0 : i32
    %c0_i32_1 = arith.constant 0 : i32
    %c0_i32_2 = arith.constant 0 : i32
    return %c0_i32, %c0_i32_0, %c0_i32_1 : i32, i32, i32
  }
  func.func @transform_2(%arg0: i32) -> (i32, i32) {
    %c0_i32 = arith.constant 0 : i32
    %c0_i32_0 = arith.constant 0 : i32
    %c0_i32_1 = arith.constant 0 : i32
    return %c0_i32, %c0_i32_0 : i32, i32
  }
  func.func @transform_3(%arg0: i32) -> (i32, i32, i32) {
    %c0_i32 = arith.constant 0 : i32
    %c0_i32_0 = arith.constant 0 : i32
    %c0_i32_1 = arith.constant 0 : i32
    %c0_i32_2 = arith.constant 0 : i32
    return %c0_i32, %c0_i32_0, %c0_i32_1 : i32, i32, i32
  }
  func.func @transform_4(%arg0: i32) -> (i32, i32) {
    %c0_i32 = arith.constant 0 : i32
    %c0_i32_0 = arith.constant 0 : i32
    %c0_i32_1 = arith.constant 0 : i32
    return %c0_i32, %c0_i32_0 : i32, i32
  }
  func.func @transform_5(%arg0: i32) -> (i32, i32, i32) {
    %c0_i32 = arith.constant 0 : i32
    %c0_i32_0 = arith.constant 0 : i32
    %c0_i32_1 = arith.constant 0 : i32
    return %arg0, %c0_i32, %c0_i32_0 : i32, i32, i32
  }
}

</mosaic_0001>

<bundles_post_ra>
// kernel: tpu_custom_call.1
= control target key start
LH: loop header
LB: loop body
LE: loop exit
PB: predicated region body
PF: predicated region fallthrough
CT: control target
= control target key end

     0   :  { %10 = vsyncpa [#allocation6], 0  ;;  %s7019_s0 = inlined_call_operand.hbm [shape: f32[2,8,2,8,8], index: 0, kind: input, shape index: {}]   ;;  %s7020_s1 = inlined_call_operand.hbm [shape: bf16[9,4,128], index: 1, kind: input, shape index: {}]   ;;  %s7021_s2 = inlined_call_operand.vmem [shape: f32[1,128], index: 2, kind: input, shape index: {}]   ;;  %s7022_s3 = inlined_call_operand.hbm [shape: bf16[9,128,128], index: 3, kind: input, shape index: {}]   ;;  %s7023_s4 = inlined_call_operand.vmem [shape: f32[1,128], index: 4, kind: input, shape index: {}]   ;;  %s7024_s5 = inlined_call_operand.hbm [shape: bf16[2,64,128], index: 5, kind: output, shape index: {}]  }
   0x1   :  { %12 = vsyncpa [#allocation6 + $0x1], 0 }
   0x2   :  { %13 = vsyncpa [#allocation9], 0 }
   0x3   :  { %14 = vsyncpa [#allocation7], 0 }
   0x4   :  { %16 = vsyncpa [#allocation7 + $0x1], 0  ;;  %s6151_s18 = smov 0   ;;  %s6153_s19 = smov 0  }
   0x5   :  { %s6155_s20 = smov 0   ;;  %s6157_s21 = smov 0  }
   0x6 LB: > { %s6172_s22 = sadd.s32 4294967295, %s6105_s21   ;;  %s4820_s23 = sadd.s32 4294967294, %s6105_s21   ;;  %s6105_s21 = sphi %s6157_s21, %s7060_s21   ;;  %s6101_s20 = sphi %s6155_s20, %s7059_s20   ;;  %s6097_s19 = sphi %s6153_s19, %s7058_s19   ;;  %s6093_s18 = sphi %s6151_s18, %s7057_s18  }
   0x7   : > { %p42_p0 = scmp.ne.s32.totalorder %s6097_s19, %s6093_s18  ;;  %p7025_p1 = scmp.eq.s32.totalorder %s6172_s22, 0 }
   0x8   : > { %p156_p3 = scmp.eq.s32.totalorder %s4820_s23, 1  ;;  %p4821_p5 = scmp.ge.s32.totalorder %s6105_s21, 1 }
   0x9   : > { %p6181_p4 = por %p7025_p1, %p42_p0  ;;  %p163_p7 = scmp.lt.s32.totalorder %s6105_s21, 3 }
   0xa   : > { %p6186_p6 = por %p156_p3, %p42_p0  ;;  %s6107_s27 = smov [#allocation8]  }
   0xb   : > { %s7028_s24 = scalar_select %p6181_p4, 1, 0 }
   0xc   : > { %s7029_s25 = scalar_select %p6186_p6, 1, 0 }
   0xd   : > { %p6191_p8 = pnand %p4821_p5, %p163_p7  ;;  %s175_s28 = sshll.u32 %s6107_s27, 4  ;;  %s6195_s28 = int_to_ptr.vmem [resolvable:$true] %s175_s28 }
   0xe   : > { %s6108_s30 = smov [#allocation10]   ;;  %s5949_s9 = scalar_lea.hbm %s7020_s1, 288 }
   0xf   : > { %p5773_p9 = pneg %p6191_p8  ;;  %s191_s6 = sshll.u32 %s6108_s30, 4  ;;  %s6206_s6 = int_to_ptr.vmem [resolvable:$true] %s191_s6 }
  0x10   : > { %p5950_p12 = scmp.ne.s32.totalorder %s7020_s1, %s5949_s9  ;;  %p5956_p5 = scmp.lt.u32.totalorder %s5949_s9, %s7020_s1 }
  0x11   : > { %p6202_p11 = pnand %p5773_p9, %p7025_p1 }
  0x13   : > { %p5951_p13 = pneg %p6202_p11 }
  0x15   : > { %p5952_p0 = pnand %p5951_p13, %p5950_p12 }
  0x17   : > { %p5953_p3 = pneg %p5952_p0 }
  0x19   : > { %p5958_p7 = pnand %p5956_p5, %p5953_p3 }
  0x1b   : > { %5961 = shalt.err (!%p5958_p7)
}
  0x1c   : > { %s5962_s14 = scalar_lea.vmem %s6195_s28, 288  ;;  %p5970_p2 = scmp.lt.s32.totalorder %s6195_s28, %s6195_s28 }
  0x1d   : > { %p5963_p9 = scmp.ne.s32.totalorder %s6195_s28, %s5962_s14  ;;  %p5971_p12 = scmp.lt.s32.totalorder %s5962_s14, %s5962_s14 }
  0x1f   : > { %p5965_p10 = pnand %p5963_p9, %p5951_p13  ;;  %p5972_p0 = por %p5971_p12, %p5970_p2 }
  0x21   : > { %p5966_p1 = pneg %p5965_p10 }
  0x23   : > { %p5973_p6 = pnand %p5972_p0, %p5966_p1 }
  0x25   : > { %5976 = shalt.err (!%p5973_p6)
}
  0x26   : > { %s6109_s15 = smov 32   ;;  %s6110_s16 = smov 2  }
  0x27   : > { %5776 = dma.hbm_to_vmem [thread:$0]  (!%p6202_p11), %s7020_s1, 288, %s6195_s28, [#allocation9], %s6109_s15, %s6109_s15, %s6110_s16  }
  0x28   : > { %s5977_s7 = scalar_lea.hbm %s7022_s3, 9216 }
  0x29   : > { %p5978_p2 = scmp.ne.s32.totalorder %s7022_s3, %s5977_s7  ;;  %p5984_p10 = scmp.lt.u32.totalorder %s5977_s7, %s7022_s3 }
  0x2b   : > { %p5980_p1 = pnand %p5978_p2, %p5951_p13 }
  0x2d   : > { %p5981_p6 = pneg %p5980_p1 }
  0x2f   : > { %p5986_p3 = pnand %p5984_p10, %p5981_p6 }
  0x31   : > { %5989 = shalt.err (!%p5986_p3)
}
  0x32   : > { %s5990_s28 = scalar_lea.vmem %s6206_s6, 9216  ;;  %p5998_p12 = scmp.lt.s32.totalorder %s6206_s6, %s6206_s6 }
  0x33   : > { %p5991_p5 = scmp.ne.s32.totalorder %s6206_s6, %s5990_s28  ;;  %p5999_p0 = scmp.lt.s32.totalorder %s5990_s28, %s5990_s28 }
  0x35   : > { %p5993_p7 = pnand %p5991_p5, %p5951_p13  ;;  %p6000_p2 = por %p5999_p0, %p5998_p12 }
  0x37   : > { %p5994_p9 = pneg %p5993_p7 }
  0x39   : > { %p6001_p1 = pnand %p6000_p2, %p5994_p9 }
  0x3b   : > { %6004 = shalt.err (!%p6001_p1)
}
  0x3c   : > { %s6111_s12 = smov 64   ;;  %s6112_s13 = smov 4  }
  0x3d   : > { %5779 = dma.hbm_to_vmem [thread:$0]  (!%p6202_p11), %s7022_s3, 9216, %s6206_s6, [#allocation9], %s6111_s12, %s6111_s12, %s6112_s13  }
  0x3e   : > { %s6261_s16 = sadd.s32 1, %s6105_s21   ;;  %s29_s23 = sadd.s32 1, %s6101_s20 }
  0x3f   : > { %s26_s17 = ssub.s32 %s6105_s21, %s6261_s16  ;;  %p36_p6 = scmp.ne.s32.totalorder %s6101_s20, %s6097_s19 }
  0x40   : > { %p27_p13 = scmp.eq.s32.totalorder %s26_s17, 0  ;;  %p37_p10 = scmp.eq.s32.totalorder %s6105_s21, 0 }
  0x41   : > { %p7032_p5 = scmp.eq.s32.totalorder %s6172_s22, 1  ;;  %p5790_p9 = scmp.lt.s32.totalorder %s6105_s21, 2 }
  0x42   : > { %s6270_s27 = scalar_select %p27_p13, %s6101_s20, %s29_s23  }
  0x43   : > { %p38_p3 = por %p37_p10, %p36_p6  ;;  %p6274_p7 = por %p7032_p5, %p36_p6 }
  0x44   : > { %s208_s29 = sand.u32 1, %s6101_s20   ;;  %s5100_s6 = sshll.u32 %s6105_s21, 11 }
  0x45   : > { %s7033_s30 = scalar_select %p6274_p7, 1, 0 }
  0x46   : > { %s4825_s7 = sshll.u32 %s208_s29, 7  ;;  %s6284_s10 = scalar_lea.hbm %s7019_s0, %s5100_s6 }
  0x47   : > { %s212_s11 = scalar_lea.vmem [#allocation5], %s4825_s7  ;;  %p6288_p11 = pnand %p5790_p9, %p38_p3 }
  0x48   : > { %s219_s28 = sshll.u32 %s212_s11, 4  ;;  %s6292_s13 = scalar_lea.sflag [#allocation6], %s208_s29  ;;  %s6286_s28 = int_to_ptr.vmem [resolvable:$true] %s219_s28 }
  0x49   : > { %s6005_s14 = scalar_lea.hbm %s6284_s10, 2048  ;;  %p6007_p0 = pneg %p6288_p11 }
  0x4a   : > { %p6006_p12 = scmp.ne.s32.totalorder %s6284_s10, %s6005_s14  ;;  %s6010_s23 = scalar_lea.hbm %s7019_s0, 4096 }
  0x4b   : > { %p6011_p13 = scmp.lt.u32.totalorder %s6284_s10, %s7019_s0  ;;  %p6012_p6 = scmp.lt.u32.totalorder %s6010_s23, %s6005_s14 }
  0x4c   : > { %p6008_p2 = pnand %p6007_p0, %p6006_p12  ;;  %p6014_p3 = scmp.lt.u32.totalorder %s6005_s14, %s6284_s10 }
  0x4d   : > { %p6013_p10 = por %p6012_p6, %p6011_p13 }
  0x4e   : > { %p6009_p1 = pneg %p6008_p2 }
  0x4f   : > { %p6015_p5 = por %p6014_p3, %p6013_p10 }
  0x51   : > { %p6016_p9 = pnand %p6015_p5, %p6009_p1 }
  0x53   : > { %6019 = shalt.err (!%p6016_p9)
}
  0x54   : > { %s6020_s29 = scalar_lea.vmem %s6286_s28, 2048  ;;  %s6113_s8 = smov [#allocation5]  }
  0x55   : > { %p6021_p12 = scmp.ne.s32.totalorder %s6286_s28, %s6020_s29  ;;  %s6025_s9 = sshll.u32 %s6113_s8, 4  ;;  %s6026_s9 = int_to_ptr.vmem [resolvable:$false] %s6025_s9 }
  0x56   : > { %s6027_s11 = scalar_lea.vmem %s6026_s9, 4096  ;;  %p6028_p4 = scmp.lt.s32.totalorder %s6286_s28, %s6026_s9 }
  0x57   : > { %p6023_p2 = pnand %p6021_p12, %p6007_p0  ;;  %p6029_p13 = scmp.lt.s32.totalorder %s6027_s11, %s6020_s29 }
  0x59   : > { %p6024_p7 = pneg %p6023_p2  ;;  %p6030_p6 = por %p6029_p13, %p6028_p4 }
  0x5b   : > { %p6031_p10 = pnand %p6030_p6, %p6024_p7 }
  0x5d   : > { %6034 = shalt.err (!%p6031_p10)
}
  0x5e   : > { %s6114_s14 = smov 128   ;;  %s6115_s15 = smov 8  }
  0x5f   : > { %5783 = dma.hbm_to_vmem [thread:$0]  (!%p6288_p11), %s6284_s10, 2048, %s6286_s28, %s6292_s13, %s6114_s14, %s6114_s14, %s6115_s15  }
  0x60   : > { %231 = sbr.rel (%p6191_p8) target bundleno = 1063 (0x427), region = 40  ;;  %s6323_s17 = sand.u32 (!%p6191_p8), 1, %s6097_s19  }
  0x61   : > { %s4829_s23 = sshll.u32 (!%p6191_p8), %s6323_s17, 7  ;;  %s234_s7 = scalar_lea.sflag (!%p6191_p8), [#allocation6], %s6323_s17 }
  0x62   : > { %s6327_s6 = scalar_lea.vmem (!%p6191_p8), [#allocation5], %s4829_s23  ;;  %p7035_p4 = scmp.ne.s32.totalorder (!%p6191_p8), %s7028_s24, 0 }
  0x67   : > { %6080 = dma.done.wait (%p7035_p4), %s234_s7, 2048  }
  0x68   : > { %6082 = vsyncadd (%p7035_p4), %s234_s7, 4294965248  ;;  %p7036_p7 = scmp.eq.s32.totalorder %s6172_s22, 0 }
  0x6a   : > { %6084 = dma.done.wait (%p7036_p7), [#allocation9], 9504   ;;  %p7037_p8 = pmov %p7036_p7 }
  0x6b   : > { %vm338_vm0 = vcmask 27648   ;;  %vm340_vm1 = vcmask 24576   ;;  %v6116_v0 = vmov 0   ;;  %v276_v1 = vld [vmem:[%s6327_s6 + $0x30] sm:$0xff]  ;;  %v277_v2 = vld [vmem:[%s6327_s6 + $0x40] sm:$0xff]  ;;  %v4836_v3 = vld [vmem:[%s6327_s6 + $0x38] sm:$0xff] }
  0x6c   : > { %6086 = vsyncadd (%p7037_p8), [#allocation9], 4294957792  ;;  %339 = vst.msk [vmem:[#allocation2] sm:$0xf] %vm338_vm0, %v6116_v0  ;;  %v4837_v4 = vld [vmem:[%s6327_s6 + $0x48] sm:$0xff]  ;;  %v6345_v5 = vmax.f32 %v276_v1, %v4836_v3  ;;  %v273_v6 = vld [vmem:[%s6327_s6] sm:$0xff] }
  0x6d   : > { %341 = vst.msk [vmem:[#allocation2 + $0x4] sm:$0x1] %vm340_vm1, %v6116_v0  ;;  %344 = vst.msk [vmem:[#allocation2 + $0x4c] sm:$0x1] %vm340_vm1, %v6116_v0  ;;  %v274_v7 = vld [vmem:[%s6327_s6 + $0x10] sm:$0xff]  ;;  %v6349_v8 = vmax.f32 %v277_v2, %v4837_v4  ;;  %v4833_v9 = vld [vmem:[%s6327_s6 + $0x8] sm:$0xff] }
  0x6e   : > { %343 = vst.msk [vmem:[#allocation2 + $0x48] sm:$0xf] %vm338_vm0, %v6116_v0  ;;  %573 = vst [vmem:[#allocation3] sm:$0xf] %v6116_v0  ;;  %v4834_v10 = vld [vmem:[%s6327_s6 + $0x18] sm:$0xff]  ;;  %v278_v11 = vld [vmem:[%s6327_s6 + $0x50] sm:$0xff]  ;;  %v6354_v12 = vmax.f32 %v273_v6, %v4833_v9 }
  0x6f   : > { %574 = vst [vmem:[#allocation3 + $0x4] sm:$0x1] %v6116_v0  ;;  %576 = vst [vmem:[#allocation3 + $0x48] sm:$0xf] %v6116_v0  ;;  %vm346_vm2 = vsmask.f32 256  ;;  %v6356_v13 = vmax.f32 %v274_v7, %v4834_v10  ;;  %v5843_v17 = vpack.i.bf16 %v6349_v8, %v6345_v5 }
  0x70   : > { %577 = vst [vmem:[#allocation3 + $0x4c] sm:$0x1] %v6116_v0  ;;  %v279_v14 = vld [vmem:[%s6327_s6 + $0x60] sm:$0xff]  ;;  %v4838_v15 = vld [vmem:[%s6327_s6 + $0x58] sm:$0xff]  ;;  %v4839_v16 = vld [vmem:[%s6327_s6 + $0x68] sm:$0xff]  ;;  %s6117_s24 = smov 124  }
  0x71   : > { %vm378_vm3 = vsmask.f32 7938  ;;  %v6363_v18 = vmax.f32 %v278_v11, %v4838_v15  ;;  %v6365_v19 = vmax.f32 %v279_v14, %v4839_v16  ;;  %v275_v20 = vld [vmem:[%s6327_s6 + $0x20] sm:$0xff]  ;;  %v4835_v21 = vld [vmem:[%s6327_s6 + $0x28] sm:$0xff]  ;;  %v5838_v22 = vpack.i.bf16 %v6356_v13, %v6354_v12  ;;  %vm6373_vm4 = vmand %vm340_vm1, %vm346_vm2  ;;  %5844 = vrot.lane.b32.xlu1 %v5843_v17, %s6117_s24  ;;  %s4832_s13 = sshll.u32 %s6323_s17, 5  ;;  %s5125_s9 = sshll.u32 %s6172_s22, 9 }
  0x72   : > { %v360_v24 = vld [vmem:[#allocation2 + $0x20] sm:$0x1]  ;;  %v363_v25 = vld [vmem:[#allocation2 + $0x28] sm:$0x1]  ;;  %v280_v27 = vld [vmem:[%s6327_s6 + $0x70] sm:$0xff]  ;;  %v6393_v34 = vmax.f32 %v275_v20, %v4835_v21  ;;  %vm683_vm6 = vcmask 1041408   ;;  %s6975_s15 = scalar_lea.hbm %s7024_s5, %s5125_s9 }
  0x73   : > { %v5848_v26 = vpack.i.bf16 %v6365_v19, %v6363_v18  ;;  %v4840_v28 = vld [vmem:[%s6327_s6 + $0x78] sm:$0xff]  ;;  %v361_v29 = vsel %vm6373_vm4, 0, %v360_v24  ;;  %v364_v30 = vsel %vm6373_vm4, 0, %v363_v25  ;;  %vm6388_vm5 = vmand %vm340_vm1, %vm378_vm3  ;;  %v392_v33 = vld [vmem:[#allocation2 + $0x24] sm:$0x1]  ;;  %5839 = vrot.lane.b32.xlu0 %v5838_v22, %s6117_s24  ;;  %vm670_vm8 = vcmask 31744  }
  0x74   : > { %362 = vst [vmem:[#allocation2 + $0x20] sm:$0x1] %v361_v29  ;;  %365 = vst [vmem:[#allocation2 + $0x28] sm:$0x1] %v364_v30  ;;  %v393_v36 = vsel %vm6388_vm5, 0, %v392_v33  ;;  %v6414_v51 = vmax.f32 %v280_v27, %v4840_v28  ;;  %vm1041_vm12 = vcmask 1042432  }
  0x75   : > { %v375_v31 = vld [vmem:[#allocation2 + $0x48] sm:$0x1]  ;;  %v395_v37 = vld [vmem:[#allocation2 + $0x2c] sm:$0x1]  ;;  %394 = vst [vmem:[#allocation2 + $0x24] sm:$0x1] %v393_v36  ;;  %5849 = vrot.lane.b32.xlu1 %v5848_v26, %s6117_s24  ;;  %vm6458_vm7 = vmand %vm338_vm0, %vm378_vm3 }
  0x76   : > { %v376_v35 = vsel %vm6373_vm4, 0, %v375_v31  ;;  %v351_v38 = vld [vmem:[#allocation2 + $0x8] sm:$0x1]  ;;  %v396_v39 = vsel %vm6388_vm5, 0, %v395_v37  ;;  %v354_v41 = vld [vmem:[#allocation2 + $0x10] sm:$0x1] }
  0x77   : > { %377 = vst [vmem:[#allocation2 + $0x48] sm:$0x1] %v376_v35  ;;  %v352_v40 = vsel %vm6373_vm4, 0, %v351_v38  ;;  %v383_v42 = vld [vmem:[#allocation2 + $0xc] sm:$0x1]  ;;  %v355_v43 = vsel %vm6373_vm4, 0, %v354_v41  ;;  %310 = vrot.lane.b32.xlu0 %v6393_v34, %s6117_s24 }
  0x78   : > { %397 = vst [vmem:[#allocation2 + $0x2c] sm:$0x1] %v396_v39  ;;  %353 = vst [vmem:[#allocation2 + $0x8] sm:$0x1] %v352_v40  ;;  %v384_v44 = vsel %vm6388_vm5, 0, %v383_v42  ;;  %vm1042_vm13 = vcmask 1046532  }
  0x79   : > { %v386_v45 = vld [vmem:[#allocation2 + $0x14] sm:$0x1]  ;;  %v366_v46 = vld [vmem:[#allocation2 + $0x30] sm:$0x1]  ;;  %356 = vst [vmem:[#allocation2 + $0x10] sm:$0x1] %v355_v43  ;;  %vm6541_vm14 = vmor %vm1041_vm12, %vm1042_vm13 }
  0x7a   : > { %385 = vst [vmem:[#allocation2 + $0xc] sm:$0x1] %v384_v44  ;;  %v387_v47 = vsel %vm6388_vm5, 0, %v386_v45  ;;  %v367_v48 = vsel %vm6373_vm4, 0, %v366_v46  ;;  %v369_v49 = vld [vmem:[#allocation2 + $0x38] sm:$0x1] }
  0x7b   : > { %v398_v50 = vld [vmem:[#allocation2 + $0x34] sm:$0x1]  ;;  %388 = vst [vmem:[#allocation2 + $0x14] sm:$0x1] %v387_v47  ;;  %368 = vst [vmem:[#allocation2 + $0x30] sm:$0x1] %v367_v48  ;;  %320 = vrot.lane.b32.xlu0 %v6414_v51, %s6117_s24 }
  0x7c   : > { %v370_v52 = vsel %vm6373_vm4, 0, %v369_v49  ;;  %v399_v53 = vsel %vm6388_vm5, 0, %v398_v50  ;;  %v401_v54 = vld [vmem:[#allocation2 + $0x3c] sm:$0x1]  ;;  %v357_v55 = vld [vmem:[#allocation2 + $0x18] sm:$0x1] }
  0x7d   : > { %371 = vst [vmem:[#allocation2 + $0x38] sm:$0x1] %v370_v52  ;;  %400 = vst [vmem:[#allocation2 + $0x34] sm:$0x1] %v399_v53  ;;  %v402_v56 = vsel %vm6388_vm5, 0, %v401_v54  ;;  %v358_v57 = vsel %vm6373_vm4, 0, %v357_v55 }
  0x7e   : > { %v389_v58 = vld [vmem:[#allocation2 + $0x1c] sm:$0x1]  ;;  %v372_v59 = vld [vmem:[#allocation2 + $0x40] sm:$0x1]  ;;  %403 = vst [vmem:[#allocation2 + $0x3c] sm:$0x1] %v402_v56 }
  0x7f   : > { %359 = vst [vmem:[#allocation2 + $0x18] sm:$0x1] %v358_v57  ;;  %v390_v60 = vsel %vm6388_vm5, 0, %v389_v58  ;;  %v373_v61 = vsel %vm6373_vm4, 0, %v372_v59  ;;  %v404_v62 = vld [vmem:[#allocation2 + $0x44] sm:$0x1] }
  0x80   : > { %v348_v63 = vld [vmem:[#allocation2] sm:$0x1]  ;;  %391 = vst [vmem:[#allocation2 + $0x1c] sm:$0x1] %v390_v60  ;;  %374 = vst [vmem:[#allocation2 + $0x40] sm:$0x1] %v373_v61 }
  0x81   : > { %v405_v0 = vsel %vm6388_vm5, 0, %v404_v62  ;;  %v349_v1 = vsel %vm6373_vm4, 0, %v348_v63  ;;  %v380_v2 = vld [vmem:[#allocation2 + $0x4] sm:$0x1]  ;;  %v649_v4 = vld [vmem:[#allocation8] sm:$0x3] }
  0x82   : > { %406 = vst [vmem:[#allocation2 + $0x44] sm:$0x1] %v405_v0  ;;  %350 = vst [vmem:[#allocation2] sm:$0x1] %v349_v1  ;;  %v381_v3 = vsel %vm6388_vm5, 0, %v380_v2  ;;  %5752 = vmatprep.subr.msk.bf16.mxu0 %vm683_vm6, %v649_v4  ;;  %v685_v6 = vsel %vm683_vm6, %v649_v4, 0 }
  0x83   : > { %382 = vst [vmem:[#allocation2 + $0x4] sm:$0x1] %v381_v3  ;;  %5303 = vmatpush3.bf16.msra.mxu0 %v685_v6  ;;  %v6438_v7 = vld [vmem:[#allocation8 + $0x2] sm:$0x3]  ;;  %v407_v28 = vld [vmem:[#allocation2 + $0x4c] sm:$0x1] }
  0x84   : > { %5753 = vmatprep.subr.msk.bf16.mxu0 %vm683_vm6, %v6438_v7  ;;  %v543_v40 = vld [vmem:[#allocation2 + $0x20] sm:$0xf]  ;;  %v549_v41 = vld [vmem:[#allocation2 + $0x28] sm:$0xf]  ;;  %v546_v46 = vld [vmem:[#allocation2 + $0x24] sm:$0x1] }
  0x85   : > { %v552_v47 = vld [vmem:[#allocation2 + $0x2c] sm:$0x1]  ;;  %v525_v52 = vld [vmem:[#allocation2 + $0x8] sm:$0xf]  ;;  %v531_v62 = vld [vmem:[#allocation2 + $0x10] sm:$0xf] }
  0x86   : > { %v528_v53 = vld [vmem:[#allocation2 + $0xc] sm:$0x1]  ;;  %vm776_vm9 = vsmask.f32 3328  ;;  %vm777_vm10 = vsmask.f32 7440 }
  0x87   : > { %vm6513_vm11 = vmor %vm776_vm9, %vm777_vm10  ;;  %vm578_vm15 = vcmask 1040384   ;;  %s271_s29 = scalar_lea.vmem [#allocation11], %s4832_s13  ;;  %s4715_s23 = scalar_lea.sflag [#allocation7], %s6323_s17 }
  0x88   : > { %vm6600_vm0 = vmand %vm578_vm15, %vm346_vm2  ;;  %vm2455_vm2 = vcmask 1043456   ;;  %s4728_s8 = sshll.u32 %s271_s29, 4  ;;  %p7054_p0 = scmp.ne.s32.totalorder %s7033_s30, 0  ;;  %s6970_s8 = int_to_ptr.vmem [resolvable:$true] %s4728_s8 }
  0x89   : > { %v6442_v15 = vld [vmem:[#allocation2] sm:$0xf]  ;;  %vm6607_vm1 = vmand %vm578_vm15, %vm378_vm3  ;;  %s6035_s22 = scalar_lea.vmem %s6970_s8, 512  ;;  %s6118_s7 = smov [#allocation11]  }
  0x8a   : > { %v780_v26 = vshrl.u32 %v6442_v15, 16  ;;  %v783_v27 = vshll.u32 %v6442_v15, 16  ;;  %p6036_p11 = scmp.ne.s32.totalorder %s6970_s8, %s6035_s22  ;;  %s6039_s6 = sshll.u32 %s6118_s7, 4  ;;  %s6040_s6 = int_to_ptr.vmem [resolvable:$false] %s6039_s6 }
  0x8b   : > { %s6041_s24 = scalar_lea.vmem %s6040_s6, 1024  ;;  %p6042_p5 = scmp.lt.s32.totalorder %s6970_s8, %s6040_s6 }
  0x8c   : > { %p6037_p1 = pnand %p6036_p11, %p7054_p0  ;;  %p6043_p9 = scmp.lt.s32.totalorder %s6041_s24, %s6035_s22 }
  0x8e   : > { %p6038_p3 = pneg %p6037_p1  ;;  %p6044_p12 = por %p6043_p9, %p6042_p5 }
  0x90   : > { %p6045_p2 = pnand %p6044_p12, %p6038_p3 }
  0xe3   : > { %v5845_v9 = vpop.permute.xlu1 %5844 }
  0xe4   : > { %v5847_v10 = vunpack.i.h.bf16 %v5845_v9  ;;  %v5846_v11 = vunpack.i.l.bf16 %v5845_v9 }
  0xe5   : > { %v5840_v14 = vpop.permute.xlu0 %5839 }
  0xe6   : > { %v5842_v16 = vunpack.i.h.bf16 %v5840_v14  ;;  %v5841_v17 = vunpack.i.l.bf16 %v5840_v14  ;;  %v334_v20 = vmax.f32 %v6349_v8, %v5847_v10  ;;  %v333_v21 = vmax.f32 %v6345_v5, %v5846_v11 }
  0xe7   : > { %v5850_v25 = vpop.permute.xlu1 %5849  ;;  %v408_v5 = vsel %vm6388_vm5, 0, %v407_v28 }
  0xe8   : > { %v331_v22 = vmax.f32 %v6356_v13, %v5842_v16  ;;  %v330_v24 = vmax.f32 %v6354_v12, %v5841_v17  ;;  %v5105_v29 = vpack.c.bf16 %v334_v20, %v334_v20  ;;  %v5104_v30 = vpack.c.bf16 %v333_v21, %v333_v21  ;;  %409 = vst [vmem:[#allocation2 + $0x4c] sm:$0x1] %v408_v5 }
  0xe9   : > { %v5852_v31 = vunpack.i.h.bf16 %v5850_v25  ;;  %v5851_v33 = vunpack.i.l.bf16 %v5850_v25  ;;  %v311_v35 = vpop.permute.xlu0 %310  ;;  %v6486_v25 = vrot.slane %v783_v27, 5 }
  0xea   : > { %v5102_v36 = vpack.c.bf16 %v331_v22, %v331_v22  ;;  %v5101_v37 = vpack.c.bf16 %v330_v24, %v330_v24  ;;  %v332_v8 = vmax.f32 %v6393_v34, %v311_v35  ;;  %v475_v13 = vshrl.u32 %v5105_v29, 16  ;;  %v6478_v22 = vld [vmem:[#allocation2 + $0x4] sm:$0x1]  ;;  %v558_v35 = vld [vmem:[#allocation2 + $0x34] sm:$0x1] }
  0xeb   : > { %v478_v12 = vshll.u32 %v5105_v29, 16  ;;  %v467_v38 = vshrl.u32 %v5104_v30, 16  ;;  %v470_v39 = vshll.u32 %v5104_v30, 16  ;;  %v336_v34 = vmax.f32 %v6365_v19, %v5852_v31 }
  0xec   : > { %v451_v42 = vshrl.u32 %v5102_v36, 16  ;;  %v454_v43 = vshll.u32 %v5102_v36, 16  ;;  %v443_v44 = vshrl.u32 %v5101_v37, 16  ;;  %v446_v45 = vshll.u32 %v5101_v37, 16  ;;  %v561_v36 = vld [vmem:[#allocation2 + $0x38] sm:$0xf] }
  0xed   : > { %v477_v48 = vrot.slane %v475_v13, 7  ;;  %v469_v49 = vrot.slane %v467_v38, 7  ;;  %v335_v32 = vmax.f32 %v6363_v18, %v5851_v33  ;;  %v321_v50 = vpop.permute.xlu0 %320  ;;  %v5103_v56 = vpack.c.bf16 %v332_v8, %v332_v8  ;;  %v534_v18 = vld [vmem:[#allocation2 + $0x14] sm:$0x1]  ;;  %v555_v33 = vld [vmem:[#allocation2 + $0x30] sm:$0xf] }
  0xee   : > { %v453_v54 = vrot.slane %v451_v42, 7  ;;  %v445_v55 = vrot.slane %v443_v44, 7  ;;  %v337_v57 = vmax.f32 %v6414_v51, %v321_v50  ;;  %v5107_v16 = vpack.c.bf16 %v336_v34, %v336_v34  ;;  %v564_v37 = vld [vmem:[#allocation2 + $0x3c] sm:$0x1]  ;;  %v537_v8 = vld [vmem:[#allocation2 + $0x18] sm:$0xf] }
  0xef   : > { %v480_v59 = vor.u32 %v478_v12, %v477_v48  ;;  %v481_v60 = vrot.slane %v477_v48, 4  ;;  %v472_v61 = vor.u32 %v470_v39, %v469_v49  ;;  %v473_v19 = vrot.slane %v469_v49, 4  ;;  %v567_v42 = vld [vmem:[#allocation2 + $0x40] sm:$0xf] }
  0xf0   : > { %v456_v63 = vor.u32 %v454_v43, %v453_v54  ;;  %v457_v0 = vrot.slane %v453_v54, 4  ;;  %v448_v1 = vor.u32 %v446_v45, %v445_v55  ;;  %v449_v2 = vrot.slane %v445_v55, 4  ;;  %v570_v43 = vld [vmem:[#allocation2 + $0x44] sm:$0x1] }
  0xf1   : > { %v550_v3 = vsel %vm6458_vm7, %v480_v59, %v549_v41  ;;  %v553_v51 = vsel %vm6373_vm4, %v481_v60, %v552_v47  ;;  %v544_v4 = vsel %vm6458_vm7, %v472_v61, %v543_v40  ;;  %v547_v6 = vsel %vm6373_vm4, %v473_v19, %v546_v46  ;;  %v540_v40 = vld [vmem:[#allocation2 + $0x1c] sm:$0x1] }
  0xf2   : > { %551 = vst [vmem:[#allocation2 + $0x28] sm:$0xf] %v550_v3  ;;  %554 = vst [vmem:[#allocation2 + $0x2c] sm:$0x1] %v553_v51  ;;  %v532_v9 = vsel %vm6458_vm7, %v456_v63, %v531_v62  ;;  %v535_v10 = vsel %vm6373_vm4, %v457_v0, %v534_v18  ;;  %v526_v11 = vsel %vm6458_vm7, %v448_v1, %v525_v52  ;;  %v459_v20 = vshrl.u32 %v5103_v56, 16 }
  0xf3   : > { %545 = vst [vmem:[#allocation2 + $0x20] sm:$0xf] %v544_v4  ;;  %548 = vst [vmem:[#allocation2 + $0x24] sm:$0x1] %v547_v6  ;;  %v529_v14 = vsel %vm6373_vm4, %v449_v2, %v528_v53  ;;  %v5106_v17 = vpack.c.bf16 %v335_v32, %v335_v32  ;;  %v5108_v21 = vpack.c.bf16 %v337_v57, %v337_v57  ;;  %v6482_v24 = vrot.slane %v780_v26, 4 }
  0xf4   : > { %533 = vst [vmem:[#allocation2 + $0x10] sm:$0xf] %v532_v9  ;;  %536 = vst [vmem:[#allocation2 + $0x14] sm:$0x1] %v535_v10  ;;  %v491_v28 = vshrl.u32 %v5107_v16, 16  ;;  %v494_v29 = vshll.u32 %v5107_v16, 16 }
  0xf5   : > { %527 = vst [vmem:[#allocation2 + $0x8] sm:$0xf] %v526_v11  ;;  %530 = vst [vmem:[#allocation2 + $0xc] sm:$0x1] %v529_v14  ;;  %v483_v30 = vshrl.u32 %v5106_v17, 16  ;;  %v486_v31 = vshll.u32 %v5106_v17, 16  ;;  %v786_v45 = vor.u32 %v6486_v25, %v6482_v24 }
  0xf6   : > { %v461_v5 = vrot.slane %v459_v20, 7  ;;  %v462_v13 = vshll.u32 %v5103_v56, 16  ;;  %v499_v12 = vshrl.u32 %v5108_v21, 16  ;;  %v502_v38 = vshll.u32 %v5108_v21, 16  ;;  %v6510_v17 = vld [vmem:[#allocation8 + $0x4] sm:$0x3] }
  0xf7   : > { %v493_v39 = vrot.slane %v491_v28, 7  ;;  %v485_v26 = vrot.slane %v483_v30, 7  ;;  %v789_v15 = vshll.u32 %v6478_v22, 16  ;;  %v918_v2 = vsel %vm683_vm6, %v6438_v7, 0  ;;  %v4423_v7 = vld [vmem:[#allocation3 + $0x48] sm:$0xe] }
  0xf8   : > { %v464_v27 = vor.u32 %v462_v13, %v461_v5  ;;  %v465_v41 = vrot.slane %v461_v5, 4  ;;  %v501_v44 = vrot.slane %v499_v12, 7  ;;  %v787_v6 = vrot.slane %v786_v45, 4 }
  0xf9   : > { %v496_v46 = vor.u32 %v494_v29, %v493_v39  ;;  %v497_v47 = vrot.slane %v493_v39, 4  ;;  %v488_v48 = vor.u32 %v486_v31, %v485_v26  ;;  %v489_v49 = vrot.slane %v485_v26, 4  ;;  %v770_v11 = vld [vmem:[#allocation2 + $0x28] sm:$0xf] }
  0xfa   : > { %v538_v34 = vsel %vm6458_vm7, %v464_v27, %v537_v8  ;;  %v541_v32 = vsel %vm6373_vm4, %v465_v41, %v540_v40  ;;  %v504_v50 = vor.u32 %v502_v38, %v501_v44  ;;  %v505_v52 = vrot.slane %v501_v44, 4  ;;  %v768_v58 = vld [vmem:[#allocation2 + $0x20] sm:$0xf]  ;;  %v769_v22 = vld [vmem:[#allocation2 + $0x24] sm:$0x1] }
  0xfb   : > { %v562_v54 = vsel %vm6458_vm7, %v496_v46, %v561_v36  ;;  %v565_v55 = vsel %vm6373_vm4, %v497_v47, %v564_v37  ;;  %v556_v56 = vsel %vm6458_vm7, %v488_v48, %v555_v33  ;;  %v559_v57 = vsel %vm6373_vm4, %v489_v49, %v558_v35  ;;  %539 = vst [vmem:[#allocation2 + $0x18] sm:$0xf] %v538_v34  ;;  %v764_v18 = vld [vmem:[#allocation2 + $0x10] sm:$0xf]  ;;  %v5855_v16 = vld [vmem:[#allocation2 + $0x20] ss:$8 sps:$4 sm:$0xff]  }
  0xfc   : > { %v5853_v53 = vld [vmem:[#allocation2] ss:$8 sps:$4 sm:$0xff]   ;;  %542 = vst [vmem:[#allocation2 + $0x1c] sm:$0x1] %v541_v32  ;;  %563 = vst [vmem:[#allocation2 + $0x38] sm:$0xf] %v562_v54  ;;  %v568_v60 = vsel %vm6458_vm7, %v504_v50, %v567_v42  ;;  %v571_v61 = vsel %vm6373_vm4, %v505_v52, %v570_v43 }
  0xfd   : > { %v762_v59 = vld [vmem:[#allocation2 + $0x8] sm:$0xf]  ;;  %566 = vst [vmem:[#allocation2 + $0x3c] sm:$0x1] %v565_v55  ;;  %557 = vst [vmem:[#allocation2 + $0x30] sm:$0xf] %v556_v56  ;;  %5304 = vmatprep.mubr.msk.bf16.mxu0 %vm670_vm8, %v5853_v53 }
  0xfe   : > { %560 = vst [vmem:[#allocation2 + $0x34] sm:$0x1] %v559_v57  ;;  %v794_v19 = vshrl.u32 %v762_v59, 16  ;;  %v797_v62 = vshll.u32 %v762_v59, 16  ;;  %569 = vst [vmem:[#allocation2 + $0x40] sm:$0xf] %v568_v60 }
  0xff   : > { %572 = vst [vmem:[#allocation2 + $0x44] sm:$0x1] %v571_v61  ;;  %v763_v63 = vld [vmem:[#allocation2 + $0xc] sm:$0x1]  ;;  %v808_v0 = vshrl.u32 %v764_v18, 16  ;;  %v811_v1 = vshll.u32 %v764_v18, 16  ;;  %vm6755_vm4 = vmand %vm2455_vm2, %vm378_vm3 }
 0x100   : > { %v796_v3 = vrot.slane %v794_v19, 4  ;;  %v799_v51 = vrot.slane %v797_v62, 5  ;;  %v791_v23 = vrot.slane %v789_v15, 5  ;;  %v836_v4 = vshrl.u32 %v768_v58, 16  ;;  %v771_v8 = vld [vmem:[#allocation2 + $0x2c] sm:$0x1] }
 0x101   : > { %v803_v10 = vshll.u32 %v763_v63, 16  ;;  %v839_v14 = vshll.u32 %v768_v58, 16  ;;  %v810_v20 = vrot.slane %v808_v0, 4  ;;  %v813_v21 = vrot.slane %v811_v1, 5  ;;  %v765_v40 = vld [vmem:[#allocation2 + $0x14] sm:$0x1] }
 0x102   : > { %v800_v9 = vor.u32 %v799_v51, %v796_v3  ;;  %v5854_v24 = vld [vmem:[#allocation2 + $0x10] ss:$8 sps:$4 sm:$0xff]   ;;  %v850_v28 = vshrl.u32 %v770_v11, 16  ;;  %v838_v29 = vrot.slane %v836_v4, 4  ;;  %v792_v35 = vsel %vm6513_vm11, %v787_v6, %v791_v23  ;;  %v1009_v23 = vld [vmem:[#allocation2] sm:$0xe] }
 0x103   : > { %v841_v30 = vrot.slane %v839_v14, 5  ;;  %5305 = vmatmul.mubr.msk.bf16.vlgmr.msra.gmra.mrb[0].mxu0 %vm670_vm8, %v5854_v24  ;;  %v805_v31 = vrot.slane %v803_v10, 5  ;;  %v766_v33 = vld [vmem:[#allocation2 + $0x18] sm:$0xf]  ;;  %v767_v12 = vld [vmem:[#allocation2 + $0x1c] sm:$0x1]  ;;  %v814_v15 = vor.u32 %v813_v21, %v810_v20 }
 0x104   : > { %v801_v25 = vrot.slane %v800_v9, 4  ;;  %5313 = vmatpush3.bf16.msra.mxu0 %v918_v2  ;;  %5308 = vmatprep.mubr.msk.bf16.mxu0 %vm670_vm8, %v5855_v16  ;;  %v822_v36 = vshrl.u32 %v766_v33, 16  ;;  %v825_v37 = vshll.u32 %v766_v33, 16  ;;  %v772_v5 = vld [vmem:[#allocation2 + $0x30] sm:$0xf]  ;;  %v845_v38 = vshll.u32 %v769_v22, 16 }
 0x105   : > { %5754 = vmatprep.subr.msk.bf16.mxu0 %vm683_vm6, %v6510_v17  ;;  %v852_v39 = vrot.slane %v850_v28, 4  ;;  %v853_v26 = vshll.u32 %v770_v11, 16  ;;  %v842_v42 = vor.u32 %v841_v30, %v838_v29  ;;  %v774_v43 = vld [vmem:[#allocation2 + $0x38] sm:$0xf]  ;;  %v859_v45 = vshll.u32 %v771_v8, 16 }
 0x106   : > { %v806_v13 = vsel %vm6513_vm11, %v801_v25, %v805_v31  ;;  %v824_v27 = vrot.slane %v822_v36, 4  ;;  %v827_v41 = vrot.slane %v825_v37, 5  ;;  %v864_v46 = vshrl.u32 %v772_v5, 16  ;;  %v5856_v50 = vld [vmem:[#allocation2 + $0x30] ss:$8 sps:$4 sm:$0xff]  }
 0x107   : > { %v855_v44 = vrot.slane %v853_v26, 5  ;;  %v867_v47 = vshll.u32 %v772_v5, 16  ;;  %v4857_v48 = vcombine.low %v792_v35, %v806_v13  ;;  %v831_v34 = vshll.u32 %v767_v12, 16  ;;  %v773_v57 = vld [vmem:[#allocation2 + $0x34] sm:$0x1] }
 0x108   : > { %v828_v49 = vor.u32 %v827_v41, %v824_v27  ;;  %v878_v32 = vshrl.u32 %v774_v43, 16  ;;  %v817_v52 = vshll.u32 %v765_v40, 16  ;;  %v847_v53 = vrot.slane %v845_v38, 5  ;;  %v775_v63 = vld [vmem:[#allocation2 + $0x3c] sm:$0x1]  ;;  %v5866_v3 = vld [vmem:[#allocation10 + $0x80] sm:$0xff]  }
 0x109   : > { %v856_v54 = vor.u32 %v855_v44, %v852_v39  ;;  %v881_v55 = vshll.u32 %v774_v43, 16  ;;  %v866_v59 = vrot.slane %v864_v46, 4  ;;  %v869_v60 = vrot.slane %v867_v47, 5  ;;  %v1010_v4 = vld [vmem:[#allocation2 + $0x4] sm:$0x1]  ;;  %5440 = vmatprep.subr.bf16.mxu1 %v5866_v3 }
 0x10a   : > { %v829_v56 = vrot.slane %v828_v49, 4  ;;  %v880_v61 = vrot.slane %v878_v32, 4  ;;  %v843_v19 = vrot.slane %v842_v42, 4  ;;  %v861_v18 = vrot.slane %v859_v45, 5  ;;  %5441 = vmatpush3.bf16.msra.mxu1 %v5866_v3  ;;  %v1011_v21 = vld [vmem:[#allocation2 + $0x8] sm:$0xe] }
 0x10b   : > { %5309 = vmatmul.mubr.msk.bf16.gmra.mrb[4].mxu0 %vm670_vm8, %v5856_v50  ;;  %v857_v62 = vrot.slane %v856_v54, 4  ;;  %v883_v0 = vrot.slane %v881_v55, 5  ;;  %v815_v1 = vrot.slane %v814_v15, 4  ;;  %v833_v2 = vrot.slane %v831_v34, 5  ;;  %v1012_v22 = vld [vmem:[#allocation2 + $0xc] sm:$0x1] }
 0x10c   : > { %5314 = vmatprep.mubr.msk.bf16.mxu0 %vm670_vm8, %v4857_v48  ;;  %v819_v51 = vrot.slane %v817_v52, 5  ;;  %v873_v58 = vshll.u32 %v773_v57, 16  ;;  %v870_v9 = vor.u32 %v869_v60, %v866_v59  ;;  %v887_v11 = vshll.u32 %v775_v63, 16  ;;  %v1203_v31 = vld [vmem:[#allocation8 + $0x6] sm:$0x3] }
 0x10d   : > { %v834_v6 = vsel %vm6513_vm11, %v829_v56, %v833_v2  ;;  %v884_v10 = vor.u32 %v883_v0, %v880_v61  ;;  %v848_v14 = vsel %vm6513_vm11, %v843_v19, %v847_v53  ;;  %v862_v16 = vsel %vm6513_vm11, %v857_v62, %v861_v18  ;;  %v1015_v26 = vld [vmem:[#allocation2 + $0x18] sm:$0xe]  ;;  %v1016_v40 = vld [vmem:[#allocation2 + $0x1c] sm:$0x1]  ;;  %v1017_v15 = vld [vmem:[#allocation2 + $0x20] sm:$0xe] }
 0x10e   : > { %v820_v20 = vsel %vm6513_vm11, %v815_v1, %v819_v51  ;;  %v4865_v24 = vrot.slane %v1009_v23, 9  ;;  %v1046_v25 = vrot.slane %v1010_v4, 5  ;;  %v1103_v29 = vsel %vm683_vm6, %v6510_v17, 0  ;;  %v1018_v27 = vld [vmem:[#allocation2 + $0x24] sm:$0x1] }
 0x10f   : > { %v4858_v28 = vcombine.low %v820_v20, %v834_v6  ;;  %v875_v30 = vrot.slane %v873_v58, 5  ;;  %v4859_v33 = vcombine.low %v848_v14, %v862_v16  ;;  %v871_v35 = vrot.slane %v870_v9, 4  ;;  %v1019_v41 = vld [vmem:[#allocation2 + $0x28] sm:$0xe]  ;;  %v1020_v42 = vld [vmem:[#allocation2 + $0x2c] sm:$0x1] }
 0x110   : > { %v885_v36 = vrot.slane %v884_v10, 4  ;;  %v889_v37 = vrot.slane %v887_v11, 5  ;;  %v4866_v8 = vrot.slane %v1011_v21, 9  ;;  %v1050_v5 = vrot.slane %v1012_v22, 5  ;;  %v1013_v44 = vld [vmem:[#allocation2 + $0x10] sm:$0xe] }
 0x111   : > { %v876_v17 = vsel %vm6513_vm11, %v871_v35, %v875_v30  ;;  %v1047_v38 = vsel %vm6541_vm14, %v4865_v24, %v1046_v25  ;;  %v1014_v45 = vld [vmem:[#allocation2 + $0x14] sm:$0x1]  ;;  %v4868_v47 = vrot.slane %v1015_v26, 9  ;;  %v1058_v48 = vrot.slane %v1016_v40, 5  ;;  %v1021_v55 = vld [vmem:[#allocation2 + $0x30] sm:$0xe] }
 0x112   : > { %v890_v12 = vsel %vm6513_vm11, %v885_v36, %v889_v37  ;;  %v1051_v39 = vsel %vm6541_vm14, %v4866_v8, %v1050_v5  ;;  %v4869_v49 = vrot.slane %v1017_v15, 9  ;;  %v1062_v34 = vrot.slane %v1018_v27, 5  ;;  %v1022_v59 = vld [vmem:[#allocation2 + $0x34] sm:$0x1]  ;;  %v1023_v60 = vld [vmem:[#allocation2 + $0x38] sm:$0xe] }
 0x113   : > { %5315 = vmatmul.mubr.msk.bf16.vlgmr.msra.gmra.mrb[0].mxu0 %vm670_vm8, %v4858_v28  ;;  %v4860_v43 = vcombine.low %v876_v17, %v890_v12  ;;  %v4873_v46 = vcombine.low %v1047_v38, %v1051_v39  ;;  %v4870_v32 = vrot.slane %v1019_v41, 9  ;;  %v1066_v50 = vrot.slane %v1020_v42, 5  ;;  %v1024_v61 = vld [vmem:[#allocation2 + $0x3c] sm:$0x1]  ;;  %v1328_v62 = vld [vmem:[#allocation2 + $0x8] sm:$0xf] }
 0x114   : > { %5323 = vmatpush3.bf16.msra.mxu0 %v1103_v29  ;;  %5318 = vmatprep.mubr.msk.bf16.mxu0 %vm670_vm8, %v4859_v33  ;;  %v4867_v52 = vrot.slane %v1013_v44, 9  ;;  %v1054_v53 = vrot.slane %v1014_v45, 5  ;;  %v1059_v54 = vsel %vm6541_vm14, %v4868_v47, %v1058_v48  ;;  %v1063_v56 = vsel %vm6541_vm14, %v4869_v49, %v1062_v34  ;;  %v1330_v1 = vld [vmem:[#allocation2 + $0x10] sm:$0xf]  ;;  %v1457_v23 = vld [vmem:[#allocation8 + $0x8] sm:$0x3] }
 0x115   : > { %5755 = vmatprep.subr.msk.bf16.mxu0 %vm683_vm6, %v1203_v31  ;;  %v1067_v57 = vsel %vm6541_vm14, %v4870_v32, %v1066_v50  ;;  %v1237_v63 = vsel %vm683_vm6, %v1203_v31, 0  ;;  %v4871_v0 = vrot.slane %v1021_v55, 9  ;;  %v1070_v3 = vrot.slane %v1022_v59, 5  ;;  %v1332_v24 = vld [vmem:[#allocation2 + $0x18] sm:$0xf] }
 0x116   : > { %v1055_v19 = vsel %vm6541_vm14, %v4867_v52, %v1054_v53  ;;  %v4875_v2 = vcombine.low %v1063_v56, %v1067_v57  ;;  %v4872_v51 = vrot.slane %v1023_v60, 9  ;;  %v1074_v58 = vrot.slane %v1024_v61, 5  ;;  %v5857_v28 = vld [vmem:[#allocation2 + $0x8] ss:$8 sps:$4 sm:$0xff]   ;;  %v1334_v29 = vld [vmem:[#allocation2 + $0x20] sm:$0xf] }
 0x117   : > { %v4874_v18 = vcombine.low %v1055_v19, %v1059_v54  ;;  %v1345_v4 = vshrl.u32 %v1328_v62, 16  ;;  %v1348_v6 = vshll.u32 %v1328_v62, 16  ;;  %v1359_v9 = vshrl.u32 %v1330_v1, 16  ;;  %v1329_v30 = vld [vmem:[#allocation2 + $0xc] sm:$0x1] }
 0x118   : > { %v1362_v10 = vshll.u32 %v1330_v1, 16  ;;  %v1071_v11 = vsel %vm6541_vm14, %v4871_v0, %v1070_v3  ;;  %v1075_v14 = vsel %vm6541_vm14, %v4872_v51, %v1074_v58  ;;  %v1331_v31 = vld [vmem:[#allocation2 + $0x14] sm:$0x1]  ;;  %v1373_v35 = vshrl.u32 %v1332_v24, 16  ;;  %v1338_v8 = vld [vmem:[#allocation2 + $0x30] sm:$0xf] }
 0x119   : > { %v1347_v16 = vrot.slane %v1345_v4, 4  ;;  %v1350_v20 = vrot.slane %v1348_v6, 5  ;;  %v1361_v21 = vrot.slane %v1359_v9, 4  ;;  %v4876_v25 = vcombine.low %v1071_v11, %v1075_v14  ;;  %v1336_v12 = vld [vmem:[#allocation2 + $0x28] sm:$0xf] }
 0x11a   : > { %v1364_v22 = vrot.slane %v1362_v10, 5  ;;  %v1376_v37 = vshll.u32 %v1332_v24, 16  ;;  %v1387_v5 = vshrl.u32 %v1334_v29, 16  ;;  %v1390_v17 = vshll.u32 %v1334_v29, 16  ;;  %v5858_v40 = vld [vmem:[#allocation2 + $0x18] ss:$8 sps:$4 sm:$0xff]  }
 0x11b   : > { %5319 = vmatmul.mubr.msk.bf16.gmra.mrb[4].mxu0 %vm670_vm8, %v4860_v43  ;;  %v1351_v33 = vor.u32 %v1350_v20, %v1347_v16  ;;  %v1483_v38 = vsel %vm683_vm6, %v1457_v23, 0  ;;  %v1354_v39 = vshll.u32 %v1329_v30, 16  ;;  %v1368_v26 = vshll.u32 %v1331_v31, 16  ;;  %v1335_v27 = vld [vmem:[#allocation2 + $0x24] sm:$0x1] }
 0x11c   : > { %5324 = vmatprep.mubr.msk.bf16.mxu0 %vm670_vm8, %v4873_v46  ;;  %v1365_v36 = vor.u32 %v1364_v22, %v1361_v21  ;;  %v1375_v41 = vrot.slane %v1373_v35, 4  ;;  %v1415_v42 = vshrl.u32 %v1338_v8, 16  ;;  %v1418_v43 = vshll.u32 %v1338_v8, 16  ;;  %v5859_v44 = vld [vmem:[#allocation2 + $0x28] ss:$8 sps:$4 sm:$0xff]  }
 0x11d   : > { %v1352_v15 = vrot.slane %v1351_v33, 4  ;;  %v6575_v46 = vld [vmem:[#allocation8 + $0xa] sm:$0x3]  ;;  %v1378_v47 = vrot.slane %v1376_v37, 5  ;;  %v1401_v48 = vshrl.u32 %v1336_v12, 16  ;;  %v1404_v49 = vshll.u32 %v1336_v12, 16 }
 0x11e   : > { %v1366_v45 = vrot.slane %v1365_v36, 4  ;;  %v1389_v34 = vrot.slane %v1387_v5, 4  ;;  %v1392_v32 = vrot.slane %v1390_v17, 5  ;;  %v1356_v50 = vrot.slane %v1354_v39, 5  ;;  %v1333_v53 = vld [vmem:[#allocation2 + $0x1c] sm:$0x1] }
 0x11f   : > { %v1370_v52 = vrot.slane %v1368_v26, 5  ;;  %v1417_v54 = vrot.slane %v1415_v42, 4  ;;  %v1420_v55 = vrot.slane %v1418_v43, 5  ;;  %v1340_v56 = vld [vmem:[#allocation2 + $0x38] sm:$0xf]  ;;  %v1396_v59 = vshll.u32 %v1335_v27, 16 }
 0x120   : > { %v1342_v57 = vld [vmem:[#allocation2 + $0x40] sm:$0xf]  ;;  %v1339_v60 = vld [vmem:[#allocation2 + $0x34] sm:$0x1]  ;;  %v1403_v61 = vrot.slane %v1401_v48, 4  ;;  %v1406_v19 = vrot.slane %v1404_v49, 5  ;;  %v1357_v62 = vsel %vm6513_vm11, %v1352_v15, %v1356_v50  ;;  %v1393_v0 = vor.u32 %v1392_v32, %v1389_v34 }
 0x121   : > { %v1337_v1 = vld [vmem:[#allocation2 + $0x2c] sm:$0x1]  ;;  %v1432_v3 = vshll.u32 %v1340_v56, 16  ;;  %v1443_v51 = vshrl.u32 %v1342_v57, 16  ;;  %v1446_v58 = vshll.u32 %v1342_v57, 16  ;;  %v1421_v4 = vor.u32 %v1420_v55, %v1417_v54 }
 0x122   : > { %v1424_v6 = vshll.u32 %v1339_v60, 16  ;;  %v5860_v9 = vld [vmem:[#allocation2 + $0x38] ss:$8 sps:$4 sm:$0xff]   ;;  %v1407_v10 = vor.u32 %v1406_v19, %v1403_v61  ;;  %v1410_v11 = vshll.u32 %v1337_v1, 16  ;;  %v1394_v20 = vrot.slane %v1393_v0, 4 }
 0x123   : > { %5325 = vmatmul.mubr.msk.bf16.vlgmr.msra.gmra.mrb[0].mxu0 %vm670_vm8, %v4874_v18  ;;  %v1371_v18 = vsel %vm6513_vm11, %v1366_v45, %v1370_v52  ;;  %v1398_v21 = vrot.slane %v1396_v59, 5  ;;  %v1341_v22 = vld [vmem:[#allocation2 + $0x3c] sm:$0x1]  ;;  %v1343_v24 = vld [vmem:[#allocation2 + $0x44] sm:$0x1]  ;;  %v1445_v29 = vrot.slane %v1443_v51, 4 }
 0x124   : > { %5333 = vmatpush3.bf16.msra.mxu0 %v1237_v63  ;;  %5328 = vmatprep.mubr.msk.bf16.mxu0 %vm670_vm8, %v4875_v2  ;;  %v1379_v63 = vor.u32 %v1378_v47, %v1375_v41  ;;  %v1429_v2 = vshrl.u32 %v1340_v56, 16  ;;  %v4889_v14 = vcombine.low %v1357_v62, %v1371_v18  ;;  %v1448_v30 = vrot.slane %v1446_v58, 5  ;;  %v1574_v26 = vld [vmem:[#allocation2 + $0x8] sm:$0xe]  ;;  %v1576_v15 = vld [vmem:[#allocation2 + $0x10] sm:$0xe] }
 0x125   : > { %5756 = vmatprep.subr.msk.bf16.mxu0 %vm683_vm6, %v1457_v23  ;;  %v1382_v23 = vshll.u32 %v1333_v53, 16  ;;  %v1422_v33 = vrot.slane %v1421_v4, 4  ;;  %v1426_v35 = vrot.slane %v1424_v6, 5  ;;  %v1408_v36 = vrot.slane %v1407_v10, 4  ;;  %v1577_v41 = vld [vmem:[#allocation2 + $0x14] sm:$0x1] }
 0x126   : > { %v1380_v16 = vrot.slane %v1379_v63, 4  ;;  %v1412_v37 = vrot.slane %v1410_v11, 5  ;;  %v1438_v8 = vshll.u32 %v1341_v22, 16  ;;  %v1399_v17 = vsel %vm6513_vm11, %v1394_v20, %v1398_v21  ;;  %v1766_v54 = vld [vmem:[#allocation8 + $0xc] sm:$0x3] }
 0x127   : > { %v1384_v31 = vrot.slane %v1382_v23, 5  ;;  %v1452_v12 = vshll.u32 %v1343_v24, 16  ;;  %v1449_v39 = vor.u32 %v1448_v30, %v1445_v29  ;;  %v1427_v27 = vsel %vm6513_vm11, %v1422_v33, %v1426_v35  ;;  %v1578_v56 = vld [vmem:[#allocation2 + $0x18] sm:$0xe]  ;;  %v1579_v19 = vld [vmem:[#allocation2 + $0x1c] sm:$0x1] }
 0x128   : > { %v1665_v43 = vsel %vm683_vm6, %v6575_v46, 0  ;;  %v1440_v45 = vrot.slane %v1438_v8, 5  ;;  %v4897_v48 = vrot.slane %v1574_v26, 9  ;;  %v4898_v34 = vrot.slane %v1576_v15, 9  ;;  %v1580_v62 = vld [vmem:[#allocation2 + $0x20] sm:$0xe] }
 0x129   : > { %v1385_v5 = vsel %vm6513_vm11, %v1380_v16, %v1384_v31  ;;  %v1454_v47 = vrot.slane %v1452_v12, 5  ;;  %v1450_v52 = vrot.slane %v1449_v39, 4  ;;  %v1612_v53 = vrot.slane %v1577_v41, 5  ;;  %v1581_v18 = vld [vmem:[#allocation2 + $0x24] sm:$0x1] }
 0x12a   : > { %v4890_v42 = vcombine.low %v1385_v5, %v1399_v17  ;;  %v1582_v63 = vld [vmem:[#allocation2 + $0x28] sm:$0xe]  ;;  %v1583_v0 = vld [vmem:[#allocation2 + $0x2c] sm:$0x1]  ;;  %v1584_v1 = vld [vmem:[#allocation2 + $0x30] sm:$0xe] }
 0x12b   : > { %5329 = vmatmul.mubr.msk.bf16.gmra.mrb[4].mxu0 %vm670_vm8, %v4876_v25  ;;  %v1431_v25 = vrot.slane %v1429_v2, 4  ;;  %v1455_v59 = vsel %vm6513_vm11, %v1450_v52, %v1454_v47  ;;  %v1613_v61 = vsel %vm6541_vm14, %v4898_v34, %v1612_v53  ;;  %v1585_v2 = vld [vmem:[#allocation2 + $0x34] sm:$0x1]  ;;  %v620_v51 = vld [vmem:[#allocation3 + $0x1c] sm:$0x1]  ;;  %v4899_v4 = vrot.slane %v1578_v56, 9 }
 0x12c   : > { %5334 = vmatprep.mubr.msk.bf16.mxu0 %vm670_vm8, %v5857_v28  ;;  %v1434_v28 = vrot.slane %v1432_v3, 5  ;;  %v589_v3 = vld [vmem:[#allocation3 + $0x18] sm:$0x1]  ;;  %v1616_v6 = vrot.slane %v1579_v19, 5  ;;  %v1620_v10 = vrot.slane %v1581_v18, 5  ;;  %v4901_v11 = vrot.slane %v1582_v63, 9 }
 0x12d   : > { %v4902_v16 = vrot.slane %v1584_v1, 9  ;;  %v1628_v20 = vrot.slane %v1585_v2, 5  ;;  %v590_v21 = vsel %vm6600_vm0, 0, %v589_v3  ;;  %v621_v22 = vsel %vm6607_vm1, 0, %v620_v51  ;;  %v1587_v31 = vld [vmem:[#allocation2 + $0x3c] sm:$0x1] }
 0x12e   : > { %591 = vst [vmem:[#allocation3 + $0x18] sm:$0x1] %v590_v21  ;;  %622 = vst [vmem:[#allocation3 + $0x1c] sm:$0x1] %v621_v22  ;;  %v1617_v24 = vsel %vm6541_vm14, %v4899_v4, %v1616_v6  ;;  %v1588_v33 = vld [vmem:[#allocation2 + $0x40] sm:$0xe] }
 0x12f   : > { %v1629_v30 = vsel %vm6541_vm14, %v4902_v16, %v1628_v20  ;;  %v1589_v35 = vld [vmem:[#allocation2 + $0x44] sm:$0x1]  ;;  %v1632_v17 = vrot.slane %v1587_v31, 5  ;;  %v4904_v12 = vrot.slane %v1588_v33, 9  ;;  %v2020_v39 = vld [vmem:[#allocation8 + $0xe] sm:$0x3] }
 0x130   : > { %v1893_v26 = vld [vmem:[#allocation2 + $0x18] sm:$0xf]  ;;  %v1895_v34 = vld [vmem:[#allocation2 + $0x20] sm:$0xf]  ;;  %v1899_v52 = vld [vmem:[#allocation2 + $0x30] sm:$0xf] }
 0x131   : > { %v1922_v41 = vshrl.u32 %v1893_v26, 16  ;;  %v5861_v47 = vld [vmem:[#allocation2 + $0x10] ss:$8 sps:$4 sm:$0xff]   ;;  %v1964_v63 = vshrl.u32 %v1899_v52, 16  ;;  %v1905_v3 = vld [vmem:[#allocation2 + $0x48] sm:$0xf] }
 0x132   : > { %v1901_v53 = vld [vmem:[#allocation2 + $0x38] sm:$0xf]  ;;  %v5862_v51 = vld [vmem:[#allocation2 + $0x20] ss:$8 sps:$4 sm:$0xff]   ;;  %v6645_v6 = vld [vmem:[#allocation8 + $0x10] sm:$0x3] }
 0x133   : > { %5335 = vmatmul.mubr.msk.bf16.vlgmr.msra.gmra.mrb[0].mxu0 %vm670_vm8, %v5858_v40  ;;  %v1575_v40 = vld [vmem:[#allocation2 + $0xc] sm:$0x1]  ;;  %v1978_v1 = vshrl.u32 %v1901_v53, 16  ;;  %v1981_v2 = vshll.u32 %v1901_v53, 16  ;;  %v1903_v31 = vld [vmem:[#allocation2 + $0x40] sm:$0xf] }
 0x134   : > { %5343 = vmatpush3.bf16.msra.mxu0 %v1483_v38  ;;  %5338 = vmatprep.mubr.msk.bf16.mxu0 %vm670_vm8, %v5859_v44  ;;  %v1435_v38 = vor.u32 %v1434_v28, %v1431_v25  ;;  %v1413_v44 = vsel %vm6513_vm11, %v1408_v36, %v1412_v37  ;;  %v1608_v49 = vrot.slane %v1575_v40, 5  ;;  %v1586_v28 = vld [vmem:[#allocation2 + $0x38] sm:$0xe]  ;;  %v1800_v37 = vsel %vm683_vm6, %v1766_v54, 0  ;;  %v1906_v53 = vld [vmem:[#allocation2 + $0x4c] sm:$0x1] }
 0x135   : > { %5757 = vmatprep.subr.msk.bf16.mxu0 %vm683_vm6, %v6575_v46  ;;  %v4891_v32 = vcombine.low %v1413_v44, %v1427_v27  ;;  %v4903_v8 = vrot.slane %v1586_v28, 9  ;;  %v1891_v27 = vld [vmem:[#allocation2 + $0x10] sm:$0xf] }
 0x136   : > { %v1436_v50 = vrot.slane %v1435_v38, 4  ;;  %v1609_v60 = vsel %vm6541_vm14, %v4897_v48, %v1608_v49  ;;  %v1636_v38 = vrot.slane %v1589_v35, 5  ;;  %v1908_v44 = vshrl.u32 %v1891_v27, 16 }
 0x137   : > { %v4905_v23 = vcombine.low %v1609_v60, %v1613_v61  ;;  %v1633_v40 = vsel %vm6541_vm14, %v4903_v8, %v1632_v17  ;;  %v1924_v48 = vrot.slane %v1922_v41, 4  ;;  %v1939_v60 = vshll.u32 %v1895_v34, 16 }
 0x138   : > { %v1441_v57 = vsel %vm6513_vm11, %v1436_v50, %v1440_v45  ;;  %v1637_v15 = vsel %vm6541_vm14, %v4904_v12, %v1636_v38  ;;  %v1911_v45 = vshll.u32 %v1891_v27, 16  ;;  %v1892_v50 = vld [vmem:[#allocation2 + $0x14] sm:$0x1]  ;;  %v1910_v56 = vrot.slane %v1908_v44, 4 }
 0x139   : > { %v4892_v58 = vcombine.low %v1441_v57, %v1455_v59  ;;  %v1936_v59 = vshrl.u32 %v1895_v34, 16  ;;  %v2046_v61 = vsel %vm683_vm6, %v2020_v39, 0  ;;  %v1941_v16 = vrot.slane %v1939_v60, 5 }
 0x13a   : > { %v1913_v57 = vrot.slane %v1911_v45, 5  ;;  %v2009_v8 = vshll.u32 %v1905_v3, 16 }
 0x13b   : > { %5339 = vmatmul.mubr.msk.bf16.gmra.mrb[4].mxu0 %vm670_vm8, %v5860_v9  ;;  %v4900_v9 = vrot.slane %v1580_v62, 9 }
 0x13c   : > { %5344 = vmatprep.mubr.msk.bf16.mxu0 %vm670_vm8, %v4889_v14  ;;  %v1624_v14 = vrot.slane %v1583_v0, 5  ;;  %v1967_v0 = vshll.u32 %v1899_v52, 16  ;;  %v2011_v45 = vrot.slane %v2009_v8, 5  ;;  %v2144_v8 = vld [vmem:[#allocation2 + $0x2c] sm:$0x1] }
 0x13d   : > { %v1621_v25 = vsel %vm6541_vm14, %v4900_v9, %v1620_v10  ;;  %v1914_v9 = vor.u32 %v1913_v57, %v1910_v56  ;;  %v1896_v10 = vld [vmem:[#allocation2 + $0x24] sm:$0x1] }
 0x13e   : > { %v1625_v29 = vsel %vm6541_vm14, %v4901_v11, %v1624_v14  ;;  %v4906_v36 = vcombine.low %v1617_v24, %v1621_v25  ;;  %v1898_v11 = vld [vmem:[#allocation2 + $0x2c] sm:$0x1]  ;;  %v1938_v14 = vrot.slane %v1936_v59, 4  ;;  %v1900_v24 = vld [vmem:[#allocation2 + $0x34] sm:$0x1]  ;;  %v1966_v25 = vrot.slane %v1964_v63, 4 }
 0x13f   : > { %v4907_v5 = vcombine.low %v1625_v29, %v1629_v30  ;;  %v1969_v28 = vrot.slane %v1967_v0, 5  ;;  %v1980_v29 = vrot.slane %v1978_v1, 4  ;;  %v1983_v30 = vrot.slane %v1981_v2, 5 }
 0x140   : > { %v1942_v17 = vor.u32 %v1941_v16, %v1938_v14  ;;  %v1945_v12 = vshll.u32 %v1896_v10, 16  ;;  %v1959_v38 = vshll.u32 %v1898_v11, 16  ;;  %v2137_v11 = vld [vmem:[#allocation2 + $0x10] sm:$0xe] }
 0x141   : > { %v1970_v41 = vor.u32 %v1969_v28, %v1966_v25  ;;  %v5865_v14 = vld [vmem:[#allocation10] sm:$0xff]  }
 0x142   : > { %v1947_v34 = vrot.slane %v1945_v12, 5  ;;  %v2147_v12 = vld [vmem:[#allocation2 + $0x38] sm:$0xe] }
 0x143   : > { %5345 = vmatmul.mubr.msk.bf16.vlgmr.msra.gmra.mrb[0].mxu0 %vm670_vm8, %v4890_v42  ;;  %v1925_v42 = vshll.u32 %v1893_v26, 16  ;;  %v1973_v26 = vshll.u32 %v1900_v24, 16  ;;  %v1971_v57 = vrot.slane %v1970_v41, 4  ;;  %v2138_v24 = vld [vmem:[#allocation2 + $0x14] sm:$0x1] }
 0x144   : > { %5353 = vmatpush3.bf16.msra.mxu0 %v1665_v43  ;;  %5348 = vmatprep.mubr.msk.bf16.mxu0 %vm670_vm8, %v4891_v32  ;;  %v4908_v43 = vcombine.low %v1633_v40, %v1637_v15  ;;  %v1897_v32 = vld [vmem:[#allocation2 + $0x28] sm:$0xf]  ;;  %v1992_v40 = vshrl.u32 %v1903_v31, 16  ;;  %v1995_v15 = vshll.u32 %v1903_v31, 16 }
 0x145   : > { %5758 = vmatprep.subr.msk.bf16.mxu0 %vm683_vm6, %v1766_v54  ;;  %v1927_v49 = vrot.slane %v1925_v42, 5  ;;  %v1894_v54 = vld [vmem:[#allocation2 + $0x1c] sm:$0x1]  ;;  %v1950_v62 = vshrl.u32 %v1897_v32, 16  ;;  %v1953_v18 = vshll.u32 %v1897_v32, 16  ;;  %v1984_v42 = vor.u32 %v1983_v30, %v1980_v29 }
 0x146   : > { %v1931_v4 = vshll.u32 %v1894_v54, 16  ;;  %v1961_v32 = vrot.slane %v1959_v38, 5  ;;  %v1994_v54 = vrot.slane %v1992_v40, 4  ;;  %v1997_v56 = vrot.slane %v1995_v15, 5  ;;  %v2148_v38 = vld [vmem:[#allocation2 + $0x3c] sm:$0x1] }
 0x147   : > { %v1928_v19 = vor.u32 %v1927_v49, %v1924_v48  ;;  %v1952_v21 = vrot.slane %v1950_v62, 4  ;;  %v1955_v22 = vrot.slane %v1953_v18, 5  ;;  %v1943_v49 = vrot.slane %v1942_v17, 4  ;;  %v2146_v17 = vld [vmem:[#allocation2 + $0x34] sm:$0x1] }
 0x148   : > { %v1933_v35 = vrot.slane %v1931_v4, 5  ;;  %v1975_v59 = vrot.slane %v1973_v26, 5  ;;  %v1985_v60 = vrot.slane %v1984_v42, 4  ;;  %v2015_v18 = vshll.u32 %v1906_v53, 16  ;;  %v2151_v53 = vld [vmem:[#allocation2 + $0x48] sm:$0xe] }
 0x149   : > { %v1929_v20 = vrot.slane %v1928_v19, 4  ;;  %v1904_v19 = vld [vmem:[#allocation2 + $0x44] sm:$0x1]  ;;  %v1948_v63 = vsel %vm6513_vm11, %v1943_v49, %v1947_v34  ;;  %v1998_v1 = vor.u32 %v1997_v56, %v1994_v54  ;;  %v4929_v29 = vrot.slane %v2137_v11, 9  ;;  %v2149_v34 = vld [vmem:[#allocation2 + $0x40] sm:$0xe] }
 0x14a   : > { %v2001_v2 = vshll.u32 %v1904_v19, 16  ;;  %v2017_v10 = vrot.slane %v2015_v18, 5  ;;  %v2171_v30 = vrot.slane %v2138_v24, 5  ;;  %v2183_v42 = vrot.slane %v2144_v8, 5  ;;  %v2152_v54 = vld [vmem:[#allocation2 + $0x4c] sm:$0x1] }
 0x14b   : > { %5349 = vmatmul.mubr.msk.bf16.gmra.mrb[4].mxu0 %vm670_vm8, %v4892_v58  ;;  %v5863_v58 = vld [vmem:[#allocation2 + $0x30] ss:$8 sps:$4 sm:$0xff]   ;;  %v1934_v27 = vsel %vm6513_vm11, %v1929_v20, %v1933_v35  ;;  %v1999_v20 = vrot.slane %v1998_v1, 4  ;;  %v2142_v35 = vld [vmem:[#allocation2 + $0x24] sm:$0x1]  ;;  %v4936_v19 = vrot.slane %v2151_v53, 9 }
 0x14c   : > { %5354 = vmatprep.mubr.msk.bf16.mxu0 %vm670_vm8, %v4905_v23  ;;  %v1917_v23 = vshll.u32 %v1892_v50, 16  ;;  %v2172_v26 = vsel %vm6541_vm14, %v4929_v29, %v2171_v30  ;;  %v583_v1 = vld [vmem:[#allocation3 + $0x8] sm:$0x1]  ;;  %v586_v11 = vld [vmem:[#allocation3 + $0x10] sm:$0x1] }
 0x14d   : > { %v638_v53 = vld [vmem:[#allocation3 + $0x4c] sm:$0x1] }
 0x14e   : > { %v1919_v33 = vrot.slane %v1917_v23, 5  ;;  %v2140_v23 = vld [vmem:[#allocation2 + $0x1c] sm:$0x1] }
 0x14f   : > { %v2175_v28 = vrot.slane %v2140_v23, 5  ;;  %v592_v23 = vld [vmem:[#allocation3 + $0x20] sm:$0x1] }
 0x153   : > { %5355 = vmatmul.mubr.msk.bf16.vlgmr.msra.gmra.mrb[0].mxu0 %vm670_vm8, %v4906_v36  ;;  %v1902_v36 = vld [vmem:[#allocation2 + $0x3c] sm:$0x1] }
 0x154   : > { %5363 = vmatpush3.bf16.msra.mxu0 %v1800_v37  ;;  %5358 = vmatprep.mubr.msk.bf16.mxu0 %vm670_vm8, %v4907_v5  ;;  %v2006_v37 = vshrl.u32 %v1905_v3, 16  ;;  %v1915_v5 = vrot.slane %v1914_v9, 4  ;;  %v1976_v3 = vsel %vm6513_vm11, %v1971_v57, %v1975_v59  ;;  %v2228_v9 = vsel %vm683_vm6, %v6645_v6, 0  ;;  %v5867_v59 = vld [vmem:[#allocation10 + $0x8] sm:$0xff]  }
 0x155   : > { %5759 = vmatprep.subr.msk.bf16.mxu0 %vm683_vm6, %v2020_v39  ;;  %v1956_v39 = vor.u32 %v1955_v22, %v1952_v21  ;;  %v2003_v21 = vrot.slane %v2001_v2, 5  ;;  %v4935_v57 = vrot.slane %v2149_v34, 9  ;;  %v614_v2 = vld [vmem:[#allocation3 + $0xc] sm:$0x1]  ;;  %v5881_v34 = vld [vmem:[#allocation10 + $0xb8] sm:$0xff]  }
 0x156   : > { %v2008_v44 = vrot.slane %v2006_v37, 4  ;;  %v1920_v48 = vsel %vm6513_vm11, %v1915_v5, %v1919_v33  ;;  %v2141_v33 = vld [vmem:[#allocation2 + $0x20] sm:$0xe]  ;;  %v2143_v37 = vld [vmem:[#allocation2 + $0x28] sm:$0xe] }
 0x157   : > { %v4921_v50 = vcombine.low %v1920_v48, %v1934_v27  ;;  %v1957_v52 = vrot.slane %v1956_v39, 4  ;;  %v2145_v5 = vld [vmem:[#allocation2 + $0x30] sm:$0xe]  ;;  %v4931_v40 = vrot.slane %v2141_v33, 9  ;;  %v2179_v27 = vrot.slane %v2142_v35, 5 }
 0x158   : > { %v2012_v62 = vor.u32 %v2011_v45, %v2008_v44  ;;  %v4932_v41 = vrot.slane %v2143_v37, 9  ;;  %v2187_v44 = vrot.slane %v2146_v17, 5  ;;  %v4934_v45 = vrot.slane %v2147_v12, 9  ;;  %v604_v37 = vld [vmem:[#allocation3 + $0x40] sm:$0x1]  ;;  %v5873_v12 = vld [vmem:[#allocation10 + $0x20] sm:$0xff]  }
 0x159   : > { %v1962_v0 = vsel %vm6513_vm11, %v1957_v52, %v1961_v32  ;;  %v2180_v48 = vsel %vm6541_vm14, %v4931_v40, %v2179_v27  ;;  %v2150_v52 = vld [vmem:[#allocation2 + $0x44] sm:$0x1]  ;;  %v605_v8 = vsel %vm6600_vm0, 0, %v604_v37  ;;  %v5875_v27 = vld [vmem:[#allocation10 + $0x28] sm:$0xff]  }
 0x15a   : > { %v4922_v4 = vcombine.low %v1948_v63, %v1962_v0  ;;  %v2013_v22 = vrot.slane %v2012_v62, 4  ;;  %v2184_v49 = vsel %vm6541_vm14, %v4932_v41, %v2183_v42  ;;  %v2199_v62 = vrot.slane %v2152_v54, 5  ;;  %606 = vst [vmem:[#allocation3 + $0x40] sm:$0x1] %v605_v8  ;;  %v5876_v41 = vld [vmem:[#allocation10 + $0xa8] sm:$0xff]  }
 0x15b   : > { %5359 = vmatmul.mubr.msk.bf16.gmra.mrb[4].mxu0 %vm670_vm8, %v4908_v43  ;;  %v1987_v43 = vshll.u32 %v1902_v36, 16  ;;  %v4938_v56 = vcombine.low %v2180_v48, %v2184_v49  ;;  %v580_v42 = vld [vmem:[#allocation3] sm:$0x1]  ;;  %v5887_v37 = vld [vmem:[#allocation10 + $0xc8] sm:$0xff]  }
 0x15c   : > { %5364 = vmatprep.mubr.msk.bf16.mxu0 %vm670_vm8, %v5861_v47  ;;  %v5864_v47 = vld [vmem:[#allocation2 + $0x40] ss:$8 sps:$4 sm:$0xff]   ;;  %v2018_v31 = vsel %vm6513_vm11, %v2013_v22, %v2017_v10  ;;  %v2200_v63 = vsel %vm6541_vm14, %v4936_v19, %v2199_v62 }
 0x15d   : > { %v5869_v10 = vld [vmem:[#allocation10 + $0x10] sm:$0xff]   ;;  %v5871_v22 = vld [vmem:[#allocation10 + $0x18] sm:$0xff]  }
 0x15e   : > { %v5879_v49 = vld [vmem:[#allocation10 + $0x38] sm:$0xff]  }
 0x163   : > { %5365 = vmatmul.mubr.msk.bf16.vlgmr.msra.gmra.mrb[0].mxu0 %vm670_vm8, %v5862_v51 }
 0x164   : > { %5373 = vmatpush3.bf16.msra.mxu0 %v2046_v61  ;;  %5368 = vmatprep.mubr.msk.bf16.mxu0 %vm670_vm8, %v5863_v58  ;;  %v1989_v61 = vrot.slane %v1987_v43, 5  ;;  %v2139_v58 = vld [vmem:[#allocation2 + $0x18] sm:$0xe]  ;;  %v4933_v43 = vrot.slane %v2145_v5, 9  ;;  %v635_v5 = vld [vmem:[#allocation3 + $0x44] sm:$0x1] }
 0x165   : > { %5760 = vmatprep.subr.msk.bf16.mxu0 %vm683_vm6, %v6645_v6  ;;  %v4930_v25 = vrot.slane %v2139_v58, 9  ;;  %v2004_v6 = vsel %vm6513_vm11, %v1999_v20, %v2003_v21  ;;  %v5868_v58 = vld [vmem:[#allocation10 + $0x88] sm:$0xff]   ;;  %v617_v20 = vld [vmem:[#allocation3 + $0x14] sm:$0x1]  ;;  %v636_v17 = vsel %vm6607_vm1, 0, %v635_v5 }
 0x166   : > { %v1990_v51 = vsel %vm6513_vm11, %v1985_v60, %v1989_v61  ;;  %v4924_v39 = vcombine.low %v2004_v6, %v2018_v31  ;;  %v2188_v32 = vsel %vm6541_vm14, %v4933_v43, %v2187_v44  ;;  %v2195_v61 = vrot.slane %v2150_v52, 5  ;;  %5442 = vmatprep.subr.bf16.mxu1 %v5868_v58  ;;  %v5870_v21 = vld [vmem:[#allocation10 + $0x90] sm:$0xff]   ;;  %v595_v6 = vld [vmem:[#allocation3 + $0x28] sm:$0x1]  ;;  %v626_v31 = vld [vmem:[#allocation3 + $0x2c] sm:$0x1] }
 0x167   : > { %v4923_v16 = vcombine.low %v1976_v3, %v1990_v51  ;;  %v2176_v36 = vsel %vm6541_vm14, %v4930_v25, %v2175_v28  ;;  %v584_v3 = vsel %vm6600_vm0, 0, %v583_v1  ;;  %v615_v51 = vsel %vm6607_vm1, 0, %v614_v2  ;;  %5443 = vmatpush3.bf16.msra.mxu1 %v5868_v58  ;;  %v601_v25 = vld [vmem:[#allocation3 + $0x38] sm:$0x1]  ;;  %v632_v28 = vld [vmem:[#allocation3 + $0x3c] sm:$0x1] }
 0x168   : > { %v4937_v15 = vcombine.low %v2172_v26, %v2176_v36  ;;  %v2196_v18 = vsel %vm6541_vm14, %v4935_v57, %v2195_v61  ;;  %585 = vst [vmem:[#allocation3 + $0x8] sm:$0x1] %v584_v3  ;;  %616 = vst [vmem:[#allocation3 + $0xc] sm:$0x1] %v615_v51  ;;  %v618_v24 = vsel %vm6607_vm1, 0, %v617_v20  ;;  %5444 = vmatprep.subr.bf16.mxu1 %v5870_v21  ;;  %v602_v29 = vsel %vm6600_vm0, 0, %v601_v25 }
 0x169   : > { %v4940_v0 = vcombine.low %v2196_v18, %v2200_v63  ;;  %619 = vst [vmem:[#allocation3 + $0x14] sm:$0x1] %v618_v24  ;;  %v633_v30 = vsel %vm6607_vm1, 0, %v632_v28  ;;  %603 = vst [vmem:[#allocation3 + $0x38] sm:$0x1] %v602_v29  ;;  %v596_v33 = vsel %vm6600_vm0, 0, %v595_v6 }
 0x16a   : > { %634 = vst [vmem:[#allocation3 + $0x3c] sm:$0x1] %v633_v30  ;;  %v627_v35 = vsel %vm6607_vm1, 0, %v626_v31  ;;  %597 = vst [vmem:[#allocation3 + $0x28] sm:$0x1] %v596_v33  ;;  %v5872_v36 = vld [vmem:[#allocation10 + $0x98] sm:$0xff]  }
 0x16b   : > { %5369 = vmatmul.mubr.msk.bf16.gmra.mrb[4].mxu0 %vm670_vm8, %v5864_v47  ;;  %v2191_v47 = vrot.slane %v2148_v38, 5  ;;  %5445 = vmatpush3.bf16.msra.mxu1 %v5870_v21  ;;  %628 = vst [vmem:[#allocation3 + $0x2c] sm:$0x1] %v627_v35  ;;  %v598_v38 = vld [vmem:[#allocation3 + $0x30] sm:$0x1]  ;;  %v5877_v43 = vld [vmem:[#allocation10 + $0x30] sm:$0xff]  }
 0x16c   : > { %5374 = vmatprep.mubr.msk.bf16.mxu0 %vm670_vm8, %v4921_v50  ;;  %5446 = vmatprep.subr.bf16.mxu1 %v5872_v36  ;;  %637 = vst [vmem:[#allocation3 + $0x44] sm:$0x1] %v636_v17  ;;  %v599_v26 = vsel %vm6600_vm0, 0, %v598_v38  ;;  %v581_v44 = vsel %vm6600_vm0, 0, %v580_v42  ;;  %v607_v52 = vld [vmem:[#allocation3 + $0x48] sm:$0x1] }
 0x16d   : > { %v2192_v50 = vsel %vm6541_vm14, %v4934_v45, %v2191_v47  ;;  %600 = vst [vmem:[#allocation3 + $0x30] sm:$0x1] %v599_v26  ;;  %v5878_v45 = vld [vmem:[#allocation10 + $0xb0] sm:$0xff]   ;;  %582 = vst [vmem:[#allocation3] sm:$0x1] %v581_v44  ;;  %v608_v54 = vsel %vm6600_vm0, 0, %v607_v52 }
 0x16e   : > { %v4939_v60 = vcombine.low %v2188_v32, %v2192_v50  ;;  %v611_v47 = vld [vmem:[#allocation3 + $0x4] sm:$0x1]  ;;  %609 = vst [vmem:[#allocation3 + $0x48] sm:$0x1] %v608_v54  ;;  %v6739_v57 = vld [vmem:[%s7021_s2] ss:$0 sm:$0xff] }
 0x16f   : > { %5447 = vmatpush3.bf16.msra.mxu1 %v5872_v36  ;;  %v612_v48 = vsel %vm6607_vm1, 0, %v611_v47  ;;  %v6726_v32 = vld [vmem:[#allocation10 + $0x40] sm:$0xff]   ;;  %v2469_v21 = vld [vmem:[#allocation3 + $0x18] sm:$0xf]  ;;  %v2460_v5 = vld [vmem:[#allocation3 + $0xc] sm:$0x1] }
 0x170   : > { %613 = vst [vmem:[#allocation3 + $0x4] sm:$0x1] %v612_v48  ;;  %v6728_v50 = vld [vmem:[#allocation10 + $0xc0] sm:$0xff]  }
 0x171   : > { %v2457_v6 = vld [vmem:[#allocation3 + $0x8] sm:$0xf] }
 0x173   : > { %5375 = vmatmul.mubr.msk.bf16.vlgmr.msra.gmra.mrb[0].mxu0 %vm670_vm8, %v4922_v4  ;;  %v593_v4 = vsel %vm6600_vm0, 0, %v592_v23 }
 0x174   : > { %5383 = vmatpush3.bf16.msra.mxu0 %v2228_v9  ;;  %5378 = vmatprep.mubr.msk.bf16.mxu0 %vm670_vm8, %v4923_v16  ;;  %v623_v9 = vld [vmem:[#allocation3 + $0x24] sm:$0x1]  ;;  %594 = vst [vmem:[#allocation3 + $0x20] sm:$0x1] %v593_v4  ;;  %v587_v16 = vsel %vm6600_vm0, 0, %v586_v11 }
 0x175   : > { %5392 = vmatprep.subr.bf16.mxu0 %v5865_v14  ;;  %588 = vst [vmem:[#allocation3 + $0x10] sm:$0x1] %v587_v16  ;;  %v6744_v46 = vld [vmem:[#allocation3] sm:$0xf] }
 0x177   : > { %v6747_v3 = vld [vmem:[#allocation3 + $0x4] sm:$0x1] }
 0x178   : > { %v2700_v16 = vshll.u32 %v6747_v3, 16 }
 0x17b   : > { %5379 = vmatmul.mubr.msk.bf16.gmra.mrb[4].mxu0 %vm670_vm8, %v4924_v39  ;;  %v629_v39 = vld [vmem:[#allocation3 + $0x34] sm:$0x1] }
 0x17c   : > { %5384 = vmatprep.mubr.msk.bf16.mxu0 %vm670_vm8, %v4937_v15  ;;  %v630_v40 = vsel %vm6607_vm1, 0, %v629_v39  ;;  %v5874_v15 = vld [vmem:[#allocation10 + $0xa0] sm:$0xff]   ;;  %v2463_v54 = vld [vmem:[#allocation3 + $0x10] sm:$0xf] }
 0x17d   : > { %631 = vst [vmem:[#allocation3 + $0x34] sm:$0x1] %v630_v40  ;;  %5448 = vmatprep.subr.bf16.mxu1 %v5874_v15 }
 0x17e   : > { %5449 = vmatpush3.bf16.msra.mxu1 %v5874_v15 }
 0x17f   : > { %5450 = vmatprep.subr.bf16.mxu1 %v5876_v41 }
 0x182   : > { %5451 = vmatpush3.bf16.msra.mxu1 %v5876_v41 }
 0x183   : > { %5385 = vmatmul.mubr.msk.bf16.vlgmr.msra.gmra.mrb[0].mxu0 %vm670_vm8, %v4938_v56  ;;  %5452 = vmatprep.subr.bf16.mxu1 %v5878_v45  ;;  %v639_v56 = vsel %vm6607_vm1, 0, %v638_v53 }
 0x184   : > { %5388 = vmatprep.mubr.msk.bf16.mxu0 %vm670_vm8, %v4939_v60  ;;  %5393 = vmatpush3.bf16.msra.mxu0 %v5865_v14  ;;  %v624_v14 = vsel %vm6607_vm1, 0, %v623_v9  ;;  %640 = vst [vmem:[#allocation3 + $0x4c] sm:$0x1] %v639_v56  ;;  %v2691_v9 = vshrl.u32 %v6744_v46, 16  ;;  %v2466_v56 = vld [vmem:[#allocation3 + $0x14] sm:$0x1] }
 0x185   : > { %5394 = vmatprep.subr.bf16.mxu0 %v5867_v59  ;;  %625 = vst [vmem:[#allocation3 + $0x24] sm:$0x1] %v624_v14  ;;  %v2694_v14 = vshll.u32 %v6744_v46, 16 }
 0x186   : > { %5453 = vmatpush3.bf16.msra.mxu1 %v5878_v45 }
 0x187   : > { %5454 = vmatprep.subr.bf16.mxu1 %v5881_v34 }
 0x188   : > { %5395 = vmatpush3.bf16.msra.mxu0 %v5867_v59 }
 0x189   : > { %5396 = vmatprep.subr.bf16.mxu0 %v5869_v10 }
 0x18a   : > { %5455 = vmatpush3.bf16.msra.mxu1 %v5881_v34 }
 0x18b   : > { %5389 = vmatmul.mubr.msk.bf16.gmra.mrb[4].mxu0 %vm670_vm8, %v4940_v0  ;;  %5464 = vmatprep.subr.bf16.mxu1 %v6728_v50 }
 0x18c   : > { %5397 = vmatpush3.bf16.msra.mxu0 %v5869_v10  ;;  %v2478_v45 = vld [vmem:[#allocation3 + $0x24] sm:$0x1] }
 0x18d   : > { %5398 = vmatprep.subr.bf16.mxu0 %v5871_v22 }
 0x190   : > { %5399 = vmatpush3.bf16.msra.mxu0 %v5871_v22  ;;  %v2472_v22 = vld [vmem:[#allocation3 + $0x1c] sm:$0x1] }
 0x191   : > { %5400 = vmatprep.subr.bf16.mxu0 %v5873_v12 }
 0x194   : > { %5401 = vmatpush3.bf16.msra.mxu0 %v5873_v12 }
 0x195   : > { %5402 = vmatprep.subr.bf16.mxu0 %v5875_v27 }
 0x198   : > { %5403 = vmatpush3.bf16.msra.mxu0 %v5875_v27  ;;  %v2475_v27 = vld [vmem:[#allocation3 + $0x20] sm:$0xf] }
 0x199   : > { %5404 = vmatprep.subr.bf16.mxu0 %v5877_v43 }
 0x19c   : > { %5405 = vmatpush3.bf16.msra.mxu0 %v5877_v43 }
 0x19d   : > { %5406 = vmatprep.subr.bf16.mxu0 %v5879_v49 }
 0x1a0   : > { %5407 = vmatpush3.bf16.msra.mxu0 %v5879_v49 }
 0x1a1   : > { %5416 = vmatprep.subr.bf16.mxu0 %v6726_v32 }
 0x256   : > { %v5386_v59 = vpop.f32.mrb[0].mxu0 }
 0x257   : > { %v2336_v60 = vadd.f32 %v5386_v59, %v6739_v57  ;;  %v2264_v61 = vpop.f32.mrb[1].mxu0 }
 0x258   : > { %v2334_v19 = vadd.f32 %v6739_v57, %v2264_v61  ;;  %v5387_v62 = vpop.f32.mrb[2].mxu0 }
 0x259   : > { %v2344_v18 = vmax.f32 %v2336_v60, 0.0  ;;  %v2337_v63 = vadd.f32 %v5387_v62, %v6739_v57  ;;  %v2267_v0 = vpop.f32.mrb[3].mxu0  ;;  %v6768_v62 = vld [vmem:[#allocation3] sm:$0xe] }
 0x25a   : > { %v2342_v1 = vmax.f32 %v2334_v19, 0.0  ;;  %v2335_v2 = vadd.f32 %v6739_v57, %v2267_v0 }
 0x25b   : > { %v5111_v51 = vpack.c.bf16 %v2344_v18, %v2344_v18  ;;  %v2345_v58 = vmax.f32 %v2337_v63, 0.0 }
 0x25c   : > { %v5109_v23 = vpack.c.bf16 %v2342_v1, %v2342_v1  ;;  %v2343_v4 = vmax.f32 %v2335_v2, 0.0  ;;  %v2973_v2 = vld [vmem:[#allocation3 + $0x4] sm:$0x1] }
 0x25d   : > { %v2391_v10 = vshrl.u32 %v5111_v51, 16  ;;  %v5112_v11 = vpack.c.bf16 %v2345_v58, %v2345_v58  ;;  %v2394_v20 = vshll.u32 %v5111_v51, 16 }
 0x25e   : > { %v2375_v24 = vshrl.u32 %v5109_v23, 16  ;;  %v2378_v25 = vshll.u32 %v5109_v23, 16  ;;  %v5110_v28 = vpack.c.bf16 %v2343_v4, %v2343_v4  ;;  %v5390_v29 = vpop.f32.mrb[4].mxu0 }
 0x25f   : > { %v2393_v30 = vrot.slane %v2391_v10, 7  ;;  %v2399_v31 = vshrl.u32 %v5112_v11, 16  ;;  %v2402_v33 = vshll.u32 %v5112_v11, 16  ;;  %v2340_v35 = vadd.f32 %v5390_v29, %v6739_v57  ;;  %v2280_v36 = vpop.f32.mrb[5].mxu0 }
 0x260   : > { %v2377_v8 = vrot.slane %v2375_v24, 7  ;;  %v2383_v17 = vshrl.u32 %v5110_v28, 16  ;;  %v2386_v12 = vshll.u32 %v5110_v28, 16  ;;  %v2338_v38 = vadd.f32 %v6739_v57, %v2280_v36  ;;  %v5391_v39 = vpop.f32.mrb[6].mxu0 }
 0x261   : > { %v2396_v26 = vor.u32 %v2394_v20, %v2393_v30  ;;  %v2397_v40 = vrot.slane %v2393_v30, 4  ;;  %v2401_v15 = vrot.slane %v2399_v31, 7  ;;  %v2348_v41 = vmax.f32 %v2340_v35, 0.0  ;;  %v2283_v42 = vpop.f32.mrb[7].mxu0  ;;  %v2484_v35 = vld [vmem:[#allocation3 + $0x2c] sm:$0x1] }
 0x262   : > { %v2380_v43 = vor.u32 %v2378_v25, %v2377_v8  ;;  %v2381_v44 = vrot.slane %v2377_v8, 4  ;;  %v2385_v47 = vrot.slane %v2383_v17, 7  ;;  %v2346_v48 = vmax.f32 %v2338_v38, 0.0 }
 0x263   : > { %v2470_v49 = vsel %vm6755_vm4, %v2396_v26, %v2469_v21  ;;  %v2473_v34 = vsel %vm6600_vm0, %v2397_v40, %v2472_v22  ;;  %v2404_v52 = vor.u32 %v2402_v33, %v2401_v15  ;;  %v2405_v53 = vrot.slane %v2401_v15, 4  ;;  %v2493_v21 = vld [vmem:[#allocation3 + $0x38] sm:$0xf] }
 0x264   : > { %2471 = vst [vmem:[#allocation3 + $0x18] sm:$0xf] %v2470_v49  ;;  %2474 = vst [vmem:[#allocation3 + $0x1c] sm:$0x1] %v2473_v34  ;;  %v2458_v59 = vsel %vm6755_vm4, %v2380_v43, %v2457_v6  ;;  %v2461_v60 = vsel %vm6600_vm0, %v2381_v44, %v2460_v5  ;;  %v2388_v61 = vor.u32 %v2386_v12, %v2385_v47  ;;  %v2389_v19 = vrot.slane %v2385_v47, 4 }
 0x265   : > { %2459 = vst [vmem:[#allocation3 + $0x8] sm:$0xf] %v2458_v59  ;;  %2462 = vst [vmem:[#allocation3 + $0xc] sm:$0x1] %v2461_v60  ;;  %v2476_v18 = vsel %vm6755_vm4, %v2404_v52, %v2475_v27  ;;  %v2479_v63 = vsel %vm6600_vm0, %v2405_v53, %v2478_v45  ;;  %v5115_v0 = vpack.c.bf16 %v2348_v41, %v2348_v41  ;;  %v4978_v20 = vrot.slane %v6768_v62, 9  ;;  %v6793_v41 = vld [vmem:[#allocation10 + $0x48] sm:$0xff]  }
 0x266   : > { %v5113_v1 = vpack.c.bf16 %v2346_v48, %v2346_v48  ;;  %2477 = vst [vmem:[#allocation3 + $0x20] sm:$0xf] %v2476_v18  ;;  %2480 = vst [vmem:[#allocation3 + $0x24] sm:$0x1] %v2479_v63  ;;  %v2464_v51 = vsel %vm6755_vm4, %v2388_v61, %v2463_v54  ;;  %v2467_v58 = vsel %vm6600_vm0, %v2389_v19, %v2466_v56  ;;  %v3006_v25 = vrot.slane %v2973_v2, 5 }
 0x267   : > { %v2341_v23 = vadd.f32 %v5391_v39, %v6739_v57  ;;  %v2339_v4 = vadd.f32 %v6739_v57, %v2283_v42  ;;  %2465 = vst [vmem:[#allocation3 + $0x10] sm:$0xf] %v2464_v51  ;;  %2468 = vst [vmem:[#allocation3 + $0x14] sm:$0x1] %v2467_v58  ;;  %v2423_v10 = vshrl.u32 %v5115_v0, 16  ;;  %v6783_v28 = vrot.slane %v2691_v9, 4 }
 0x268   : > { %v2407_v11 = vshrl.u32 %v5113_v1, 16  ;;  %v2426_v30 = vshll.u32 %v5115_v0, 16  ;;  %v2496_v6 = vld [vmem:[#allocation3 + $0x3c] sm:$0x1]  ;;  %v2410_v33 = vshll.u32 %v5113_v1, 16  ;;  %v6787_v5 = vrot.slane %v2694_v14, 5 }
 0x269   : > { %v2349_v22 = vmax.f32 %v2341_v23, 0.0  ;;  %v2347_v24 = vmax.f32 %v2339_v4, 0.0  ;;  %v2425_v29 = vrot.slane %v2423_v10, 7  ;;  %v2481_v57 = vld [vmem:[#allocation3 + $0x28] sm:$0xf]  ;;  %v6791_v17 = vrot.slane %v2700_v16, 5 }
 0x26a   : > { %v2409_v31 = vrot.slane %v2407_v11, 7  ;;  %v2499_v43 = vld [vmem:[#allocation3 + $0x40] sm:$0xf]  ;;  %v2502_v44 = vld [vmem:[#allocation3 + $0x44] sm:$0x1]  ;;  %v3007_v56 = vsel %vm6541_vm14, %v4978_v20, %v3006_v25  ;;  %v2697_v62 = vor.u32 %v6787_v5, %v6783_v28  ;;  %v5888_v10 = vld [vmem:[#allocation10 + $0x50] sm:$0xff]  }
 0x26b   : > { %v5116_v36 = vpack.c.bf16 %v2349_v22, %v2349_v22  ;;  %v5114_v8 = vpack.c.bf16 %v2347_v24, %v2347_v24  ;;  %v2428_v12 = vor.u32 %v2426_v30, %v2425_v29  ;;  %v2429_v9 = vrot.slane %v2425_v29, 4  ;;  %v6795_v42 = vld [vmem:[#allocation3 + $0x18] sm:$0xe]  ;;  %v2487_v45 = vld [vmem:[#allocation3 + $0x30] sm:$0xf] }
 0x26c   : > { %v2412_v38 = vor.u32 %v2410_v33, %v2409_v31  ;;  %v2413_v39 = vrot.slane %v2409_v31, 4  ;;  %v2490_v47 = vld [vmem:[#allocation3 + $0x34] sm:$0x1]  ;;  %v5880_v48 = vld [vmem:[#allocation3] ss:$8 sps:$4 sm:$0xff]   ;;  %v4981_v4 = vrot.slane %v6795_v42, 9 }
 0x26d   : > { %v2431_v26 = vshrl.u32 %v5116_v36, 16  ;;  %v2434_v40 = vshll.u32 %v5116_v36, 16  ;;  %v2415_v15 = vshrl.u32 %v5114_v8, 16  ;;  %v2418_v27 = vshll.u32 %v5114_v8, 16  ;;  %v2974_v49 = vld [vmem:[#allocation3 + $0x8] sm:$0xe]  ;;  %5408 = vmatprep.mubr.bf16.mxu0 %v5880_v48 }
 0x26e   : > { %v2494_v46 = vsel %vm6755_vm4, %v2428_v12, %v2493_v21  ;;  %v2497_v3 = vsel %vm6600_vm0, %v2429_v9, %v2496_v6  ;;  %v2482_v14 = vsel %vm6755_vm4, %v2412_v38, %v2481_v57  ;;  %v2485_v16 = vsel %vm6600_vm0, %v2413_v39, %v2484_v35  ;;  %v2975_v34 = vld [vmem:[#allocation3 + $0xc] sm:$0x1]  ;;  %v5883_v54 = vld [vmem:[#allocation3 + $0x10] ss:$8 sps:$4 sm:$0xff]   ;;  %v2977_v19 = vld [vmem:[#allocation3 + $0x14] sm:$0x1] }
 0x26f   : > { %2495 = vst [vmem:[#allocation3 + $0x38] sm:$0xf] %v2494_v46  ;;  %2498 = vst [vmem:[#allocation3 + $0x3c] sm:$0x1] %v2497_v3  ;;  %v2433_v52 = vrot.slane %v2431_v26, 7  ;;  %v2417_v53 = vrot.slane %v2415_v15, 7  ;;  %5409 = vmatmul.mubr.bf16.vlgmr.msra.gmra.mrb[8].mxu0 %v5883_v54 }
 0x270   : > { %2483 = vst [vmem:[#allocation3 + $0x28] sm:$0xf] %v2482_v14  ;;  %2486 = vst [vmem:[#allocation3 + $0x2c] sm:$0x1] %v2485_v16  ;;  %v4979_v59 = vrot.slane %v2974_v49, 9  ;;  %v3010_v60 = vrot.slane %v2975_v34, 5  ;;  %5417 = vmatpush3.bf16.msra.mxu0 %v6726_v32 }
 0x271   : > { %v2976_v61 = vld [vmem:[#allocation3 + $0x10] sm:$0xe]  ;;  %v2436_v18 = vor.u32 %v2434_v40, %v2433_v52  ;;  %v2437_v63 = vrot.slane %v2433_v52, 4  ;;  %v2420_v0 = vor.u32 %v2418_v27, %v2417_v53  ;;  %v2421_v1 = vrot.slane %v2417_v53, 4  ;;  %v2979_v2 = vld [vmem:[#allocation3 + $0x1c] sm:$0x1]  ;;  %5418 = vmatprep.subr.bf16.mxu0 %v6793_v41 }
 0x272   : > { %v3011_v51 = vsel %vm6541_vm14, %v4979_v59, %v3010_v60  ;;  %v4980_v58 = vrot.slane %v2976_v61, 9  ;;  %v3014_v23 = vrot.slane %v2977_v19, 5  ;;  %v2676_v11 = vld [vmem:[#allocation3 + $0x8] sm:$0xf]  ;;  %v2677_v24 = vld [vmem:[#allocation3 + $0xc] sm:$0x1] }
 0x273   : > { %v2500_v20 = vsel %vm6755_vm4, %v2436_v18, %v2499_v43  ;;  %v2503_v21 = vsel %vm6600_vm0, %v2437_v63, %v2502_v44  ;;  %v2488_v22 = vsel %vm6755_vm4, %v2420_v0, %v2487_v45  ;;  %v2491_v32 = vsel %vm6600_vm0, %v2421_v1, %v2490_v47  ;;  %v2980_v25 = vld [vmem:[#allocation3 + $0x20] sm:$0xe]  ;;  %v2981_v28 = vld [vmem:[#allocation3 + $0x24] sm:$0x1]  ;;  %v5890_v16 = vld [vmem:[#allocation10 + $0xd0] sm:$0xff]  }
 0x274   : > { %2501 = vst [vmem:[#allocation3 + $0x40] sm:$0xf] %v2500_v20  ;;  %2504 = vst [vmem:[#allocation3 + $0x44] sm:$0x1] %v2503_v21  ;;  %v4986_v29 = vcombine.low %v3007_v56, %v3011_v51  ;;  %v3015_v30 = vsel %vm6541_vm14, %v4980_v58, %v3014_v23  ;;  %v3018_v6 = vrot.slane %v2979_v2, 5  ;;  %v2705_v31 = vshrl.u32 %v2676_v11, 16  ;;  %5419 = vmatpush3.bf16.msra.mxu0 %v6793_v41 }
 0x275   : > { %2489 = vst [vmem:[#allocation3 + $0x30] sm:$0xf] %v2488_v22  ;;  %2492 = vst [vmem:[#allocation3 + $0x34] sm:$0x1] %v2491_v32  ;;  %v2698_v33 = vrot.slane %v2697_v62, 4  ;;  %v2708_v57 = vshll.u32 %v2676_v11, 16  ;;  %5420 = vmatprep.subr.bf16.mxu0 %v5888_v10 }
 0x276   : > { %v2714_v55 = vshll.u32 %v2677_v24, 16  ;;  %v4982_v35 = vrot.slane %v2980_v25, 9  ;;  %5456 = vmatprep.mubr.bf16.mxu1 %v4986_v29  ;;  %v3019_v36 = vsel %vm6541_vm14, %v4981_v4, %v3018_v6  ;;  %v2707_v12 = vrot.slane %v2705_v31, 4  ;;  %v5891_v26 = vld [vmem:[#allocation10 + $0x58] sm:$0xff]   ;;  %v5894_v44 = vld [vmem:[#allocation10 + $0x60] sm:$0xff]  }
 0x277   : > { %v5886_v8 = vld [vmem:[#allocation3 + $0x20] ss:$8 sps:$4 sm:$0xff]   ;;  %v4987_v5 = vcombine.low %v3015_v30, %v3019_v36  ;;  %v2710_v9 = vrot.slane %v2708_v57, 5  ;;  %v3022_v39 = vrot.slane %v2981_v28, 5  ;;  %v2983_v40 = vld [vmem:[#allocation3 + $0x2c] sm:$0x1]  ;;  %v2703_v41 = vsel %vm6513_vm11, %v2698_v33, %v6791_v17 }
 0x278   : > { %v2982_v38 = vld [vmem:[#allocation3 + $0x28] sm:$0xe]  ;;  %5412 = vmatprep.mubr.bf16.mxu0 %v5886_v8  ;;  %v2986_v27 = vld [vmem:[#allocation3 + $0x38] sm:$0xe]  ;;  %v3026_v46 = vrot.slane %v2983_v40, 5  ;;  %5421 = vmatpush3.bf16.msra.mxu0 %v5888_v10  ;;  %v2716_v14 = vrot.slane %v2714_v55, 5 }
 0x279   : > { %v4983_v15 = vrot.slane %v2982_v38, 9  ;;  %5457 = vmatmul.mubr.bf16.vlgmr.msra.gmra.mrb[0].mxu1 %v4987_v5  ;;  %v2711_v42 = vor.u32 %v2710_v9, %v2707_v12  ;;  %v2987_v3 = vld [vmem:[#allocation3 + $0x3c] sm:$0x1]  ;;  %v4985_v43 = vrot.slane %v2986_v27, 9  ;;  %v2678_v45 = vld [vmem:[#allocation3 + $0x10] sm:$0xf]  ;;  %v3023_v49 = vsel %vm6541_vm14, %v4982_v35, %v3022_v39  ;;  %5422 = vmatprep.subr.bf16.mxu0 %v5891_v26 }
 0x27a   : > { %5465 = vmatpush3.bf16.msra.mxu1 %v6728_v50  ;;  %v3034_v50 = vrot.slane %v2987_v3, 5  ;;  %v2680_v17 = vld [vmem:[#allocation3 + $0x18] sm:$0xf]  ;;  %v2719_v19 = vshrl.u32 %v2678_v45, 16  ;;  %v2722_v62 = vshll.u32 %v2678_v45, 16  ;;  %v5896_v10 = vld [vmem:[#allocation10 + $0x68] sm:$0xff]  }
 0x27b   : > { %5466 = vmatprep.subr.bf16.mxu1 %v5887_v37  ;;  %v2712_v48 = vrot.slane %v2711_v42, 4  ;;  %v3027_v34 = vsel %vm6541_vm14, %v4983_v15, %v3026_v46  ;;  %v2682_v18 = vld [vmem:[#allocation3 + $0x20] sm:$0xf]  ;;  %v2733_v1 = vshrl.u32 %v2680_v17, 16  ;;  %v2736_v2 = vshll.u32 %v2680_v17, 16  ;;  %v5898_v30 = vld [vmem:[#allocation10 + $0x70] sm:$0xff]  }
 0x27c   : > { %v5889_v47 = vld [vmem:[#allocation3 + $0x30] ss:$8 sps:$4 sm:$0xff]   ;;  %v4988_v52 = vcombine.low %v3023_v49, %v3027_v34  ;;  %v2985_v54 = vld [vmem:[#allocation3 + $0x34] sm:$0x1]  ;;  %v3035_v0 = vsel %vm6541_vm14, %v4985_v43, %v3034_v50  ;;  %5423 = vmatpush3.bf16.msra.mxu0 %v5891_v26  ;;  %v2684_v51 = vld [vmem:[#allocation3 + $0x28] sm:$0xf] }
 0x27d   : > { %v2984_v53 = vld [vmem:[#allocation3 + $0x30] sm:$0xe]  ;;  %5413 = vmatmul.mubr.bf16.gmra.mrb[12].mxu0 %v5889_v47  ;;  %v2717_v56 = vsel %vm6513_vm11, %v2712_v48, %v2716_v14  ;;  %v3030_v60 = vrot.slane %v2985_v54, 5  ;;  %v5893_v23 = vld [vmem:[#allocation10 + $0xd8] sm:$0xff]   ;;  %5424 = vmatprep.subr.bf16.mxu0 %v5894_v44  ;;  %v2747_v11 = vshrl.u32 %v2682_v18, 16  ;;  %v2750_v20 = vshll.u32 %v2682_v18, 16 }
 0x27e   : > { %v4984_v59 = vrot.slane %v2984_v53, 9  ;;  %5467 = vmatpush3.bf16.msra.mxu1 %v5887_v37  ;;  %v4966_v61 = vcombine.low %v2703_v41, %v2717_v56  ;;  %5460 = vmatprep.mubr.bf16.mxu1 %v4988_v52  ;;  %v5892_v4 = vld [vmem:[#allocation3 + $0x8] ss:$8 sps:$4 sm:$0xff]   ;;  %v2721_v21 = vrot.slane %v2719_v19, 4  ;;  %v2724_v22 = vrot.slane %v2722_v62, 5  ;;  %v5900_v46 = vld [vmem:[#allocation10 + $0x78] sm:$0xff]  }
 0x27f   : > { %5468 = vmatprep.subr.bf16.mxu1 %v5890_v16  ;;  %v2761_v32 = vshrl.u32 %v2684_v51, 16  ;;  %v2764_v24 = vshll.u32 %v2684_v51, 16  ;;  %v2735_v25 = vrot.slane %v2733_v1, 4  ;;  %v2738_v28 = vrot.slane %v2736_v2, 5  ;;  %v5895_v29 = vld [vmem:[#allocation10 + $0xe0] sm:$0xff]   ;;  %v5897_v39 = vld [vmem:[#allocation10 + $0xe8] sm:$0xff]  }
 0x280   : > { %v3031_v63 = vsel %vm6541_vm14, %v4984_v59, %v3030_v60  ;;  %5432 = vmatprep.mubr.bf16.mxu0 %v4966_v61  ;;  %5425 = vmatpush3.bf16.msra.mxu0 %v5894_v44  ;;  %v2749_v6 = vrot.slane %v2747_v11, 4  ;;  %v2752_v31 = vrot.slane %v2750_v20, 5  ;;  %v2679_v57 = vld [vmem:[#allocation3 + $0x14] sm:$0x1]  ;;  %v2685_v55 = vld [vmem:[#allocation3 + $0x2c] sm:$0x1]  ;;  %v2725_v36 = vor.u32 %v2724_v22, %v2721_v21 }
 0x281   : > { %v4989_v58 = vcombine.low %v3031_v63, %v3035_v0  ;;  %v2763_v37 = vrot.slane %v2761_v32, 4  ;;  %v2766_v33 = vrot.slane %v2764_v24, 5  ;;  %5426 = vmatprep.subr.bf16.mxu0 %v5896_v10  ;;  %v2686_v35 = vld [vmem:[#allocation3 + $0x30] sm:$0xf]  ;;  %v2688_v8 = vld [vmem:[#allocation3 + $0x38] sm:$0xf]  ;;  %v2739_v40 = vor.u32 %v2738_v28, %v2735_v25 }
 0x282   : > { %5469 = vmatpush3.bf16.msra.mxu1 %v5890_v16  ;;  %v2681_v5 = vld [vmem:[#allocation3 + $0x1c] sm:$0x1]  ;;  %v2775_v9 = vshrl.u32 %v2686_v35, 16  ;;  %v2778_v38 = vshll.u32 %v2686_v35, 16  ;;  %v2728_v26 = vshll.u32 %v2679_v57, 16  ;;  %v2753_v27 = vor.u32 %v2752_v31, %v2749_v6  ;;  %v5899_v48 = vld [vmem:[#allocation10 + $0xf0] sm:$0xff]  }
 0x283   : > { %5461 = vmatmul.mubr.bf16.gmra.mrb[4].mxu1 %v4989_v58  ;;  %5470 = vmatprep.subr.bf16.mxu1 %v5893_v23  ;;  %v2767_v12 = vor.u32 %v2766_v33, %v2763_v37  ;;  %v2683_v15 = vld [vmem:[#allocation3 + $0x24] sm:$0x1]  ;;  %v2770_v42 = vshll.u32 %v2685_v55, 16  ;;  %v2789_v3 = vshrl.u32 %v2688_v8, 16  ;;  %v2792_v41 = vshll.u32 %v2688_v8, 16  ;;  %v5901_v1 = vld [vmem:[#allocation10 + $0xf8] sm:$0xff]  }
 0x284   : > { %5480 = vmatprep.mubr.bf16.mxu1 %v5892_v4  ;;  %5427 = vmatpush3.bf16.msra.mxu0 %v5896_v10  ;;  %v2726_v14 = vrot.slane %v2725_v36, 4  ;;  %v2742_v16 = vshll.u32 %v2681_v5, 16  ;;  %v2756_v43 = vshll.u32 %v2683_v15, 16  ;;  %v2777_v45 = vrot.slane %v2775_v9, 4  ;;  %v6841_v50 = vld [vmem:[#allocation10 + $0x200] sm:$0xff]   ;;  %v6852_v25 = vld [vmem:[#allocation10 + $0x208] sm:$0xff]  }
 0x285   : > { %5428 = vmatprep.subr.bf16.mxu0 %v5898_v30  ;;  %v2768_v44 = vrot.slane %v2767_v12, 4  ;;  %v2780_v47 = vrot.slane %v2778_v38, 5  ;;  %v2730_v49 = vrot.slane %v2728_v26, 5  ;;  %v2740_v34 = vrot.slane %v2739_v40, 4  ;;  %v3392_v56 = vld [vmem:[#allocation3 + $0x8] sm:$0xf] }
 0x286   : > { %5471 = vmatpush3.bf16.msra.mxu1 %v5893_v23  ;;  %v2754_v52 = vrot.slane %v2753_v27, 4  ;;  %v2772_v53 = vrot.slane %v2770_v42, 5  ;;  %v2791_v54 = vrot.slane %v2789_v3, 4  ;;  %v2794_v17 = vrot.slane %v2792_v41, 5  ;;  %v3394_v59 = vld [vmem:[#allocation3 + $0x10] sm:$0xf] }
 0x287   : > { %5472 = vmatprep.subr.bf16.mxu1 %v5895_v29  ;;  %v2731_v60 = vsel %vm6513_vm11, %v2726_v14, %v2730_v49  ;;  %v2744_v61 = vrot.slane %v2742_v16, 5  ;;  %v2687_v19 = vld [vmem:[#allocation3 + $0x34] sm:$0x1]  ;;  %v2758_v62 = vrot.slane %v2756_v43, 5  ;;  %v2781_v63 = vor.u32 %v2780_v47, %v2777_v45  ;;  %v2689_v51 = vld [vmem:[#allocation3 + $0x3c] sm:$0x1] }
 0x288   : > { %5429 = vmatpush3.bf16.msra.mxu0 %v5898_v30  ;;  %v2773_v18 = vsel %vm6513_vm11, %v2768_v44, %v2772_v53  ;;  %v3423_v0 = vshrl.u32 %v3394_v59, 16  ;;  %v3409_v58 = vshrl.u32 %v3392_v56, 16  ;;  %v3412_v23 = vshll.u32 %v3392_v56, 16  ;;  %v4409_v22 = vld [vmem:[#allocation3 + $0x10] sm:$0xe]  ;;  %v5904_v33 = vld [vmem:[#allocation10 + $0x100] sm:$0xff]  }
 0x289   : > { %5430 = vmatprep.subr.bf16.mxu0 %v5900_v46  ;;  %v2745_v2 = vsel %vm6513_vm11, %v2740_v34, %v2744_v61  ;;  %v3426_v4 = vshll.u32 %v3394_v59, 16  ;;  %v2759_v11 = vsel %vm6513_vm11, %v2754_v52, %v2758_v62  ;;  %v2784_v20 = vshll.u32 %v2687_v19, 16  ;;  %v4410_v32 = vld [vmem:[#allocation3 + $0x14] sm:$0x1]  ;;  %v4411_v31 = vld [vmem:[#allocation3 + $0x18] sm:$0xe] }
 0x28a   : > { %5473 = vmatpush3.bf16.msra.mxu1 %v5895_v29  ;;  %v4967_v10 = vcombine.low %v2731_v60, %v2745_v2  ;;  %v2795_v21 = vor.u32 %v2794_v17, %v2791_v54  ;;  %v4968_v24 = vcombine.low %v2759_v11, %v2773_v18  ;;  %v3425_v28 = vrot.slane %v3423_v0, 4  ;;  %v4412_v37 = vld [vmem:[#allocation3 + $0x1c] sm:$0x1]  ;;  %v3395_v12 = vld [vmem:[#allocation3 + $0x14] sm:$0x1]  ;;  %v6874_v59 = vld [vmem:[#allocation10 + $0x220] sm:$0xff]  }
 0x28b   : > { %5474 = vmatprep.subr.bf16.mxu1 %v5897_v39  ;;  %v3428_v29 = vrot.slane %v3426_v4, 5  ;;  %v2782_v30 = vrot.slane %v2781_v63, 4  ;;  %v2798_v6 = vshll.u32 %v2689_v51, 16  ;;  %v5066_v57 = vrot.slane %v4409_v22, 9  ;;  %v6856_v9 = vld [vmem:[#allocation10 + $0x210] sm:$0xff]   ;;  %v6868_v49 = vld [vmem:[#allocation10 + $0x218] sm:$0xff]  }
 0x28c   : > { %5431 = vmatpush3.bf16.msra.mxu0 %v5900_v46  ;;  %v4443_v55 = vrot.slane %v4410_v32, 5  ;;  %v3411_v35 = vrot.slane %v3409_v58, 4  ;;  %v3414_v36 = vrot.slane %v3412_v23, 5  ;;  %v2786_v8 = vrot.slane %v2784_v20, 5  ;;  %v3393_v27 = vld [vmem:[#allocation3 + $0xc] sm:$0x1] }
 0x28d   : > { %5584 = vmatprep.subr.bf16.mxu0 %v6841_v50  ;;  %v2796_v5 = vrot.slane %v2795_v21, 4  ;;  %v5067_v38 = vrot.slane %v4411_v31, 9  ;;  %v3429_v26 = vor.u32 %v3428_v29, %v3425_v28  ;;  %v2800_v15 = vrot.slane %v2798_v6, 5  ;;  %v5903_v42 = vld [vmem:[#allocation3 + $0x18] ss:$8 sps:$4 sm:$0xff]   ;;  %v5907_v46 = vld [vmem:[#allocation10 + $0x108] sm:$0xff]  }
 0x28e   : > { %5475 = vmatpush3.bf16.msra.mxu1 %v5897_v39  ;;  %v4447_v39 = vrot.slane %v4412_v37, 5  ;;  %v2787_v40 = vsel %vm6513_vm11, %v2782_v30, %v2786_v8  ;;  %v4444_v3 = vsel %vm6541_vm14, %v5066_v57, %v4443_v55  ;;  %v3415_v41 = vor.u32 %v3414_v36, %v3411_v35  ;;  %v5905_v16 = vld [vmem:[#allocation3 + $0x28] ss:$8 sps:$4 sm:$0xff]   ;;  %v5909_v60 = vld [vmem:[#allocation3 + $0x38] ss:$8 sps:$4 sm:$0xff]  }
 0x28f   : > { %5476 = vmatprep.subr.bf16.mxu1 %v5899_v48  ;;  %5433 = vmatmul.mubr.bf16.vlgmr.msra.gmra.mrb[8].mxu0 %v4967_v10  ;;  %v3432_v14 = vshll.u32 %v3395_v12, 16  ;;  %v2801_v43 = vsel %vm6513_vm11, %v2796_v5, %v2800_v15  ;;  %v3418_v47 = vshll.u32 %v3393_v27, 16  ;;  %v5910_v52 = vld [vmem:[#allocation10 + $0x110] sm:$0xff]   ;;  %v5912_v19 = vld [vmem:[#allocation10 + $0x118] sm:$0xff]   ;;  %v6880_v18 = vld [vmem:[#allocation10 + $0x228] sm:$0xff]  }
 0x290   : > { %5436 = vmatprep.mubr.bf16.mxu0 %v4968_v24  ;;  %5585 = vmatpush3.bf16.msra.mxu0 %v6841_v50  ;;  %v4969_v44 = vcombine.low %v2787_v40, %v2801_v43  ;;  %v4448_v45 = vsel %vm6541_vm14, %v5067_v38, %v4447_v39  ;;  %v3416_v53 = vrot.slane %v3415_v41, 4  ;;  %v3398_v63 = vld [vmem:[#allocation3 + $0x20] sm:$0xf]  ;;  %v6882_v2 = vld [vmem:[#allocation10 + $0x230] sm:$0xff]   ;;  %v3400_v58 = vld [vmem:[#allocation3 + $0x28] sm:$0xf] }
 0x291   : > { %5586 = vmatprep.subr.bf16.mxu0 %v6852_v25  ;;  %v5074_v34 = vcombine.low %v4444_v3, %v4448_v45  ;;  %v3434_v54 = vrot.slane %v3432_v14, 5  ;;  %v3420_v17 = vrot.slane %v3418_v47, 5  ;;  %v5914_v0 = vld [vmem:[#allocation10 + $0x120] sm:$0xff]   ;;  %v3396_v51 = vld [vmem:[#allocation3 + $0x18] sm:$0xf]  ;;  %v3451_v23 = vshrl.u32 %v3398_v63, 16 }
 0x292   : > { %5477 = vmatpush3.bf16.msra.mxu1 %v5899_v48  ;;  %v3430_v48 = vrot.slane %v3429_v26, 4  ;;  %v3454_v4 = vshll.u32 %v3398_v63, 16  ;;  %v5916_v10 = vld [vmem:[#allocation10 + $0x128] sm:$0xff]   ;;  %v4413_v11 = vld [vmem:[#allocation3 + $0x20] sm:$0xe]  ;;  %v3437_v24 = vshrl.u32 %v3396_v51, 16 }
 0x293   : > { %5478 = vmatprep.subr.bf16.mxu1 %v5901_v1  ;;  %v3421_v61 = vsel %vm6513_vm11, %v3416_v53, %v3420_v17  ;;  %v4415_v20 = vld [vmem:[#allocation3 + $0x28] sm:$0xe]  ;;  %v4416_v21 = vld [vmem:[#allocation3 + $0x2c] sm:$0x1]  ;;  %v3440_v28 = vshll.u32 %v3396_v51, 16  ;;  %v6886_v29 = vld [vmem:[#allocation10 + $0x238] sm:$0xff]  }
 0x294   : > { %5587 = vmatpush3.bf16.msra.mxu0 %v6852_v25  ;;  %v3435_v56 = vsel %vm6513_vm11, %v3430_v48, %v3434_v54  ;;  %v4414_v30 = vld [vmem:[#allocation3 + $0x24] sm:$0x1]  ;;  %v3465_v6 = vshrl.u32 %v3400_v58, 16  ;;  %v3468_v31 = vshll.u32 %v3400_v58, 16  ;;  %v5069_v37 = vrot.slane %v4415_v20, 9  ;;  %v5918_v5 = vld [vmem:[#allocation10 + $0x130] sm:$0xff]  }
 0x295   : > { %5588 = vmatprep.subr.bf16.mxu0 %v6856_v9  ;;  %v5010_v62 = vcombine.low %v3421_v61, %v3435_v56  ;;  %v3453_v57 = vrot.slane %v3451_v23, 4  ;;  %v3456_v55 = vrot.slane %v3454_v4, 5  ;;  %v3406_v8 = vld [vmem:[#allocation3 + $0x40] sm:$0xf]  ;;  %v5068_v12 = vrot.slane %v4413_v11, 9 }
 0x296   : > { %5479 = vmatpush3.bf16.msra.mxu1 %v5901_v1  ;;  %v3402_v1 = vld [vmem:[#allocation3 + $0x30] sm:$0xf]  ;;  %v3397_v38 = vld [vmem:[#allocation3 + $0x1c] sm:$0x1]  ;;  %v3439_v39 = vrot.slane %v3437_v24, 4  ;;  %v3442_v26 = vrot.slane %v3440_v28, 5 }
 0x297   : > { %5488 = vmatprep.subr.bf16.mxu1 %v5904_v33  ;;  %5437 = vmatmul.mubr.bf16.gmra.mrb[12].mxu0 %v4969_v44  ;;  %v3479_v22 = vshrl.u32 %v3402_v1, 16  ;;  %v3482_v32 = vshll.u32 %v3402_v1, 16  ;;  %v3399_v40 = vld [vmem:[#allocation3 + $0x24] sm:$0x1]  ;;  %v3467_v15 = vrot.slane %v3465_v6, 4  ;;  %v3470_v27 = vrot.slane %v3468_v31, 5 }
 0x298   : > { %5589 = vmatpush3.bf16.msra.mxu0 %v6856_v9  ;;  %5600 = vmatprep.mubr.bf16.mxu0 %v5074_v34  ;;  %v3457_v3 = vor.u32 %v3456_v55, %v3453_v57  ;;  %v3403_v41 = vld [vmem:[#allocation3 + $0x34] sm:$0x1]  ;;  %v3507_v14 = vshrl.u32 %v3406_v8, 16  ;;  %v3443_v45 = vor.u32 %v3442_v26, %v3439_v39  ;;  %v3460_v47 = vshll.u32 %v3399_v40, 16  ;;  %v3401_v48 = vld [vmem:[#allocation3 + $0x2c] sm:$0x1] }
 0x299   : > { %5481 = vmatmul.mubr.bf16.vlgmr.msra.gmra.mrb[0].mxu1 %v5903_v42  ;;  %5590 = vmatprep.subr.bf16.mxu0 %v6868_v49  ;;  %v3481_v35 = vrot.slane %v3479_v22, 4  ;;  %v3484_v36 = vrot.slane %v3482_v32, 5  ;;  %v3404_v42 = vld [vmem:[#allocation3 + $0x38] sm:$0xf]  ;;  %v3446_v54 = vshll.u32 %v3397_v38, 16  ;;  %v3471_v17 = vor.u32 %v3470_v27, %v3467_v15 }
 0x29a   : > { %5484 = vmatprep.mubr.bf16.mxu1 %v5905_v16  ;;  %5489 = vmatpush3.bf16.msra.mxu1 %v5904_v33  ;;  %v4455_v33 = vrot.slane %v4416_v21, 5  ;;  %v3510_v16 = vshll.u32 %v3406_v8, 16  ;;  %v3493_v34 = vshrl.u32 %v3404_v42, 16  ;;  %v5920_v53 = vld [vmem:[#allocation10 + $0x138] sm:$0xff]   ;;  %v3488_v56 = vshll.u32 %v3403_v41, 16  ;;  %v5922_v8 = vld [vmem:[#allocation10 + $0x148] sm:$0xff]  }
 0x29b   : > { %5490 = vmatprep.subr.bf16.mxu1 %v5907_v46  ;;  %v3485_v44 = vor.u32 %v3484_v36, %v3481_v35  ;;  %v3458_v61 = vrot.slane %v3457_v3, 4  ;;  %v3444_v51 = vrot.slane %v3443_v45, 4  ;;  %v3462_v58 = vrot.slane %v3460_v47, 5  ;;  %v3407_v21 = vld [vmem:[#allocation3 + $0x44] sm:$0x1] }
 0x29c   : > { %5591 = vmatpush3.bf16.msra.mxu0 %v6868_v49  ;;  %v4456_v43 = vsel %vm6541_vm14, %v5069_v37, %v4455_v33  ;;  %v3495_v23 = vrot.slane %v3493_v34, 4  ;;  %v3472_v11 = vrot.slane %v3471_v17, 4  ;;  %v3490_v20 = vrot.slane %v3488_v56, 5  ;;  %v3405_v6 = vld [vmem:[#allocation3 + $0x3c] sm:$0x1] }
 0x29d   : > { %5592 = vmatprep.subr.bf16.mxu0 %v6874_v59  ;;  %v3486_v1 = vrot.slane %v3485_v44, 4  ;;  %v3448_v22 = vrot.slane %v3446_v54, 5  ;;  %v3463_v32 = vsel %vm6513_vm11, %v3458_v61, %v3462_v58  ;;  %v3516_v33 = vshll.u32 %v3407_v21, 16  ;;  %v3692_v57 = vld [vmem:[#allocation3 + $0x10] sm:$0xe] }
 0x29e   : > { %5491 = vmatpush3.bf16.msra.mxu1 %v5907_v46  ;;  %v4451_v46 = vrot.slane %v4414_v30, 5  ;;  %v3693_v55 = vld [vmem:[#allocation3 + $0x14] sm:$0x1]  ;;  %v3690_v39 = vld [vmem:[#allocation3 + $0x8] sm:$0xe]  ;;  %v5023_v40 = vrot.slane %v3692_v57, 9 }
 0x29f   : > { %5492 = vmatprep.subr.bf16.mxu1 %v5910_v52  ;;  %v3491_v30 = vsel %vm6513_vm11, %v3486_v1, %v3490_v20  ;;  %v3449_v31 = vsel %vm6513_vm11, %v3444_v51, %v3448_v22  ;;  %v3691_v26 = vld [vmem:[#allocation3 + $0xc] sm:$0x1]  ;;  %v3728_v15 = vrot.slane %v3693_v55, 5  ;;  %v5022_v3 = vrot.slane %v3690_v39, 9  ;;  %v5927_v54 = vld [vmem:[#allocation10 + $0x170] sm:$0xff]   ;;  %v5929_v20 = vld [vmem:[#allocation10 + $0x180] sm:$0xff]  }
 0x2a0   : > { %5593 = vmatpush3.bf16.msra.mxu0 %v6874_v59  ;;  %v5011_v35 = vcombine.low %v3449_v31, %v3463_v32  ;;  %v3724_v41 = vrot.slane %v3691_v26, 5  ;;  %v3696_v17 = vld [vmem:[#allocation3 + $0x20] sm:$0xe]  ;;  %v3697_v56 = vld [vmem:[#allocation3 + $0x24] sm:$0x1] }
 0x2a1   : > { %5485 = vmatmul.mubr.bf16.gmra.mrb[4].mxu1 %v5909_v60  ;;  %5594 = vmatprep.subr.bf16.mxu0 %v6880_v18  ;;  %v4452_v60 = vsel %vm6541_vm14, %v5068_v12, %v4451_v46  ;;  %v3502_v12 = vshll.u32 %v3405_v6, 16  ;;  %v5923_v46 = vld [vmem:[#allocation10 + $0x150] sm:$0xff]   ;;  %v3736_v1 = vrot.slane %v3697_v56, 5  ;;  %v3698_v51 = vld [vmem:[#allocation3 + $0x28] sm:$0xe] }
 0x2a2   : > { %5493 = vmatpush3.bf16.msra.mxu1 %v5910_v52  ;;  %5504 = vmatprep.mubr.bf16.mxu1 %v5010_v62  ;;  %v3496_v52 = vshll.u32 %v3404_v42, 16  ;;  %v3512_v62 = vrot.slane %v3510_v16, 5  ;;  %v5075_v63 = vcombine.low %v4452_v60, %v4456_v43  ;;  %v3518_v42 = vrot.slane %v3516_v33, 5  ;;  %v3700_v60 = vld [vmem:[#allocation3 + $0x30] sm:$0xe] }
 0x2a3   : > { %5494 = vmatprep.subr.bf16.mxu1 %v5912_v19  ;;  %v3729_v43 = vsel %vm6541_vm14, %v5023_v40, %v3728_v15  ;;  %v3725_v47 = vsel %vm6541_vm14, %v5022_v3, %v3724_v41  ;;  %v3701_v61 = vld [vmem:[#allocation3 + $0x34] sm:$0x1]  ;;  %v3699_v58 = vld [vmem:[#allocation3 + $0x2c] sm:$0x1]  ;;  %v5026_v21 = vrot.slane %v3698_v51, 9  ;;  %v5933_v15 = vld [vmem:[#allocation10 + $0x198] sm:$0xff]  }
 0x2a4   : > { %5595 = vmatpush3.bf16.msra.mxu0 %v6880_v18  ;;  %v3498_v4 = vrot.slane %v3496_v52, 5  ;;  %v5030_v34 = vcombine.low %v3725_v47, %v3729_v43  ;;  %v5925_v52 = vld [vmem:[#allocation10 + $0x160] sm:$0xff]   ;;  %v3740_v22 = vrot.slane %v3699_v58, 5  ;;  %v5930_v33 = vld [vmem:[#allocation10 + $0x188] sm:$0xff]   ;;  %v3702_v57 = vld [vmem:[#allocation3 + $0x38] sm:$0xe] }
 0x2a5   : > { %5596 = vmatprep.subr.bf16.mxu0 %v6882_v2  ;;  %v3703_v55 = vld [vmem:[#allocation3 + $0x3c] sm:$0x1]  ;;  %v4111_v3 = vld [vmem:[#allocation3 + $0x10] sm:$0xf] }
 0x2a6   : > { %5495 = vmatpush3.bf16.msra.mxu1 %v5912_v19  ;;  %v3509_v19 = vrot.slane %v3507_v14, 4  ;;  %v3499_v37 = vor.u32 %v3498_v4, %v3495_v23  ;;  %v3504_v14 = vrot.slane %v3502_v12, 5  ;;  %v5027_v23 = vrot.slane %v3700_v60, 9  ;;  %v5936_v41 = vld [vmem:[#allocation10 + $0x1b0] sm:$0xff]   ;;  %v4114_v60 = vld [vmem:[#allocation3 + $0x1c] sm:$0x1] }
 0x2a7   : > { %5496 = vmatprep.subr.bf16.mxu1 %v5914_v0  ;;  %v3744_v4 = vrot.slane %v3701_v61, 5  ;;  %v3748_v12 = vrot.slane %v3703_v55, 5  ;;  %v4131_v43 = vshll.u32 %v4111_v3, 16  ;;  %v5938_v61 = vld [vmem:[#allocation3 + $0x20] ss:$8 sps:$4 sm:$0xff]   ;;  %v4151_v51 = vshll.u32 %v4114_v60, 16 }
 0x2a8   : > { %5597 = vmatpush3.bf16.msra.mxu0 %v6882_v2  ;;  %v3513_v24 = vor.u32 %v3512_v62, %v3509_v19  ;;  %v3500_v27 = vrot.slane %v3499_v37, 4  ;;  %v5928_v19 = vld [vmem:[#allocation10 + $0x178] sm:$0xff]   ;;  %v3741_v37 = vsel %vm6541_vm14, %v5026_v21, %v3740_v22  ;;  %v5943_v58 = vld [vmem:[#allocation10 + $0x1d0] sm:$0xff]  }
 0x2a9   : > { %5598 = vmatprep.subr.bf16.mxu0 %v6886_v29  ;;  %v3694_v62 = vld [vmem:[#allocation3 + $0x18] sm:$0xe] }
 0x2aa   : > { %5497 = vmatpush3.bf16.msra.mxu1 %v5914_v0  ;;  %v3474_v0 = vshll.u32 %v3401_v48, 16  ;;  %v3514_v38 = vrot.slane %v3513_v24, 4  ;;  %v3505_v44 = vsel %vm6513_vm11, %v3500_v27, %v3504_v14  ;;  %v5924_v48 = vld [vmem:[#allocation10 + $0x158] sm:$0xff]   ;;  %v3745_v24 = vsel %vm6541_vm14, %v5027_v23, %v3744_v4 }
 0x2ab   : > { %5498 = vmatprep.subr.bf16.mxu1 %v5916_v10  ;;  %v5932_v27 = vld [vmem:[#allocation3 + $0x10] ss:$8 sps:$4 sm:$0xff]  }
 0x2ac   : > { %5599 = vmatpush3.bf16.msra.mxu0 %v6886_v29  ;;  %v3476_v28 = vrot.slane %v3474_v0, 5  ;;  %v3519_v16 = vsel %vm6513_vm11, %v3514_v38, %v3518_v42  ;;  %v5025_v0 = vrot.slane %v3696_v17, 9  ;;  %v5931_v38 = vld [vmem:[#allocation10 + $0x190] sm:$0xff]   ;;  %v5934_v42 = vld [vmem:[#allocation10 + $0x1a0] sm:$0xff]   ;;  %v5944_v22 = vld [vmem:[#allocation10 + $0x1d8] sm:$0xff]  }
 0x2ad   : > { %v5013_v45 = vcombine.low %v3505_v44, %v3519_v16  ;;  %v4113_v14 = vld [vmem:[#allocation3 + $0x18] sm:$0xf]  ;;  %v4128_v16 = vshrl.u32 %v4111_v3, 16  ;;  %v4112_v17 = vld [vmem:[#allocation3 + $0x14] sm:$0x1] }
 0x2ae   : > { %5499 = vmatpush3.bf16.msra.mxu1 %v5916_v10  ;;  %v5921_v10 = vld [vmem:[#allocation10 + $0x140] sm:$0xff]   ;;  %v3477_v36 = vsel %vm6513_vm11, %v3472_v11, %v3476_v28  ;;  %v3737_v32 = vsel %vm6541_vm14, %v5025_v0, %v3736_v1  ;;  %v5937_v44 = vld [vmem:[#allocation10 + $0x1b8] sm:$0xff]   ;;  %v4145_v47 = vshll.u32 %v4113_v14, 16 }
 0x2af   : > { %5500 = vmatprep.subr.bf16.mxu1 %v5918_v5  ;;  %5601 = vmatmul.mubr.bf16.vlgmr.msra.gmra.mrb[16].mxu0 %v5075_v63  ;;  %v3695_v63 = vld [vmem:[#allocation3 + $0x1c] sm:$0x1]  ;;  %v3704_v28 = vld [vmem:[#allocation3 + $0x40] sm:$0xe]  ;;  %v5940_v0 = vld [vmem:[#allocation3 + $0x30] ss:$8 sps:$4 sm:$0xff]  }
 0x2b0   : > { %v3732_v11 = vrot.slane %v3695_v63, 5  ;;  %v5948_v60 = vld [vmem:[#allocation10 + $0x1f8] sm:$0xff]  }
 0x2b2   : > { %5501 = vmatpush3.bf16.msra.mxu1 %v5918_v5  ;;  %v5012_v5 = vcombine.low %v3477_v36, %v3491_v30  ;;  %v3705_v30 = vld [vmem:[#allocation3 + $0x44] sm:$0x1]  ;;  %v5029_v36 = vrot.slane %v3704_v28, 9  ;;  %v4119_v28 = vld [vmem:[#allocation3 + $0x30] sm:$0xf] }
 0x2b3   : > { %5502 = vmatprep.subr.bf16.mxu1 %v5920_v53  ;;  %v4187_v55 = vshll.u32 %v4119_v28, 16 }
 0x2b6   : > { %5503 = vmatpush3.bf16.msra.mxu1 %v5920_v53  ;;  %v5926_v53 = vld [vmem:[#allocation10 + $0x168] sm:$0xff]  }
 0x2b7   : > { %5512 = vmatprep.subr.bf16.mxu1 %v5921_v10 }
 0x2b9   : > { %5505 = vmatmul.mubr.bf16.vlgmr.msra.gmra.mrb[0].mxu1 %v5011_v35  ;;  %v5032_v35 = vcombine.low %v3741_v37, %v3745_v24  ;;  %v4117_v24 = vld [vmem:[#allocation3 + $0x28] sm:$0xf] }
 0x2ba   : > { %5508 = vmatprep.mubr.bf16.mxu1 %v5012_v5  ;;  %5513 = vmatpush3.bf16.msra.mxu1 %v5921_v10  ;;  %v5024_v10 = vrot.slane %v3694_v62, 9  ;;  %v5028_v5 = vrot.slane %v3702_v57, 9  ;;  %v4137_v62 = vshll.u32 %v4112_v17, 16  ;;  %v4173_v37 = vshll.u32 %v4117_v24, 16 }
 0x2bb   : > { %5514 = vmatprep.subr.bf16.mxu1 %v5922_v8  ;;  %v4184_v57 = vshrl.u32 %v4119_v28, 16 }
 0x2bc   : > { %v3733_v6 = vsel %vm6541_vm14, %v5024_v10, %v3732_v11  ;;  %v3749_v26 = vsel %vm6541_vm14, %v5028_v5, %v3748_v12  ;;  %v4139_v23 = vrot.slane %v4137_v62, 5  ;;  %v4153_v11 = vrot.slane %v4151_v51, 5 }
 0x2bd   : > { %v5031_v31 = vcombine.low %v3733_v6, %v3737_v32  ;;  %v4115_v6 = vld [vmem:[#allocation3 + $0x20] sm:$0xf] }
 0x2be   : > { %5515 = vmatpush3.bf16.msra.mxu1 %v5922_v8  ;;  %v3752_v8 = vrot.slane %v3705_v30, 5  ;;  %v5945_v30 = vld [vmem:[#allocation10 + $0x1e0] sm:$0xff]  }
 0x2bf   : > { %5516 = vmatprep.subr.bf16.mxu1 %v5923_v46 }
 0x2c0   : > { %v3753_v39 = vsel %vm6541_vm14, %v5029_v36, %v3752_v8  ;;  %v4159_v36 = vshll.u32 %v4115_v6, 16  ;;  %v5946_v8 = vld [vmem:[#allocation10 + $0x1e8] sm:$0xff]  }
 0x2c1   : > { %5509 = vmatmul.mubr.bf16.gmra.mrb[4].mxu1 %v5013_v45  ;;  %v5033_v40 = vcombine.low %v3749_v26, %v3753_v39  ;;  %v4142_v45 = vshrl.u32 %v4113_v14, 16  ;;  %v4175_v26 = vrot.slane %v4173_v37, 5  ;;  %v4118_v14 = vld [vmem:[#allocation3 + $0x2c] sm:$0x1] }
 0x2c2   : > { %5517 = vmatpush3.bf16.msra.mxu1 %v5923_v46  ;;  %5528 = vmatprep.mubr.bf16.mxu1 %v5030_v34  ;;  %v5935_v46 = vld [vmem:[#allocation10 + $0x1a8] sm:$0xff]   ;;  %v4133_v34 = vrot.slane %v4131_v43, 5  ;;  %v4179_v17 = vshll.u32 %v4118_v14, 16 }
 0x2c3   : > { %5518 = vmatprep.subr.bf16.mxu1 %v5924_v48 }
 0x2c6   : > { %5519 = vmatpush3.bf16.msra.mxu1 %v5924_v48  ;;  %v4130_v48 = vrot.slane %v4128_v16, 4 }
 0x2c7   : > { %5520 = vmatprep.subr.bf16.mxu1 %v5925_v52 }
 0x2c8   : > { %v4134_v56 = vor.u32 %v4133_v34, %v4130_v48 }
 0x2ca   : > { %5521 = vmatpush3.bf16.msra.mxu1 %v5925_v52  ;;  %v5939_v52 = vld [vmem:[#allocation10 + $0x1c0] sm:$0xff]   ;;  %v4135_v1 = vrot.slane %v4134_v56, 4  ;;  %v4122_v56 = vld [vmem:[#allocation3 + $0x3c] sm:$0x1] }
 0x2cb   : > { %5522 = vmatprep.subr.bf16.mxu1 %v5926_v53 }
 0x2cc   : > { %v4140_v10 = vsel %vm6513_vm11, %v4135_v1, %v4139_v23 }
 0x2ce   : > { %5523 = vmatpush3.bf16.msra.mxu1 %v5926_v53  ;;  %v4144_v53 = vrot.slane %v4142_v45, 4 }
 0x2cf   : > { %5524 = vmatprep.subr.bf16.mxu1 %v5927_v54 }
 0x2d2   : > { %5525 = vmatpush3.bf16.msra.mxu1 %v5927_v54  ;;  %v4147_v54 = vrot.slane %v4145_v47, 5  ;;  %v4120_v47 = vld [vmem:[#allocation3 + $0x34] sm:$0x1] }
 0x2d3   : > { %5526 = vmatprep.subr.bf16.mxu1 %v5928_v19 }
 0x2d4   : > { %v4148_v63 = vor.u32 %v4147_v54, %v4144_v53 }
 0x2d6   : > { %5527 = vmatpush3.bf16.msra.mxu1 %v5928_v19  ;;  %v5941_v19 = vld [vmem:[#allocation10 + $0x1c8] sm:$0xff]   ;;  %v4149_v4 = vrot.slane %v4148_v63, 4 }
 0x2d7   : > { %5536 = vmatprep.subr.bf16.mxu1 %v5929_v20 }
 0x2d8   : > { %v4154_v21 = vsel %vm6513_vm11, %v4149_v4, %v4153_v11  ;;  %v4207_v4 = vshll.u32 %v4122_v56, 16 }
 0x2d9   : > { %5529 = vmatmul.mubr.bf16.vlgmr.msra.gmra.mrb[0].mxu1 %v5031_v31  ;;  %v5054_v32 = vcombine.low %v4140_v10, %v4154_v21  ;;  %v4170_v31 = vshrl.u32 %v4117_v24, 16  ;;  %v4126_v10 = vld [vmem:[#allocation3 + $0x4c] sm:$0x1] }
 0x2da   : > { %5532 = vmatprep.mubr.bf16.mxu1 %v5032_v35  ;;  %5537 = vmatpush3.bf16.msra.mxu1 %v5929_v20  ;;  %v5942_v20 = vld [vmem:[#allocation3 + $0x40] ss:$8 sps:$4 sm:$0xff]   ;;  %v4156_v35 = vshrl.u32 %v4115_v6, 16 }
 0x2db   : > { %5538 = vmatprep.subr.bf16.mxu1 %v5930_v33  ;;  %v4172_v39 = vrot.slane %v4170_v31, 4  ;;  %v4235_v31 = vshll.u32 %v4126_v10, 16 }
 0x2dd   : > { %v4176_v45 = vor.u32 %v4175_v26, %v4172_v39  ;;  %v4237_v26 = vrot.slane %v4235_v31, 5 }
 0x2de   : > { %5539 = vmatpush3.bf16.msra.mxu1 %v5930_v33  ;;  %v4121_v33 = vld [vmem:[#allocation3 + $0x38] sm:$0xf] }
 0x2df   : > { %5540 = vmatprep.subr.bf16.mxu1 %v5931_v38  ;;  %v4198_v5 = vshrl.u32 %v4121_v33, 16  ;;  %v4201_v12 = vshll.u32 %v4121_v33, 16  ;;  %v4177_v1 = vrot.slane %v4176_v45, 4  ;;  %v4209_v33 = vrot.slane %v4207_v4, 5 }
 0x2e1   : > { %5533 = vmatmul.mubr.bf16.gmra.mrb[4].mxu1 %v5033_v40  ;;  %v4186_v40 = vrot.slane %v4184_v57, 4  ;;  %v4200_v16 = vrot.slane %v4198_v5, 4  ;;  %v4203_v43 = vrot.slane %v4201_v12, 5 }
 0x2e2   : > { %5541 = vmatpush3.bf16.msra.mxu1 %v5931_v38  ;;  %5552 = vmatprep.mubr.bf16.mxu1 %v5932_v27  ;;  %v4125_v38 = vld [vmem:[#allocation3 + $0x48] sm:$0xf]  ;;  %v4123_v27 = vld [vmem:[#allocation3 + $0x40] sm:$0xf] }
 0x2e3   : > { %5542 = vmatprep.subr.bf16.mxu1 %v5933_v15  ;;  %v4226_v3 = vshrl.u32 %v4125_v38, 16  ;;  %v4212_v48 = vshrl.u32 %v4123_v27, 16  ;;  %v4215_v34 = vshll.u32 %v4123_v27, 16 }
 0x2e5   : > { %v4228_v62 = vrot.slane %v4226_v3, 4  ;;  %v4214_v51 = vrot.slane %v4212_v48, 4  ;;  %v4424_v48 = vld [vmem:[#allocation3 + $0x4c] sm:$0x1] }
 0x2e6   : > { %5543 = vmatpush3.bf16.msra.mxu1 %v5933_v15  ;;  %v4189_v15 = vrot.slane %v4187_v55, 5 }
 0x2e7   : > { %5544 = vmatprep.subr.bf16.mxu1 %v5934_v42 }
 0x2e8   : > { %v4190_v53 = vor.u32 %v4189_v15, %v4186_v40  ;;  %v4419_v40 = vld [vmem:[#allocation3 + $0x38] sm:$0xe]  ;;  %v4420_v15 = vld [vmem:[#allocation3 + $0x3c] sm:$0x1] }
 0x2e9   : > { %v5071_v3 = vrot.slane %v4419_v40, 9 }
 0x2ea   : > { %5545 = vmatpush3.bf16.msra.mxu1 %v5934_v42  ;;  %v4158_v42 = vrot.slane %v4156_v35, 4  ;;  %v4191_v23 = vrot.slane %v4190_v53, 4  ;;  %v4417_v35 = vld [vmem:[#allocation3 + $0x30] sm:$0xe]  ;;  %v4471_v53 = vrot.slane %v4424_v48, 5 }
 0x2eb   : > { %5546 = vmatprep.subr.bf16.mxu1 %v5935_v46  ;;  %v5070_v27 = vrot.slane %v4417_v35, 9 }
 0x2ee   : > { %5547 = vmatpush3.bf16.msra.mxu1 %v5935_v46  ;;  %v4161_v46 = vrot.slane %v4159_v36, 5  ;;  %v4418_v36 = vld [vmem:[#allocation3 + $0x34] sm:$0x1] }
 0x2ef   : > { %5548 = vmatprep.subr.bf16.mxu1 %v5936_v41 }
 0x2f0   : > { %v4162_v54 = vor.u32 %v4161_v46, %v4158_v42  ;;  %v4459_v42 = vrot.slane %v4418_v36, 5 }
 0x2f2   : > { %5549 = vmatpush3.bf16.msra.mxu1 %v5936_v41  ;;  %v5947_v41 = vld [vmem:[#allocation10 + $0x1f0] sm:$0xff]   ;;  %v4163_v11 = vrot.slane %v4162_v54, 4 }
 0x2f3   : > { %5550 = vmatprep.subr.bf16.mxu1 %v5937_v44 }
 0x2f6   : > { %5551 = vmatpush3.bf16.msra.mxu1 %v5937_v44  ;;  %v4229_v44 = vshll.u32 %v4125_v38, 16 }
 0x2f7   : > { %5560 = vmatprep.subr.bf16.mxu1 %v5939_v52 }
 0x2f8   : > { %v4231_v63 = vrot.slane %v4229_v44, 5 }
 0x2f9   : > { %5553 = vmatmul.mubr.bf16.vlgmr.msra.gmra.mrb[0].mxu1 %v5938_v61  ;;  %v4193_v61 = vshll.u32 %v4120_v47, 16  ;;  %v4422_v47 = vld [vmem:[#allocation3 + $0x44] sm:$0x1] }
 0x2fa   : > { %5556 = vmatprep.mubr.bf16.mxu1 %v5940_v0  ;;  %5561 = vmatpush3.bf16.msra.mxu1 %v5939_v52  ;;  %v4116_v52 = vld [vmem:[#allocation3 + $0x24] sm:$0x1]  ;;  %v4232_v24 = vor.u32 %v4231_v63, %v4228_v62 }
 0x2fb   : > { %5562 = vmatprep.subr.bf16.mxu1 %v5941_v19  ;;  %v4165_v0 = vshll.u32 %v4116_v52, 16  ;;  %v4195_v21 = vrot.slane %v4193_v61, 5  ;;  %v5073_v52 = vrot.slane %v4423_v7, 9 }
 0x2fc   : > { %v4233_v12 = vrot.slane %v4232_v24, 4 }
 0x2fd   : > { %v4167_v28 = vrot.slane %v4165_v0, 5  ;;  %v4196_v37 = vsel %vm6513_vm11, %v4191_v23, %v4195_v21 }
 0x2fe   : > { %5563 = vmatpush3.bf16.msra.mxu1 %v5941_v19  ;;  %v4204_v19 = vor.u32 %v4203_v43, %v4200_v16  ;;  %v4238_v16 = vsel %vm6513_vm11, %v4233_v12, %v4237_v26  ;;  %v4460_v43 = vsel %vm6541_vm14, %v5070_v27, %v4459_v42 }
 0x2ff   : > { %5564 = vmatprep.subr.bf16.mxu1 %v5943_v58  ;;  %v4168_v57 = vsel %vm6513_vm11, %v4163_v11, %v4167_v28 }
 0x301   : > { %5557 = vmatmul.mubr.bf16.gmra.mrb[4].mxu1 %v5942_v20  ;;  %v4181_v20 = vrot.slane %v4179_v17, 5 }
 0x302   : > { %5565 = vmatpush3.bf16.msra.mxu1 %v5943_v58  ;;  %5576 = vmatprep.mubr.bf16.mxu1 %v5054_v32  ;;  %v4217_v58 = vrot.slane %v4215_v34, 5  ;;  %v4124_v32 = vld [vmem:[#allocation3 + $0x44] sm:$0x1]  ;;  %v4467_v34 = vrot.slane %v4422_v47, 5 }
 0x303   : > { %5566 = vmatprep.subr.bf16.mxu1 %v5944_v22  ;;  %v4221_v55 = vshll.u32 %v4124_v32, 16 }
 0x304   : > { %v4218_v6 = vor.u32 %v4217_v58, %v4214_v51 }
 0x305   : > { %v4223_v46 = vrot.slane %v4221_v55, 5 }
 0x306   : > { %5567 = vmatpush3.bf16.msra.mxu1 %v5944_v22  ;;  %v4205_v22 = vrot.slane %v4204_v19, 4  ;;  %v4219_v39 = vrot.slane %v4218_v6, 4 }
 0x307   : > { %5568 = vmatprep.subr.bf16.mxu1 %v5945_v30 }
 0x308   : > { %v4210_v5 = vsel %vm6513_vm11, %v4205_v22, %v4209_v33  ;;  %v4224_v14 = vsel %vm6513_vm11, %v4219_v39, %v4223_v46 }
 0x309   : > { %v5056_v38 = vcombine.low %v4196_v37, %v4210_v5  ;;  %v5057_v44 = vcombine.low %v4224_v14, %v4238_v16 }
 0x30a   : > { %5569 = vmatpush3.bf16.msra.mxu1 %v5945_v30  ;;  %v4182_v30 = vsel %vm6513_vm11, %v4177_v1, %v4181_v20 }
 0x30b   : > { %5570 = vmatprep.subr.bf16.mxu1 %v5946_v8 }
 0x30e   : > { %5571 = vmatpush3.bf16.msra.mxu1 %v5946_v8  ;;  %v5055_v8 = vcombine.low %v4168_v57, %v4182_v30 }
 0x30f   : > { %5572 = vmatprep.subr.bf16.mxu1 %v5947_v41 }
 0x312   : > { %5573 = vmatpush3.bf16.msra.mxu1 %v5947_v41  ;;  %v4463_v41 = vrot.slane %v4420_v15, 5 }
 0x313   : > { %5574 = vmatprep.subr.bf16.mxu1 %v5948_v60 }
 0x316   : > { %5575 = vmatpush3.bf16.msra.mxu1 %v5948_v60 }
 0x317   : > { %5608 = vmatprep.subr.bf16.mxu1 %v6841_v50 }
 0x319   : > { %5577 = vmatmul.mubr.bf16.vlgmr.msra.gmra.mrb[0].mxu1 %v5055_v8 }
 0x31a   : > { %5580 = vmatprep.mubr.bf16.mxu1 %v5056_v38  ;;  %5616 = vmatpush3.bf16.msra.mxu1 %v6841_v50  ;;  %v4464_v50 = vsel %vm6541_vm14, %v5071_v3, %v4463_v41 }
 0x31b   : > { %5609 = vmatprep.subr.bf16.mxu1 %v6852_v25  ;;  %v5076_v45 = vcombine.low %v4460_v43, %v4464_v50 }
 0x31e   : > { %5617 = vmatpush3.bf16.msra.mxu1 %v6852_v25  ;;  %v4421_v25 = vld [vmem:[#allocation3 + $0x40] sm:$0xe] }
 0x31f   : > { %5610 = vmatprep.subr.bf16.mxu1 %v6856_v9 }
 0x321   : > { %5581 = vmatmul.mubr.bf16.gmra.mrb[4].mxu1 %v5057_v44 }
 0x322   : > { %5618 = vmatpush3.bf16.msra.mxu1 %v6856_v9  ;;  %5604 = vmatprep.mubr.bf16.mxu1 %v5076_v45  ;;  %v5072_v9 = vrot.slane %v4421_v25, 9 }
 0x323   : > { %5611 = vmatprep.subr.bf16.mxu1 %v6868_v49 }
 0x326   : > { %5619 = vmatpush3.bf16.msra.mxu1 %v6868_v49  ;;  %v4468_v49 = vsel %vm6541_vm14, %v5072_v9, %v4467_v34 }
 0x327   : > { %5612 = vmatprep.subr.bf16.mxu1 %v6874_v59 }
 0x32a   : > { %5620 = vmatpush3.bf16.msra.mxu1 %v6874_v59  ;;  %v4472_v59 = vsel %vm6541_vm14, %v5073_v52, %v4471_v53 }
 0x32b   : > { %5613 = vmatprep.subr.bf16.mxu1 %v6880_v18  ;;  %v5077_v54 = vcombine.low %v4468_v49, %v4472_v59 }
 0x32e   : > { %5621 = vmatpush3.bf16.msra.mxu1 %v6880_v18 }
 0x32f   : > { %5614 = vmatprep.subr.bf16.mxu1 %v6882_v2 }
 0x332   : > { %5622 = vmatpush3.bf16.msra.mxu1 %v6882_v2 }
 0x333   : > { %5615 = vmatprep.subr.bf16.mxu1 %v6886_v29 }
 0x336   : > { %5623 = vmatpush3.bf16.msra.mxu1 %v6886_v29  ;;  %v5086_v29 = vld [vmem:[%s7023_s4] ss:$0 sm:$0xff] }
 0x339   : > { %5605 = vmatmul.mubr.bf16.vlgmr.msra.gmra.mrb[4].mxu1 %v5077_v54 }
 0x362   : > { %v5434_v18 = vpop.f32.mrb[8].mxu0 }
 0x363   : > { %v2917_v17 = vpop.f32.mrb[9].mxu0 }
 0x364   : > { %v5435_v56 = vpop.f32.mrb[10].mxu0 }
 0x365   : > { %v2920_v60 = vpop.f32.mrb[11].mxu0 }
 0x36a   : > { %v5438_v61 = vpop.f32.mrb[12].mxu0 }
 0x36b   : > { %v2933_v19 = vpop.f32.mrb[13].mxu0 }
 0x36c   : > { %v5439_v62 = vpop.f32.mrb[14].mxu0 }
 0x36d   : > { %v2936_v2 = vpop.f32.mrb[15].mxu0 }
 0x382   : > { %v5602_v63 = vpop.f32.mrb[16].mxu0 }
 0x383   : > { %v4588_v0 = vpop.f32.mrb[17].mxu0 }
 0x384   : > { %v5603_v1 = vpop.f32.mrb[18].mxu0 }
 0x385   : > { %v4591_v51 = vpop.f32.mrb[19].mxu0 }
 0x3ec   : > { %v5578_v58 = vpop.f32.mrb[0].mxu1 }
 0x3ed   : > { %v5624_v13 = vadd.f32 %v5578_v58, %v5434_v18  ;;  %v4354_v23 = vpop.f32.mrb[1].mxu1 }
 0x3ee   : > { %v5626_v4 = vadd.f32 %v4354_v23, %v2917_v17  ;;  %v5579_v10 = vpop.f32.mrb[2].mxu1 }
 0x3ef   : > { %v5625_v11 = vadd.f32 %v5624_v13, %v5602_v63  ;;  %v5628_v20 = vadd.f32 %v5579_v10, %v5435_v56  ;;  %v4357_v21 = vpop.f32.mrb[3].mxu1 }
 0x3f0   : > { %v5627_v22 = vadd.f32 %v5626_v4, %v4588_v0  ;;  %v5630_v32 = vadd.f32 %v4357_v21, %v2920_v60 }
 0x3f1   : > { %v4660_v24 = vadd.f32 %v5625_v11, %v5086_v29  ;;  %v5629_v28 = vadd.f32 %v5628_v20, %v5603_v1 }
 0x3f2   : > { %v4658_v30 = vadd.f32 %v5627_v22, %v5086_v29  ;;  %v5631_v6 = vadd.f32 %v5630_v32, %v4591_v51 }
 0x3f3   : > { %v4661_v31 = vadd.f32 %v5629_v28, %v5086_v29  ;;  %v4668_v33 = vmax.f32 %v4660_v24, 0.0 }
 0x3f4   : > { %v4659_v37 = vadd.f32 %v5631_v6, %v5086_v29  ;;  %v4666_v55 = vmax.f32 %v4658_v30, 0.0 }
 0x3f5   : > { %v4669_v57 = vmax.f32 %v4661_v31, 0.0 }
 0x3f6   : > { %v4667_v35 = vmax.f32 %v4659_v37, 0.0 }
 0x3f7   : > { %v5134_v36 = vpack.c.bf16 %v4669_v57, %v4668_v33 }
 0x3f8   : > { %v5129_v8 = vpack.c.bf16 %v4667_v35, %v4666_v55 }
 0x3f9   : > { %5146 = vst [vmem:[%s271_s29 + $0x8] sm:$0xff] %v5134_v36  }
 0x3fa   : > { %5130 = vst [vmem:[%s271_s29] sm:$0xff] %v5129_v8  }
 0x40c   : > { %v5606_v5 = vpop.f32.mrb[4].mxu1 }
 0x40d   : > { %v5632_v12 = vadd.f32 %v5606_v5, %v5438_v61  ;;  %v4604_v38 = vpop.f32.mrb[5].mxu1 }
 0x40e   : > { %v5633_v39 = vadd.f32 %v4604_v38, %v2933_v19  ;;  %v5607_v26 = vpop.f32.mrb[6].mxu1 }
 0x40f   : > { %v4664_v40 = vadd.f32 %v5632_v12, %v5086_v29  ;;  %v5634_v15 = vadd.f32 %v5607_v26, %v5439_v62  ;;  %v4607_v27 = vpop.f32.mrb[7].mxu1 }
 0x410   : > { %v4662_v42 = vadd.f32 %v5633_v39, %v5086_v29  ;;  %v5635_v46 = vadd.f32 %v4607_v27, %v2936_v2 }
 0x411   : > { %v4665_v3 = vadd.f32 %v5634_v15, %v5086_v29  ;;  %v4672_v14 = vmax.f32 %v4664_v40, 0.0 }
 0x412   : > { %v4663_v41 = vadd.f32 %v5635_v46, %v5086_v29  ;;  %v4670_v43 = vmax.f32 %v4662_v42, 0.0 }
 0x413   : > { %v4673_v16 = vmax.f32 %v4665_v3, 0.0 }
 0x414   : > { %v4671_v44 = vmax.f32 %v4663_v41, 0.0 }
 0x415   : > { %v5144_v50 = vpack.c.bf16 %v4673_v16, %v4672_v14 }
 0x416   : > { %v5139_v45 = vpack.c.bf16 %v4671_v44, %v4670_v43 }
 0x417   : > { %5148 = vst [vmem:[%s271_s29 + $0x18] sm:$0xff] %v5144_v50  }
 0x418   : > { %5147 = vst [vmem:[%s271_s29 + $0x10] sm:$0xff] %v5139_v45  }
 0x419   : > { %6048 = shalt.err (!%p6045_p2)
}
 0x41a   : > { %s6049_s26 = scalar_lea.hbm %s6975_s15, 512  ;;  %s6053_s12 = scalar_lea.hbm %s7024_s5, 1024 }
 0x41b   : > { %p6050_p13 = scmp.ne.s32.totalorder %s6975_s15, %s6049_s26  ;;  %p6054_p4 = scmp.lt.u32.totalorder %s6975_s15, %s7024_s5 }
 0x41c   : > { %p6055_p7 = scmp.lt.u32.totalorder %s6053_s12, %s6049_s26  ;;  %p6057_p11 = scmp.lt.u32.totalorder %s6049_s26, %s6975_s15 }
 0x41d   : > { %p6051_p6 = pnand %p6050_p13, %p7054_p0 }
 0x41e   : > { %p6056_p8 = por %p6055_p7, %p6054_p4 }
 0x41f   : > { %p6052_p10 = pneg %p6051_p6 }
 0x420   : > { %p6058_p1 = por %p6057_p11, %p6056_p8 }
 0x422   : > { %p6059_p3 = pnand %p6058_p1, %p6052_p10 }
 0x424   : > { %6062 = shalt.err (!%p6059_p3)
}
 0x425   : > { %s6119_s9 = smov 64   ;;  %s6120_s11 = smov 4  }
 0x426   : > { %5771 = dma.vmem_to_hbm [thread:$0]  (%p7054_p0), %s6970_s8, 512, %s6975_s15, %s4715_s23, %s6119_s9, %s6119_s9, %s6120_s11  }
 0x427 PF: > { %s4743_s14 = sand.u32 1, %s6093_s18   ;;  %p7055_p5 = scmp.ne.s32.totalorder %s7029_s25, 0 }
 0x428   : > { %p7056_p9 = scmp.ge.s32.totalorder %s6105_s21, 2  ;;  %s4744_s22 = scalar_lea.sflag [#allocation7], %s4743_s14 }
 0x42a   : > { %p5785_p12 = pnand %p7056_p9, %p7055_p5 }
 0x42c   : > { %6088 = dma.done.wait (!%p5785_p12), %s4744_s22, 512  }
 0x42d   : > { %6090 = vsyncadd (!%p5785_p12), %s4744_s22, 4294966784  ;;  %p19_p2 = scmp.ge.s32.totalorder %s6261_s16, 4   ;;  %s7057_s18 = smov %s6097_s19 }
 0x42e   : > { %s7058_s19 = smov %s6101_s20  ;;  %s7059_s20 = smov %s6270_s27 }
 0x42f   : > { %s7060_s21 = smov %s6261_s16  ;;  %21 = sbr.rel (!%p19_p2) target bundleno = 6 (0x6), region = 116 }
 0x436   :  { %4749 = vsyncpa [#allocation6], 1 }
 0x437   :  { %4751 = vsyncpa [#allocation6 + $0x1], 1 }
 0x438   :  { %4752 = vsyncpa [#allocation9], 1 }
 0x439   :  { %4753 = vsyncpa [#allocation7], 1 }
 0x43a   :  { %4755 = vsyncpa [#allocation7 + $0x1], 1 }

</bundles_post_ra>
